<compile_context>
chip_gen: v5e
topology: v5e:2x2
jax: 0.10.0
libtpu: 0.0.40
codegen_flags: <defaults>
</compile_context>

<pallas_src>
import math

import numpy as np
import jax
import jax.numpy as jnp
from jax import lax
from jax.experimental import pallas as pl
from jax.experimental.pallas import tpu as pltpu


# ----------------------------- config ------------------------------------- #
HIDDEN = 32
NUM_HEADS = 4
HEAD_DIM = HIDDEN // NUM_HEADS
INTERMEDIATE = 64
LN_EPS = 1e-12


# --------------------------- kernel helpers -------------------------------- #
def _layernorm(x, gamma_ref, beta_ref, eps=LN_EPS):
    # x: [B, S, D]; gamma/beta refs: [1, D]
    u = jnp.mean(x, axis=-1, keepdims=True)
    s = jnp.mean((x - u) ** 2, axis=-1, keepdims=True)
    xn = (x - u) * lax.rsqrt(s + eps)            # rsqrt -> EUP, no VPU divide
    return gamma_ref[...][None] * xn + beta_ref[...][None]


def _matmul_bf16(x, w_ref):
    # bf16 MXU matmul with f32 accumulation; weights are stored bf16.
    return jnp.einsum("bsi,io->bso", x.astype(jnp.bfloat16), w_ref[...],
                      preferred_element_type=jnp.float32)


def _gelu(x):
    # exact-erf GELU to match the PyTorch reference semantics
    return x * 0.5 * (1.0 + lax.erf(x * (1.0 / math.sqrt(2.0))))


# ----------------------------- fused kernel -------------------------------- #
def bert_layer_kernel(h_ref, mask_ref,
                      wqkv_ref, bqkv_ref, wo_ref, bo_ref, g1_ref, b1_ref,
                      wi_ref, bi_ref, wo2_ref, bo2_ref, g2_ref, b2_ref,
                      out_ref):
    x = h_ref[...]                                      # [B, S, H] f32
    B, S, _ = x.shape

    # additive mask broadcast hoisted ONCE (JAX does not CSE broadcast_in_dim)
    mask_bqk = jnp.broadcast_to(mask_ref[...][:, None, :], (B, S, S))

    # ---- self attention ----------------------------------------------------
    # fused Q|K|V projection: one [H, 3H] MXU pass instead of three [H, H]
    qkv = _matmul_bf16(x, wqkv_ref) + bqkv_ref[...][None]      # [B, S, 3H] f32

    scale = 1.0 / math.sqrt(HEAD_DIM)
    wo_heads = wo_ref[...]                                     # [NH, HD, H] bf16
    attn = jnp.zeros((B, S, HIDDEN), jnp.float32)
    for h in range(NUM_HEADS):
        lo = h * HEAD_DIM
        qh = qkv[:, :, lo:lo + HEAD_DIM]
        kh = qkv[:, :, HIDDEN + lo:HIDDEN + lo + HEAD_DIM]
        vh = qkv[:, :, 2 * HIDDEN + lo:2 * HIDDEN + lo + HEAD_DIM]

        scores = jnp.einsum("bqd,bkd->bqk",
                            qh.astype(jnp.bfloat16), kh.astype(jnp.bfloat16),
                            preferred_element_type=jnp.float32)
        scores = scores * scale + mask_bqk
        scores = scores - jnp.max(scores, axis=-1, keepdims=True)
        p = jnp.exp(scores)
        # approx reciprocal goes to the (otherwise idle) EUP slot
        p = p * pl.reciprocal(jnp.sum(p, axis=-1, keepdims=True), approx=True)

        ctx_h = jnp.einsum("bqk,bkd->bqd",
                           p.astype(jnp.bfloat16), vh.astype(jnp.bfloat16),
                           preferred_element_type=jnp.float32)  # [B, S, HD]
        # ctx @ Wo == sum_h ctx_h @ Wo[h]: accumulate, no lane-dim concat
        attn = attn + jnp.einsum("bsd,do->bso",
                                 ctx_h.astype(jnp.bfloat16), wo_heads[h],
                                 preferred_element_type=jnp.float32)
    attn = attn + bo_ref[...][None]

    # ---- self output: residual + LayerNorm ---------------------------------
    attn_out = _layernorm(attn + x, g1_ref, b1_ref)

    # ---- intermediate (GELU) + output dense + residual + LayerNorm ----------
    inter = _gelu(_matmul_bf16(attn_out, wi_ref) + bi_ref[...][None])
    ffn = _matmul_bf16(inter, wo2_ref) + bo2_ref[...][None]
    out_ref[...] = _layernorm(ffn + attn_out, g2_ref, b2_ref)


# --------------------------- pallas wrapper -------------------------------- #
@jax.jit
def bert_layer_forward(hidden_states, attention_mask, params):
    """BertLayer.forward(hidden_states, attention_mask) — inference mode."""
    B, S, H = hidden_states.shape
    # extended additive mask: (1 - mask) * -10000 (same as the BERT harness)
    ext_mask = (1.0 - attention_mask.astype(jnp.float32)) * -10000.0   # [B, S]

    args = (hidden_states, ext_mask,
            params["wqkv"], params["bqkv"], params["wo_heads"], params["bo"],
            params["g1"], params["b1"], params["wi"], params["bi"],
            params["wo2"], params["bo2"], params["g2"], params["b2"])
    return pl.pallas_call(
        bert_layer_kernel,
        out_shape=jax.ShapeDtypeStruct((B, S, H), jnp.float32),
        in_specs=[pl.BlockSpec(memory_space=pltpu.MemorySpace.VMEM)
                  for _ in args],
        out_specs=pl.BlockSpec(memory_space=pltpu.MemorySpace.VMEM),
    )(*args)


# ---------------------------- parameter init ------------------------------- #
def init_params(key):
    def nrm(k, shape, scale=0.02):
        return scale * jax.random.normal(k, shape, dtype=jnp.float32)

    ks = jax.random.split(key, 6)
    f32 = {
        "wq": nrm(ks[0], (HIDDEN, HIDDEN)), "bq": jnp.zeros((1, HIDDEN), jnp.float32),
        "wk": nrm(ks[1], (HIDDEN, HIDDEN)), "bk": jnp.zeros((1, HIDDEN), jnp.float32),
        "wv": nrm(ks[2], (HIDDEN, HIDDEN)), "bv": jnp.zeros((1, HIDDEN), jnp.float32),
        "wo": nrm(ks[3], (HIDDEN, HIDDEN)), "bo": jnp.zeros((1, HIDDEN), jnp.float32),
        "g1": jnp.ones((1, HIDDEN), jnp.float32), "b1": jnp.zeros((1, HIDDEN), jnp.float32),
        "wi": nrm(ks[4], (HIDDEN, INTERMEDIATE)), "bi": jnp.zeros((1, INTERMEDIATE), jnp.float32),
        "wo2": nrm(ks[5], (INTERMEDIATE, HIDDEN)), "bo2": jnp.zeros((1, HIDDEN), jnp.float32),
        "g2": jnp.ones((1, HIDDEN), jnp.float32), "b2": jnp.zeros((1, HIDDEN), jnp.float32),
    }
    kernel_params = {
        # fused QKV weight [H, 3H] (bf16) + bias [1, 3H] (f32)
        "wqkv": jnp.concatenate([f32["wq"], f32["wk"], f32["wv"]], axis=1
                                ).astype(jnp.bfloat16),
        "bqkv": jnp.concatenate([f32["bq"], f32["bk"], f32["bv"]], axis=1),
        # output projection split per head [NH, HD, H] (bf16)
        "wo_heads": f32["wo"].reshape(NUM_HEADS, HEAD_DIM, HIDDEN
                                      ).astype(jnp.bfloat16),
        "bo": f32["bo"],
        "g1": f32["g1"], "b1": f32["b1"],
        "wi": f32["wi"].astype(jnp.bfloat16), "bi": f32["bi"],
        "wo2": f32["wo2"].astype(jnp.bfloat16), "bo2": f32["bo2"],
        "g2": f32["g2"], "b2": f32["b2"],
    }
    return f32, kernel_params


# --------------------------- pure-JAX reference ----------------------------- #
def _layernorm_ref(x, g, b, eps=LN_EPS):
    u = x.mean(-1, keepdims=True)
    s = ((x - u) ** 2).mean(-1, keepdims=True)
    return g * (x - u) / jnp.sqrt(s + eps) + b


def bert_layer_reference(hidden_states, attention_mask, p):
    """f32 replica of the PyTorch BertLayer forward (eval mode)."""
    B, S, H = hidden_states.shape
    x = hidden_states
    ext = (1.0 - attention_mask.astype(jnp.float32)) * -10000.0

    def heads(t):  # [B,S,H] -> [B,NH,S,HD]
        return t.reshape(B, S, NUM_HEADS, HEAD_DIM).transpose(0, 2, 1, 3)

    q = heads(x @ p["wq"] + p["bq"])
    k = heads(x @ p["wk"] + p["bk"])
    v = heads(x @ p["wv"] + p["bv"])
    scores = q @ k.transpose(0, 1, 3, 2) / math.sqrt(HEAD_DIM)
    scores = scores + ext[:, None, None, :]
    probs = jax.nn.softmax(scores, axis=-1)
    ctx = (probs @ v).transpose(0, 2, 1, 3).reshape(B, S, H)
    attn = _layernorm_ref(ctx @ p["wo"] + p["bo"] + x, p["g1"], p["b1"])
    inter = attn @ p["wi"] + p["bi"]
    inter = inter * 0.5 * (1.0 + lax.erf(inter / math.sqrt(2.0)))
    return _layernorm_ref(inter @ p["wo2"] + p["bo2"] + attn, p["g2"], p["b2"])


# --------------------------------- main ------------------------------------ #
if __name__ == "__main__":
    key = jax.random.PRNGKey(0)
    k_params, k_hidden = jax.random.split(key)
    f32_params, kernel_params = init_params(k_params)

    B, S = 2, 5
    hidden_states = jax.random.normal(k_hidden, (B, S, HIDDEN), dtype=jnp.float32)
    attention_mask = jnp.array([[1, 1, 1, 1, 1],
                                [1, 1, 1, 0, 0]], dtype=jnp.int32)

    out = bert_layer_forward(hidden_states, attention_mask, kernel_params)
    jax.block_until_ready(out)
    assert out.shape == (B, S, HIDDEN)

    # validate against the f32 pure-JAX reference (loosened tolerance for the
    # bf16 matmuls and approx reciprocal)
    ref = bert_layer_reference(hidden_states, attention_mask, f32_params)
    np.testing.assert_allclose(np.asarray(out), np.asarray(ref),
                               atol=5e-2, rtol=5e-2)

    print("KERNEL_OK")
</pallas_src>

<mosaic_0001>
module attributes {stable_mosaic.version = 11 : i64} {
  func.func @bert_layer_kernel(%arg0: memref<2x5x32xf32, #tpu.memory_space<vmem>>, %arg1: memref<2x5xf32, #tpu.memory_space<vmem>>, %arg2: memref<32x96xbf16, #tpu.memory_space<vmem>>, %arg3: memref<1x96xf32, #tpu.memory_space<vmem>>, %arg4: memref<4x8x32xbf16, #tpu.memory_space<vmem>>, %arg5: memref<1x32xf32, #tpu.memory_space<vmem>>, %arg6: memref<1x32xf32, #tpu.memory_space<vmem>>, %arg7: memref<1x32xf32, #tpu.memory_space<vmem>>, %arg8: memref<32x64xbf16, #tpu.memory_space<vmem>>, %arg9: memref<1x64xf32, #tpu.memory_space<vmem>>, %arg10: memref<64x32xbf16, #tpu.memory_space<vmem>>, %arg11: memref<1x32xf32, #tpu.memory_space<vmem>>, %arg12: memref<1x32xf32, #tpu.memory_space<vmem>>, %arg13: memref<1x32xf32, #tpu.memory_space<vmem>>, %arg14: memref<2x5x32xf32, #tpu.memory_space<vmem>>) attributes {dimension_semantics = [], scalar_prefetch = 0 : i64, scratch_operands = 0 : i64, tpu.core_type = #tpu.core_type<tc>} {
    %c0 = arith.constant 0 : index
    %c0_0 = arith.constant 0 : index
    %c0_1 = arith.constant 0 : index
    %0 = vector.load %arg0[%c0, %c0_0, %c0_1] : memref<2x5x32xf32, #tpu.memory_space<vmem>>, vector<2x5x32xf32>
    %c0_2 = arith.constant 0 : index
    %c0_3 = arith.constant 0 : index
    %1 = vector.load %arg1[%c0_2, %c0_3] : memref<2x5xf32, #tpu.memory_space<vmem>>, vector<2x5xf32>
    %2 = vector.shape_cast %1 : vector<2x5xf32> to vector<2x1x5xf32>
    %3 = vector.shape_cast %2 : vector<2x1x5xf32> to vector<2x1x5xf32>
    %4 = vector.broadcast %3 : vector<2x1x5xf32> to vector<2x5x5xf32>
    %5 = arith.truncf %0 : vector<2x5x32xf32> to vector<2x5x32xbf16>
    %c0_4 = arith.constant 0 : index
    %c0_5 = arith.constant 0 : index
    %6 = vector.load %arg2[%c0_4, %c0_5] : memref<32x96xbf16, #tpu.memory_space<vmem>>, vector<32x96xbf16>
    "tpu.trace_start"() <{level = 10 : i32, message = "bsi,io->bso"}> : () -> ()
    %cst = arith.constant dense<0.000000e+00> : vector<2x5x96xf32>
    %7 = tpu.matmul %5, %6, %cst {dimension_numbers = #tpu.dot_dimension_numbers<[2], [0], [0, 1], [1], [0, 0, 0, 1, 1, 1], [], []>} : vector<2x5x32xbf16>, vector<32x96xbf16>, vector<2x5x96xf32> -> vector<2x5x96xf32>
    "tpu.trace_stop"() : () -> ()
    %c0_6 = arith.constant 0 : index
    %c0_7 = arith.constant 0 : index
    %8 = vector.load %arg3[%c0_6, %c0_7] : memref<1x96xf32, #tpu.memory_space<vmem>>, vector<1x96xf32>
    %9 = vector.shape_cast %8 : vector<1x96xf32> to vector<1x1x96xf32>
    %10 = vector.broadcast %9 : vector<1x1x96xf32> to vector<2x5x96xf32>
    %11 = arith.addf %7, %10 : vector<2x5x96xf32>
    %c0_8 = arith.constant 0 : index
    %c0_9 = arith.constant 0 : index
    %c0_10 = arith.constant 0 : index
    %12 = vector.load %arg4[%c0_8, %c0_9, %c0_10] : memref<4x8x32xbf16, #tpu.memory_space<vmem>>, vector<4x8x32xbf16>
    %cst_11 = arith.constant 0.000000e+00 : f32
    %13 = vector.broadcast %cst_11 : f32 to vector<2x5x32xf32>
    %14 = vector.extract_strided_slice %11 {offsets = [0, 0, 0], sizes = [2, 5, 8], strides = [1, 1, 1]} : vector<2x5x96xf32> to vector<2x5x8xf32>
    %15 = vector.extract_strided_slice %11 {offsets = [0, 0, 32], sizes = [2, 5, 8], strides = [1, 1, 1]} : vector<2x5x96xf32> to vector<2x5x8xf32>
    %16 = vector.extract_strided_slice %11 {offsets = [0, 0, 64], sizes = [2, 5, 8], strides = [1, 1, 1]} : vector<2x5x96xf32> to vector<2x5x8xf32>
    %17 = arith.truncf %14 : vector<2x5x8xf32> to vector<2x5x8xbf16>
    %18 = arith.truncf %15 : vector<2x5x8xf32> to vector<2x5x8xbf16>
    "tpu.trace_start"() <{level = 10 : i32, message = "bqd,bkd->bqk"}> : () -> ()
    %cst_12 = arith.constant dense<0.000000e+00> : vector<2x5x5xf32>
    %19 = tpu.matmul %17, %18, %cst_12 {dimension_numbers = #tpu.dot_dimension_numbers<[2], [2], [1], [1], [0, 0, 0, 1, 1, 1], [0], [0]>} : vector<2x5x8xbf16>, vector<2x5x8xbf16>, vector<2x5x5xf32> -> vector<2x5x5xf32>
    "tpu.trace_stop"() : () -> ()
    %cst_13 = arith.constant 0.353553385 : f32
    %20 = vector.broadcast %cst_13 : f32 to vector<2x5x5xf32>
    %21 = arith.mulf %19, %20 : vector<2x5x5xf32>
    %22 = arith.addf %21, %4 : vector<2x5x5xf32>
    %cst_14 = arith.constant dense<0xFF800000> : vector<2x5xf32>
    %23 = vector.multi_reduction <maximumf>, %22, %cst_14 [2] : vector<2x5x5xf32> to vector<2x5xf32>
    %24 = vector.shape_cast %23 : vector<2x5xf32> to vector<2x5x1xf32>
    %25 = vector.broadcast %24 : vector<2x5x1xf32> to vector<2x5x5xf32>
    %26 = arith.subf %22, %25 : vector<2x5x5xf32>
    %27 = math.exp %26 : vector<2x5x5xf32>
    %cst_15 = arith.constant dense<0.000000e+00> : vector<2x5xf32>
    %28 = vector.multi_reduction <add>, %27, %cst_15 [2] : vector<2x5x5xf32> to vector<2x5xf32>
    %29 = vector.shape_cast %28 : vector<2x5xf32> to vector<2x5x1xf32>
    %30 = tpu.reciprocal %29 {approx = true} : vector<2x5x1xf32> -> vector<2x5x1xf32>
    %31 = vector.broadcast %30 : vector<2x5x1xf32> to vector<2x5x5xf32>
    %32 = arith.mulf %27, %31 : vector<2x5x5xf32>
    %33 = arith.truncf %32 : vector<2x5x5xf32> to vector<2x5x5xbf16>
    %34 = arith.truncf %16 : vector<2x5x8xf32> to vector<2x5x8xbf16>
    "tpu.trace_start"() <{level = 10 : i32, message = "bqk,bkd->bqd"}> : () -> ()
    %cst_16 = arith.constant dense<0.000000e+00> : vector<2x5x8xf32>
    %35 = tpu.matmul %33, %34, %cst_16 {dimension_numbers = #tpu.dot_dimension_numbers<[2], [1], [1], [2], [0, 0, 0, 1, 1, 2], [0], [0]>} : vector<2x5x5xbf16>, vector<2x5x8xbf16>, vector<2x5x8xf32> -> vector<2x5x8xf32>
    "tpu.trace_stop"() : () -> ()
    %36 = arith.truncf %35 : vector<2x5x8xf32> to vector<2x5x8xbf16>
    %37 = vector.extract_strided_slice %12 {offsets = [0, 0, 0], sizes = [1, 8, 32], strides = [1, 1, 1]} : vector<4x8x32xbf16> to vector<1x8x32xbf16>
    %38 = vector.shape_cast %37 : vector<1x8x32xbf16> to vector<8x32xbf16>
    "tpu.trace_start"() <{level = 10 : i32, message = "bsd,do->bso"}> : () -> ()
    %cst_17 = arith.constant dense<0.000000e+00> : vector<2x5x32xf32>
    %39 = tpu.matmul %36, %38, %cst_17 {dimension_numbers = #tpu.dot_dimension_numbers<[2], [0], [0, 1], [1], [0, 0, 0, 1, 1, 1], [], []>} : vector<2x5x8xbf16>, vector<8x32xbf16>, vector<2x5x32xf32> -> vector<2x5x32xf32>
    "tpu.trace_stop"() : () -> ()
    %40 = arith.addf %13, %39 : vector<2x5x32xf32>
    %41 = vector.extract_strided_slice %11 {offsets = [0, 0, 8], sizes = [2, 5, 8], strides = [1, 1, 1]} : vector<2x5x96xf32> to vector<2x5x8xf32>
    %42 = vector.extract_strided_slice %11 {offsets = [0, 0, 40], sizes = [2, 5, 8], strides = [1, 1, 1]} : vector<2x5x96xf32> to vector<2x5x8xf32>
    %43 = vector.extract_strided_slice %11 {offsets = [0, 0, 72], sizes = [2, 5, 8], strides = [1, 1, 1]} : vector<2x5x96xf32> to vector<2x5x8xf32>
    %44 = arith.truncf %41 : vector<2x5x8xf32> to vector<2x5x8xbf16>
    %45 = arith.truncf %42 : vector<2x5x8xf32> to vector<2x5x8xbf16>
    "tpu.trace_start"() <{level = 10 : i32, message = "bqd,bkd->bqk"}> : () -> ()
    %cst_18 = arith.constant dense<0.000000e+00> : vector<2x5x5xf32>
    %46 = tpu.matmul %44, %45, %cst_18 {dimension_numbers = #tpu.dot_dimension_numbers<[2], [2], [1], [1], [0, 0, 0, 1, 1, 1], [0], [0]>} : vector<2x5x8xbf16>, vector<2x5x8xbf16>, vector<2x5x5xf32> -> vector<2x5x5xf32>
    "tpu.trace_stop"() : () -> ()
    %cst_19 = arith.constant 0.353553385 : f32
    %47 = vector.broadcast %cst_19 : f32 to vector<2x5x5xf32>
    %48 = arith.mulf %46, %47 : vector<2x5x5xf32>
    %49 = arith.addf %48, %4 : vector<2x5x5xf32>
    %cst_20 = arith.constant dense<0xFF800000> : vector<2x5xf32>
    %50 = vector.multi_reduction <maximumf>, %49, %cst_20 [2] : vector<2x5x5xf32> to vector<2x5xf32>
    %51 = vector.shape_cast %50 : vector<2x5xf32> to vector<2x5x1xf32>
    %52 = vector.broadcast %51 : vector<2x5x1xf32> to vector<2x5x5xf32>
    %53 = arith.subf %49, %52 : vector<2x5x5xf32>
    %54 = math.exp %53 : vector<2x5x5xf32>
    %cst_21 = arith.constant dense<0.000000e+00> : vector<2x5xf32>
    %55 = vector.multi_reduction <add>, %54, %cst_21 [2] : vector<2x5x5xf32> to vector<2x5xf32>
    %56 = vector.shape_cast %55 : vector<2x5xf32> to vector<2x5x1xf32>
    %57 = tpu.reciprocal %56 {approx = true} : vector<2x5x1xf32> -> vector<2x5x1xf32>
    %58 = vector.broadcast %57 : vector<2x5x1xf32> to vector<2x5x5xf32>
    %59 = arith.mulf %54, %58 : vector<2x5x5xf32>
    %60 = arith.truncf %59 : vector<2x5x5xf32> to vector<2x5x5xbf16>
    %61 = arith.truncf %43 : vector<2x5x8xf32> to vector<2x5x8xbf16>
    "tpu.trace_start"() <{level = 10 : i32, message = "bqk,bkd->bqd"}> : () -> ()
    %cst_22 = arith.constant dense<0.000000e+00> : vector<2x5x8xf32>
    %62 = tpu.matmul %60, %61, %cst_22 {dimension_numbers = #tpu.dot_dimension_numbers<[2], [1], [1], [2], [0, 0, 0, 1, 1, 2], [0], [0]>} : vector<2x5x5xbf16>, vector<2x5x8xbf16>, vector<2x5x8xf32> -> vector<2x5x8xf32>
    "tpu.trace_stop"() : () -> ()
    %63 = arith.truncf %62 : vector<2x5x8xf32> to vector<2x5x8xbf16>
    %64 = vector.extract_strided_slice %12 {offsets = [1, 0, 0], sizes = [1, 8, 32], strides = [1, 1, 1]} : vector<4x8x32xbf16> to vector<1x8x32xbf16>
    %65 = vector.shape_cast %64 : vector<1x8x32xbf16> to vector<8x32xbf16>
    "tpu.trace_start"() <{level = 10 : i32, message = "bsd,do->bso"}> : () -> ()
    %cst_23 = arith.constant dense<0.000000e+00> : vector<2x5x32xf32>
    %66 = tpu.matmul %63, %65, %cst_23 {dimension_numbers = #tpu.dot_dimension_numbers<[2], [0], [0, 1], [1], [0, 0, 0, 1, 1, 1], [], []>} : vector<2x5x8xbf16>, vector<8x32xbf16>, vector<2x5x32xf32> -> vector<2x5x32xf32>
    "tpu.trace_stop"() : () -> ()
    %67 = arith.addf %40, %66 : vector<2x5x32xf32>
    %68 = vector.extract_strided_slice %11 {offsets = [0, 0, 16], sizes = [2, 5, 8], strides = [1, 1, 1]} : vector<2x5x96xf32> to vector<2x5x8xf32>
    %69 = vector.extract_strided_slice %11 {offsets = [0, 0, 48], sizes = [2, 5, 8], strides = [1, 1, 1]} : vector<2x5x96xf32> to vector<2x5x8xf32>
    %70 = vector.extract_strided_slice %11 {offsets = [0, 0, 80], sizes = [2, 5, 8], strides = [1, 1, 1]} : vector<2x5x96xf32> to vector<2x5x8xf32>
    %71 = arith.truncf %68 : vector<2x5x8xf32> to vector<2x5x8xbf16>
    %72 = arith.truncf %69 : vector<2x5x8xf32> to vector<2x5x8xbf16>
    "tpu.trace_start"() <{level = 10 : i32, message = "bqd,bkd->bqk"}> : () -> ()
    %cst_24 = arith.constant dense<0.000000e+00> : vector<2x5x5xf32>
    %73 = tpu.matmul %71, %72, %cst_24 {dimension_numbers = #tpu.dot_dimension_numbers<[2], [2], [1], [1], [0, 0, 0, 1, 1, 1], [0], [0]>} : vector<2x5x8xbf16>, vector<2x5x8xbf16>, vector<2x5x5xf32> -> vector<2x5x5xf32>
    "tpu.trace_stop"() : () -> ()
    %cst_25 = arith.constant 0.353553385 : f32
    %74 = vector.broadcast %cst_25 : f32 to vector<2x5x5xf32>
    %75 = arith.mulf %73, %74 : vector<2x5x5xf32>
    %76 = arith.addf %75, %4 : vector<2x5x5xf32>
    %cst_26 = arith.constant dense<0xFF800000> : vector<2x5xf32>
    %77 = vector.multi_reduction <maximumf>, %76, %cst_26 [2] : vector<2x5x5xf32> to vector<2x5xf32>
    %78 = vector.shape_cast %77 : vector<2x5xf32> to vector<2x5x1xf32>
    %79 = vector.broadcast %78 : vector<2x5x1xf32> to vector<2x5x5xf32>
    %80 = arith.subf %76, %79 : vector<2x5x5xf32>
    %81 = math.exp %80 : vector<2x5x5xf32>
    %cst_27 = arith.constant dense<0.000000e+00> : vector<2x5xf32>
    %82 = vector.multi_reduction <add>, %81, %cst_27 [2] : vector<2x5x5xf32> to vector<2x5xf32>
    %83 = vector.shape_cast %82 : vector<2x5xf32> to vector<2x5x1xf32>
    %84 = tpu.reciprocal %83 {approx = true} : vector<2x5x1xf32> -> vector<2x5x1xf32>
    %85 = vector.broadcast %84 : vector<2x5x1xf32> to vector<2x5x5xf32>
    %86 = arith.mulf %81, %85 : vector<2x5x5xf32>
    %87 = arith.truncf %86 : vector<2x5x5xf32> to vector<2x5x5xbf16>
    %88 = arith.truncf %70 : vector<2x5x8xf32> to vector<2x5x8xbf16>
    "tpu.trace_start"() <{level = 10 : i32, message = "bqk,bkd->bqd"}> : () -> ()
    %cst_28 = arith.constant dense<0.000000e+00> : vector<2x5x8xf32>
    %89 = tpu.matmul %87, %88, %cst_28 {dimension_numbers = #tpu.dot_dimension_numbers<[2], [1], [1], [2], [0, 0, 0, 1, 1, 2], [0], [0]>} : vector<2x5x5xbf16>, vector<2x5x8xbf16>, vector<2x5x8xf32> -> vector<2x5x8xf32>
    "tpu.trace_stop"() : () -> ()
    %90 = arith.truncf %89 : vector<2x5x8xf32> to vector<2x5x8xbf16>
    %91 = vector.extract_strided_slice %12 {offsets = [2, 0, 0], sizes = [1, 8, 32], strides = [1, 1, 1]} : vector<4x8x32xbf16> to vector<1x8x32xbf16>
    %92 = vector.shape_cast %91 : vector<1x8x32xbf16> to vector<8x32xbf16>
    "tpu.trace_start"() <{level = 10 : i32, message = "bsd,do->bso"}> : () -> ()
    %cst_29 = arith.constant dense<0.000000e+00> : vector<2x5x32xf32>
    %93 = tpu.matmul %90, %92, %cst_29 {dimension_numbers = #tpu.dot_dimension_numbers<[2], [0], [0, 1], [1], [0, 0, 0, 1, 1, 1], [], []>} : vector<2x5x8xbf16>, vector<8x32xbf16>, vector<2x5x32xf32> -> vector<2x5x32xf32>
    "tpu.trace_stop"() : () -> ()
    %94 = arith.addf %67, %93 : vector<2x5x32xf32>
    %95 = vector.extract_strided_slice %11 {offsets = [0, 0, 24], sizes = [2, 5, 8], strides = [1, 1, 1]} : vector<2x5x96xf32> to vector<2x5x8xf32>
    %96 = vector.extract_strided_slice %11 {offsets = [0, 0, 56], sizes = [2, 5, 8], strides = [1, 1, 1]} : vector<2x5x96xf32> to vector<2x5x8xf32>
    %97 = vector.extract_strided_slice %11 {offsets = [0, 0, 88], sizes = [2, 5, 8], strides = [1, 1, 1]} : vector<2x5x96xf32> to vector<2x5x8xf32>
    %98 = arith.truncf %95 : vector<2x5x8xf32> to vector<2x5x8xbf16>
    %99 = arith.truncf %96 : vector<2x5x8xf32> to vector<2x5x8xbf16>
    "tpu.trace_start"() <{level = 10 : i32, message = "bqd,bkd->bqk"}> : () -> ()
    %cst_30 = arith.constant dense<0.000000e+00> : vector<2x5x5xf32>
    %100 = tpu.matmul %98, %99, %cst_30 {dimension_numbers = #tpu.dot_dimension_numbers<[2], [2], [1], [1], [0, 0, 0, 1, 1, 1], [0], [0]>} : vector<2x5x8xbf16>, vector<2x5x8xbf16>, vector<2x5x5xf32> -> vector<2x5x5xf32>
    "tpu.trace_stop"() : () -> ()
    %cst_31 = arith.constant 0.353553385 : f32
    %101 = vector.broadcast %cst_31 : f32 to vector<2x5x5xf32>
    %102 = arith.mulf %100, %101 : vector<2x5x5xf32>
    %103 = arith.addf %102, %4 : vector<2x5x5xf32>
    %cst_32 = arith.constant dense<0xFF800000> : vector<2x5xf32>
    %104 = vector.multi_reduction <maximumf>, %103, %cst_32 [2] : vector<2x5x5xf32> to vector<2x5xf32>
    %105 = vector.shape_cast %104 : vector<2x5xf32> to vector<2x5x1xf32>
    %106 = vector.broadcast %105 : vector<2x5x1xf32> to vector<2x5x5xf32>
    %107 = arith.subf %103, %106 : vector<2x5x5xf32>
    %108 = math.exp %107 : vector<2x5x5xf32>
    %cst_33 = arith.constant dense<0.000000e+00> : vector<2x5xf32>
    %109 = vector.multi_reduction <add>, %108, %cst_33 [2] : vector<2x5x5xf32> to vector<2x5xf32>
    %110 = vector.shape_cast %109 : vector<2x5xf32> to vector<2x5x1xf32>
    %111 = tpu.reciprocal %110 {approx = true} : vector<2x5x1xf32> -> vector<2x5x1xf32>
    %112 = vector.broadcast %111 : vector<2x5x1xf32> to vector<2x5x5xf32>
    %113 = arith.mulf %108, %112 : vector<2x5x5xf32>
    %114 = arith.truncf %113 : vector<2x5x5xf32> to vector<2x5x5xbf16>
    %115 = arith.truncf %97 : vector<2x5x8xf32> to vector<2x5x8xbf16>
    "tpu.trace_start"() <{level = 10 : i32, message = "bqk,bkd->bqd"}> : () -> ()
    %cst_34 = arith.constant dense<0.000000e+00> : vector<2x5x8xf32>
    %116 = tpu.matmul %114, %115, %cst_34 {dimension_numbers = #tpu.dot_dimension_numbers<[2], [1], [1], [2], [0, 0, 0, 1, 1, 2], [0], [0]>} : vector<2x5x5xbf16>, vector<2x5x8xbf16>, vector<2x5x8xf32> -> vector<2x5x8xf32>
    "tpu.trace_stop"() : () -> ()
    %117 = arith.truncf %116 : vector<2x5x8xf32> to vector<2x5x8xbf16>
    %118 = vector.extract_strided_slice %12 {offsets = [3, 0, 0], sizes = [1, 8, 32], strides = [1, 1, 1]} : vector<4x8x32xbf16> to vector<1x8x32xbf16>
    %119 = vector.shape_cast %118 : vector<1x8x32xbf16> to vector<8x32xbf16>
    "tpu.trace_start"() <{level = 10 : i32, message = "bsd,do->bso"}> : () -> ()
    %cst_35 = arith.constant dense<0.000000e+00> : vector<2x5x32xf32>
    %120 = tpu.matmul %117, %119, %cst_35 {dimension_numbers = #tpu.dot_dimension_numbers<[2], [0], [0, 1], [1], [0, 0, 0, 1, 1, 1], [], []>} : vector<2x5x8xbf16>, vector<8x32xbf16>, vector<2x5x32xf32> -> vector<2x5x32xf32>
    "tpu.trace_stop"() : () -> ()
    %121 = arith.addf %94, %120 : vector<2x5x32xf32>
    %c0_36 = arith.constant 0 : index
    %c0_37 = arith.constant 0 : index
    %122 = vector.load %arg5[%c0_36, %c0_37] : memref<1x32xf32, #tpu.memory_space<vmem>>, vector<1x32xf32>
    %123 = vector.shape_cast %122 : vector<1x32xf32> to vector<1x1x32xf32>
    %124 = vector.broadcast %123 : vector<1x1x32xf32> to vector<2x5x32xf32>
    %125 = arith.addf %121, %124 : vector<2x5x32xf32>
    %126 = arith.addf %125, %0 : vector<2x5x32xf32>
    %cst_38 = arith.constant dense<0.000000e+00> : vector<2x5xf32>
    %127 = vector.multi_reduction <add>, %126, %cst_38 [2] : vector<2x5x32xf32> to vector<2x5xf32>
    %128 = vector.shape_cast %127 : vector<2x5xf32> to vector<2x5x1xf32>
    %cst_39 = arith.constant 3.200000e+01 : f32
    %129 = vector.broadcast %cst_39 : f32 to vector<2x5x1xf32>
    %130 = arith.divf %128, %129 : vector<2x5x1xf32>
    %131 = vector.broadcast %130 : vector<2x5x1xf32> to vector<2x5x32xf32>
    %132 = arith.subf %126, %131 : vector<2x5x32xf32>
    %133 = arith.mulf %132, %132 : vector<2x5x32xf32>
    %cst_40 = arith.constant dense<0.000000e+00> : vector<2x5xf32>
    %134 = vector.multi_reduction <add>, %133, %cst_40 [2] : vector<2x5x32xf32> to vector<2x5xf32>
    %135 = vector.shape_cast %134 : vector<2x5xf32> to vector<2x5x1xf32>
    %cst_41 = arith.constant 3.200000e+01 : f32
    %136 = vector.broadcast %cst_41 : f32 to vector<2x5x1xf32>
    %137 = arith.divf %135, %136 : vector<2x5x1xf32>
    %138 = vector.broadcast %130 : vector<2x5x1xf32> to vector<2x5x32xf32>
    %139 = arith.subf %126, %138 : vector<2x5x32xf32>
    %cst_42 = arith.constant 9.99999996E-13 : f32
    %140 = vector.broadcast %cst_42 : f32 to vector<2x5x1xf32>
    %141 = arith.addf %137, %140 : vector<2x5x1xf32>
    %142 = math.rsqrt %141 : vector<2x5x1xf32>
    %143 = vector.broadcast %142 : vector<2x5x1xf32> to vector<2x5x32xf32>
    %144 = arith.mulf %139, %143 : vector<2x5x32xf32>
    %c0_43 = arith.constant 0 : index
    %c0_44 = arith.constant 0 : index
    %145 = vector.load %arg6[%c0_43, %c0_44] : memref<1x32xf32, #tpu.memory_space<vmem>>, vector<1x32xf32>
    %146 = vector.shape_cast %145 : vector<1x32xf32> to vector<1x1x32xf32>
    %147 = vector.broadcast %146 : vector<1x1x32xf32> to vector<2x5x32xf32>
    %148 = arith.mulf %147, %144 : vector<2x5x32xf32>
    %c0_45 = arith.constant 0 : index
    %c0_46 = arith.constant 0 : index
    %149 = vector.load %arg7[%c0_45, %c0_46] : memref<1x32xf32, #tpu.memory_space<vmem>>, vector<1x32xf32>
    %150 = vector.shape_cast %149 : vector<1x32xf32> to vector<1x1x32xf32>
    %151 = vector.broadcast %150 : vector<1x1x32xf32> to vector<2x5x32xf32>
    %152 = arith.addf %148, %151 : vector<2x5x32xf32>
    %153 = arith.truncf %152 : vector<2x5x32xf32> to vector<2x5x32xbf16>
    %c0_47 = arith.constant 0 : index
    %c0_48 = arith.constant 0 : index
    %154 = vector.load %arg8[%c0_47, %c0_48] : memref<32x64xbf16, #tpu.memory_space<vmem>>, vector<32x64xbf16>
    "tpu.trace_start"() <{level = 10 : i32, message = "bsi,io->bso"}> : () -> ()
    %cst_49 = arith.constant dense<0.000000e+00> : vector<2x5x64xf32>
    %155 = tpu.matmul %153, %154, %cst_49 {dimension_numbers = #tpu.dot_dimension_numbers<[2], [0], [0, 1], [1], [0, 0, 0, 1, 1, 1], [], []>} : vector<2x5x32xbf16>, vector<32x64xbf16>, vector<2x5x64xf32> -> vector<2x5x64xf32>
    "tpu.trace_stop"() : () -> ()
    %c0_50 = arith.constant 0 : index
    %c0_51 = arith.constant 0 : index
    %156 = vector.load %arg9[%c0_50, %c0_51] : memref<1x64xf32, #tpu.memory_space<vmem>>, vector<1x64xf32>
    %157 = vector.shape_cast %156 : vector<1x64xf32> to vector<1x1x64xf32>
    %158 = vector.broadcast %157 : vector<1x1x64xf32> to vector<2x5x64xf32>
    %159 = arith.addf %155, %158 : vector<2x5x64xf32>
    %cst_52 = arith.constant 5.000000e-01 : f32
    %160 = vector.broadcast %cst_52 : f32 to vector<2x5x64xf32>
    %161 = arith.mulf %159, %160 : vector<2x5x64xf32>
    %cst_53 = arith.constant 0.707106769 : f32
    %162 = vector.broadcast %cst_53 : f32 to vector<2x5x64xf32>
    %163 = arith.mulf %159, %162 : vector<2x5x64xf32>
    %164 = math.erf %163 : vector<2x5x64xf32>
    %cst_54 = arith.constant 1.000000e+00 : f32
    %165 = vector.broadcast %cst_54 : f32 to vector<2x5x64xf32>
    %166 = arith.addf %165, %164 : vector<2x5x64xf32>
    %167 = arith.mulf %161, %166 : vector<2x5x64xf32>
    %168 = arith.truncf %167 : vector<2x5x64xf32> to vector<2x5x64xbf16>
    %c0_55 = arith.constant 0 : index
    %c0_56 = arith.constant 0 : index
    %169 = vector.load %arg10[%c0_55, %c0_56] : memref<64x32xbf16, #tpu.memory_space<vmem>>, vector<64x32xbf16>
    "tpu.trace_start"() <{level = 10 : i32, message = "bsi,io->bso"}> : () -> ()
    %cst_57 = arith.constant dense<0.000000e+00> : vector<2x5x32xf32>
    %170 = tpu.matmul %168, %169, %cst_57 {dimension_numbers = #tpu.dot_dimension_numbers<[2], [0], [0, 1], [1], [0, 0, 0, 1, 1, 1], [], []>} : vector<2x5x64xbf16>, vector<64x32xbf16>, vector<2x5x32xf32> -> vector<2x5x32xf32>
    "tpu.trace_stop"() : () -> ()
    %c0_58 = arith.constant 0 : index
    %c0_59 = arith.constant 0 : index
    %171 = vector.load %arg11[%c0_58, %c0_59] : memref<1x32xf32, #tpu.memory_space<vmem>>, vector<1x32xf32>
    %172 = vector.shape_cast %171 : vector<1x32xf32> to vector<1x1x32xf32>
    %173 = vector.broadcast %172 : vector<1x1x32xf32> to vector<2x5x32xf32>
    %174 = arith.addf %170, %173 : vector<2x5x32xf32>
    %175 = arith.addf %174, %152 : vector<2x5x32xf32>
    %cst_60 = arith.constant dense<0.000000e+00> : vector<2x5xf32>
    %176 = vector.multi_reduction <add>, %175, %cst_60 [2] : vector<2x5x32xf32> to vector<2x5xf32>
    %177 = vector.shape_cast %176 : vector<2x5xf32> to vector<2x5x1xf32>
    %cst_61 = arith.constant 3.200000e+01 : f32
    %178 = vector.broadcast %cst_61 : f32 to vector<2x5x1xf32>
    %179 = arith.divf %177, %178 : vector<2x5x1xf32>
    %180 = vector.broadcast %179 : vector<2x5x1xf32> to vector<2x5x32xf32>
    %181 = arith.subf %175, %180 : vector<2x5x32xf32>
    %182 = arith.mulf %181, %181 : vector<2x5x32xf32>
    %cst_62 = arith.constant dense<0.000000e+00> : vector<2x5xf32>
    %183 = vector.multi_reduction <add>, %182, %cst_62 [2] : vector<2x5x32xf32> to vector<2x5xf32>
    %184 = vector.shape_cast %183 : vector<2x5xf32> to vector<2x5x1xf32>
    %cst_63 = arith.constant 3.200000e+01 : f32
    %185 = vector.broadcast %cst_63 : f32 to vector<2x5x1xf32>
    %186 = arith.divf %184, %185 : vector<2x5x1xf32>
    %187 = vector.broadcast %179 : vector<2x5x1xf32> to vector<2x5x32xf32>
    %188 = arith.subf %175, %187 : vector<2x5x32xf32>
    %cst_64 = arith.constant 9.99999996E-13 : f32
    %189 = vector.broadcast %cst_64 : f32 to vector<2x5x1xf32>
    %190 = arith.addf %186, %189 : vector<2x5x1xf32>
    %191 = math.rsqrt %190 : vector<2x5x1xf32>
    %192 = vector.broadcast %191 : vector<2x5x1xf32> to vector<2x5x32xf32>
    %193 = arith.mulf %188, %192 : vector<2x5x32xf32>
    %c0_65 = arith.constant 0 : index
    %c0_66 = arith.constant 0 : index
    %194 = vector.load %arg12[%c0_65, %c0_66] : memref<1x32xf32, #tpu.memory_space<vmem>>, vector<1x32xf32>
    %195 = vector.shape_cast %194 : vector<1x32xf32> to vector<1x1x32xf32>
    %196 = vector.broadcast %195 : vector<1x1x32xf32> to vector<2x5x32xf32>
    %197 = arith.mulf %196, %193 : vector<2x5x32xf32>
    %c0_67 = arith.constant 0 : index
    %c0_68 = arith.constant 0 : index
    %198 = vector.load %arg13[%c0_67, %c0_68] : memref<1x32xf32, #tpu.memory_space<vmem>>, vector<1x32xf32>
    %199 = vector.shape_cast %198 : vector<1x32xf32> to vector<1x1x32xf32>
    %200 = vector.broadcast %199 : vector<1x1x32xf32> to vector<2x5x32xf32>
    %201 = arith.addf %197, %200 : vector<2x5x32xf32>
    %c0_69 = arith.constant 0 : index
    %c0_70 = arith.constant 0 : index
    %c0_71 = arith.constant 0 : index
    %202 = vector.load %arg14[%c0_69, %c0_70, %c0_71] : memref<2x5x32xf32, #tpu.memory_space<vmem>>, vector<2x5x32xf32>
    tpu.vector_store %arg14[%c0_69, %c0_70, %c0_71], %201 {strides = array<i32>} : memref<2x5x32xf32, #tpu.memory_space<vmem>>, vector<2x5x32xf32>,
    return
  }
}

</mosaic_0001>

<bundles_post_ra>
// kernel: bert_layer_forward.1
= control target key start
LH: loop header
LB: loop body
LE: loop exit
PB: predicated region body
PF: predicated region fallthrough
CT: control target
= control target key end

     0   :  { %vm79_vm0 = vcmask 1042434   ;;  %vm70_vm1 = vcmask 1040384   ;;  %vm75_vm2 = vcmask 1041409   ;;  %vm160_vm3 = vcmask 261120   ;;  %s2780_s22 = smov 120   ;;  %s2781_s23 = smov 88   ;;  %s3834_s2 = inlined_call_operand.vmem [shape: bf16[32,96], index: 2, kind: input, shape index: {}]   ;;  %s3835_s0 = inlined_call_operand.vmem [shape: f32[2,5,32], index: 0, kind: input, shape index: {}]   ;;  %s3836_s3 = inlined_call_operand.vmem [shape: f32[1,96], index: 3, kind: input, shape index: {}]   ;;  %s3837_s1 = inlined_call_operand.vmem [shape: f32[2,5], index: 1, kind: input, shape index: {}]   ;;  %s3838_s4 = inlined_call_operand.vmem [shape: bf16[4,8,32], index: 4, kind: input, shape index: {}]   ;;  %s3839_s5 = inlined_call_operand.vmem [shape: f32[1,32], index: 5, kind: input, shape index: {}]   ;;  %s3840_s6 = inlined_call_operand.vmem [shape: f32[1,32], index: 6, kind: input, shape index: {}]   ;;  %s3841_s7 = inlined_call_operand.vmem [shape: f32[1,32], index: 7, kind: input, shape index: {}]   ;;  %s3842_s9 = inlined_call_operand.vmem [shape: f32[1,64], index: 9, kind: input, shape index: {}]   ;;  %s3843_s8 = inlined_call_operand.vmem [shape: bf16[32,64], index: 8, kind: input, shape index: {}]   ;;  %s3844_s11 = inlined_call_operand.vmem [shape: f32[1,32], index: 11, kind: input, shape index: {}]   ;;  %s3845_s10 = inlined_call_operand.vmem [shape: bf16[64,32], index: 10, kind: input, shape index: {}]   ;;  %s3846_s12 = inlined_call_operand.vmem [shape: f32[1,32], index: 12, kind: input, shape index: {}]   ;;  %s3847_s13 = inlined_call_operand.vmem [shape: f32[1,32], index: 13, kind: input, shape index: {}]   ;;  %s3848_s14 = inlined_call_operand.vmem [shape: f32[2,5,32], index: 14, kind: output, shape index: {}]  }
   0x1   :  { %v2687_v0 = vld [vmem:[%s3834_s2 + $0x8] sm:$0xff]  ;;  %v48_v1 = vld [vmem:[%s3835_s0] sm:$0x1f]  ;;  %vm236_vm4 = vcmask 64512   ;;  %vm284_vm5 = vcmask 36864   ;;  %s2783_s26 = smov 56  }
   0x2   :  { %v49_v2 = vld [vmem:[%s3835_s0 + $0x8] sm:$0x1f]  ;;  %v57_v3 = vpack.c.bf16 %v48_v1, %v48_v1  ;;  %169 = vmatpush.bf16.msra.mxu0 %v2687_v0  ;;  %v2686_v4 = vld [vmem:[%s3834_s2] sm:$0xff]  ;;  %vm338_vm6 = vcmask 1041408   ;;  %vm339_vm7 = vcmask 1042432   ;;  %vm334_vm8 = vcmask 39936  }
   0x3   :  { %v58_v5 = vpack.c.bf16 %v49_v2, %v49_v2  ;;  %v2707_v23 = vld [vmem:[%s3836_s3] ss:$0 sm:$0xff]  ;;  %s2779_s3 = smov 96   ;;  %vm636_vm9 = vcmask 1043456   ;;  %s2785_s15 = smov 112   ;;  %vm1417_vm10 = vcmask 258048  }
   0x4   :  { %v68_v6 = vrot.slane %v57_v3, 3  ;;  %v103_v24 = vrot.slane %v2707_v23, 1  ;;  %v104_v25 = vrot.slane %v2707_v23, 2  ;;  %v105_v27 = vrot.slane %v2707_v23, 3  ;;  %s2786_s16 = smov 80   ;;  %s2787_s17 = smov 48  }
   0x5   :  { %v69_v7 = vrot.slane %v58_v5, 3  ;;  %v106_v28 = vrot.slane %v2707_v23, 4  ;;  %s2788_s20 = smov 104   ;;  %s2789_s2 = smov 72  }
   0x6   :  { %v73_v8 = vsel %vm70_vm1, %v57_v3, %v68_v6  ;;  %v76_v9 = vsel %vm75_vm2, %v57_v3, %v68_v6  ;;  %v80_v10 = vsel %vm79_vm0, %v57_v3, %v68_v6  ;;  %170 = vmatpush.bf16.msra.mxu0 %v2686_v4  ;;  %s2790_s21 = smov 40  }
   0x7   :  { %v78_v11 = vrot.slane %v76_v9, 1  ;;  %v82_v12 = vrot.slane %v80_v10, 2  ;;  %v85_v13 = vsel %vm70_vm1, %v58_v5, %v69_v7  ;;  %v87_v14 = vsel %vm75_vm2, %v58_v5, %v69_v7  ;;  %113 = vst [vmem:[#allocation1] ss:$9 sm:$0xff] %v73_v8 }
   0x8   :  { %v89_v15 = vrot.slane %v87_v14, 1  ;;  %v90_v16 = vsel %vm79_vm0, %v58_v5, %v69_v7  ;;  %v99_v17 = vunpack.i.h.s16 %v85_v13 }
   0x9   :  { %v92_v18 = vrot.slane %v90_v16, 2  ;;  %v2600_v19 = vpack.i.b16 %v85_v13, %v82_v12  ;;  %116 = vst [vmem:[#allocation1 + $0x1] ss:$9 sm:$0xff] %v78_v11 }
   0xa   :  { %v101_v20 = vunpack.i.h.s16 %v89_v15  ;;  %v2601_v21 = vpack.i.b16 %v89_v15, %v99_v17 }
   0xb   :  { %119 = vst [vmem:[#allocation1 + $0x2] ss:$9 sm:$0xff] %v2600_v19 }
   0xc   :  { %v2602_v22 = vpack.i.b16 %v92_v18, %v101_v20  ;;  %122 = vst [vmem:[#allocation1 + $0x3] ss:$9 sm:$0xff] %v2601_v21  ;;  %v50_v20 = vld [vmem:[%s3837_s1] sm:$0x3]  ;;  %s2782_s1 = smov 64  }
   0xd   :  { %v3002_v21 = vperm.slane %v50_v20, 0 }
   0xe   :  { %125 = vst [vmem:[#allocation1 + $0x4] ss:$9 sm:$0xff] %v2602_v22 }
  0x15   :  { %v126_v26 = vld [vmem:[#allocation1] sm:$0xff] }
  0x16   :  { %2611 = vmatmul.msk.bf16.vlgmr.msra.gmra.mxu0 %vm160_vm3, %v126_v26  ;;  %139 = vst [vmem:[#allocation1] ss:$9 sm:$0xff] %v2707_v23 }
  0x17   :  { %141 = vst [vmem:[#allocation1 + $0x1] ss:$9 sm:$0xff] %v103_v24 }
  0x18   :  { %143 = vst [vmem:[#allocation1 + $0x2] ss:$9 sm:$0xff] %v104_v25 }
  0x19   :  { %145 = vst [vmem:[#allocation1 + $0x3] ss:$9 sm:$0xff] %v105_v27 }
  0x1a   :  { %147 = vst [vmem:[#allocation1 + $0x4] ss:$9 sm:$0xff] %v106_v28 }
  0x1b   :  { %149 = vst [vmem:[#allocation1 + $0x5] ss:$9 sm:$0xff] %v2707_v23 }
  0x1c   :  { %151 = vst [vmem:[#allocation1 + $0x6] ss:$9 sm:$0xff] %v103_v24 }
  0x1d   :  { %153 = vst [vmem:[#allocation1 + $0x7] ss:$9 sm:$0xff] %v104_v25 }
  0x24   :  { %v154_v29 = vld [vmem:[#allocation1] sm:$0xff] }
  0x25   :  { %155 = vst [vmem:[#allocation1] ss:$9 sm:$0xff] %v105_v27  ;;  %v52_v27 = vrot.slane %v50_v20, 1 }
  0x26   :  { %156 = vst [vmem:[#allocation1 + $0x1] ss:$9 sm:$0xff] %v106_v28 }
  0x27   :  { %v3006_v28 = vperm.slane %v52_v27, 0 }
  0x2d   :  { %v157_v31 = vld [vmem:[#allocation1] sm:$0xff] }
  0x93   :  { %v172_v30 = vpop.f32.mrf.mxu0 }
  0x94   :  { %v2889_v32 = vadd.f32 %v172_v30, %v154_v29 }
  0x96   :  { %v2892_v33 = vrot.slane %v2889_v32, 1  ;;  %v2895_v34 = vrot.slane %v2889_v32, 2  ;;  %191 = vst [vmem:[#allocation1] ss:$9 sm:$0xff] %v2889_v32  ;;  %v2899_v35 = vrot.slane %v2889_v32, 4  ;;  %v2902_v36 = vrot.slane %v2889_v32, 3 }
  0x97   :  { %v2911_v39 = vrot.slane %v2889_v32, 5  ;;  %v2914_v40 = vrot.slane %v2889_v32, 6  ;;  %v2919_v42 = vrot.slane %v2889_v32, 7 }
  0x98   :  { %193 = vst [vmem:[#allocation1 + $0x1] ss:$9 sm:$0xff] %v2892_v33 }
  0x99   :  { %195 = vst [vmem:[#allocation1 + $0x2] ss:$9 sm:$0xff] %v2895_v34 }
  0x9a   :  { %197 = vst [vmem:[#allocation1 + $0x3] ss:$9 sm:$0xff] %v2902_v36 }
  0x9b   :  { %199 = vst [vmem:[#allocation1 + $0x4] ss:$9 sm:$0xff] %v2899_v35  ;;  %v174_v37 = vpop.f32.mrf.mxu0 }
  0x9c   :  { %v2908_v38 = vadd.f32 %v174_v37, %v157_v31 }
  0x9e   :  { %v2922_v43 = vrot.slane %v2908_v38, 1 }
  0xa2   :  { %v2916_v41 = vld [vmem:[#allocation1] sm:$0xff] }
  0xa3   :  { %201 = vst [vmem:[#allocation1] ss:$9 sm:$0xff] %v2911_v39  ;;  %v209_v10 = vpack.c.bf16 %v2916_v41, %v2916_v41 }
  0xa4   :  { %202 = vst [vmem:[#allocation1 + $0x1] ss:$9 sm:$0xff] %v2914_v40 }
  0xa5   :  { %203 = vst [vmem:[#allocation1 + $0x2] ss:$9 sm:$0xff] %v2919_v42 }
  0xa6   :  { %204 = vst [vmem:[#allocation1 + $0x3] ss:$9 sm:$0xff] %v2908_v38 }
  0xa7   :  { %205 = vst [vmem:[#allocation1 + $0x4] ss:$9 sm:$0xff] %v2922_v43 }
  0xae   :  { %v2929_v44 = vld [vmem:[#allocation1] sm:$0xff] }
  0xaf   :  { %211 = vst [vmem:[#allocation1] ss:$9 sm:$0xff] %v2889_v32  ;;  %v210_v13 = vpack.c.bf16 %v2929_v44, %v2929_v44 }
  0xb0   :  { %213 = vst [vmem:[#allocation1 + $0x1] ss:$9 sm:$0xff] %v2892_v33 }
  0xb1   :  { %215 = vst [vmem:[#allocation1 + $0x2] ss:$9 sm:$0xff] %v2895_v34 }
  0xb2   :  { %217 = vst [vmem:[#allocation1 + $0x3] ss:$9 sm:$0xff] %v2902_v36 }
  0xb3   :  { %219 = vst [vmem:[#allocation1 + $0x4] ss:$9 sm:$0xff] %v2899_v35 }
  0xba   :  { %v220_v45 = vld [vmem:[#allocation1] sm:$0xff] }
  0xbb   :  { %221 = vst [vmem:[#allocation1] ss:$9 sm:$0xff] %v2911_v39  ;;  %v229_v46 = vpack.c.bf16 %v220_v45, %v220_v45 }
  0xbc   :  { %222 = vst [vmem:[#allocation1 + $0x1] ss:$9 sm:$0xff] %v2914_v40 }
  0xbd   :  { %223 = vst [vmem:[#allocation1 + $0x2] ss:$9 sm:$0xff] %v2919_v42  ;;  %v232_v47 = vunpack.c.l.b16 %v229_v46 }
  0xbe   :  { %224 = vst [vmem:[#allocation1 + $0x3] ss:$9 sm:$0xff] %v2908_v38 }
  0xbf   :  { %225 = vst [vmem:[#allocation1 + $0x4] ss:$9 sm:$0xff] %v2922_v43  ;;  %v233_v48 = vpack.c.b16 %v232_v47, %v232_v47 }
  0xc1   :  { %234 = vrot.lane.b32.xlu0 %v233_v48, %s2779_s3 }
  0xc6   :  { %v226_v49 = vld [vmem:[#allocation1] sm:$0xff] }
  0xc7   :  { %309 = vst [vmem:[#allocation1] ss:$9 sm:$0xff] %v2889_v32  ;;  %v230_v50 = vpack.c.bf16 %v226_v49, %v226_v49 }
  0xc8   :  { %311 = vst [vmem:[#allocation1 + $0x1] ss:$9 sm:$0xff] %v2892_v33 }
  0xc9   :  { %313 = vst [vmem:[#allocation1 + $0x2] ss:$9 sm:$0xff] %v2895_v34  ;;  %v257_v51 = vunpack.c.l.b16 %v230_v50 }
  0xca   :  { %315 = vst [vmem:[#allocation1 + $0x3] ss:$9 sm:$0xff] %v2902_v36 }
  0xcb   :  { %317 = vst [vmem:[#allocation1 + $0x4] ss:$9 sm:$0xff] %v2899_v35  ;;  %v258_v52 = vpack.c.b16 %v257_v51, %v257_v51 }
  0xcd   :  { %259 = vrot.lane.b32.xlu0 %v258_v52, %s2779_s3 }
  0xd2   :  { %v2946_v53 = vld [vmem:[#allocation1] sm:$0xff] }
  0xd3   :  { %319 = vst [vmem:[#allocation1] ss:$9 sm:$0xff] %v2911_v39  ;;  %v327_v44 = vpack.c.bf16 %v2946_v53, %v2946_v53 }
  0xd4   :  { %320 = vst [vmem:[#allocation1 + $0x1] ss:$9 sm:$0xff] %v2914_v40 }
  0xd5   :  { %321 = vst [vmem:[#allocation1 + $0x2] ss:$9 sm:$0xff] %v2919_v42  ;;  %v330_v45 = vunpack.c.l.b16 %v327_v44 }
  0xd6   :  { %322 = vst [vmem:[#allocation1 + $0x3] ss:$9 sm:$0xff] %v2908_v38 }
  0xd7   :  { %323 = vst [vmem:[#allocation1 + $0x4] ss:$9 sm:$0xff] %v2922_v43  ;;  %v331_v47 = vpack.c.b16 %v330_v45, %v330_v45 }
  0xde   :  { %v2953_v54 = vld [vmem:[#allocation1] sm:$0xff] }
  0xdf   :  { %384 = vst [vmem:[#allocation1] ss:$9 sm:$0xff] %v2889_v32 }
  0xe0   :  { %386 = vst [vmem:[#allocation1 + $0x1] ss:$9 sm:$0xff] %v2892_v33 }
  0xe1   :  { %388 = vst [vmem:[#allocation1 + $0x2] ss:$9 sm:$0xff] %v2895_v34 }
  0xe2   :  { %390 = vst [vmem:[#allocation1 + $0x3] ss:$9 sm:$0xff] %v2902_v36 }
  0xe3   :  { %392 = vst [vmem:[#allocation1 + $0x4] ss:$9 sm:$0xff] %v2899_v35 }
  0xea   :  { %v393_v55 = vld [vmem:[#allocation1] sm:$0xff] }
  0xeb   :  { %394 = vst [vmem:[#allocation1] ss:$9 sm:$0xff] %v2911_v39  ;;  %v402_v60 = vpack.c.bf16 %v393_v55, %v393_v55 }
  0xec   :  { %395 = vst [vmem:[#allocation1 + $0x1] ss:$9 sm:$0xff] %v2914_v40 }
  0xed   :  { %396 = vst [vmem:[#allocation1 + $0x2] ss:$9 sm:$0xff] %v2919_v42  ;;  %v425_v61 = vunpack.c.l.b16 %v402_v60 }
  0xee   :  { %397 = vst [vmem:[#allocation1 + $0x3] ss:$9 sm:$0xff] %v2908_v38 }
  0xef   :  { %398 = vst [vmem:[#allocation1 + $0x4] ss:$9 sm:$0xff] %v2922_v43  ;;  %v426_v63 = vpack.c.b16 %v425_v61, %v425_v61 }
  0xf6   :  { %v399_v56 = vld [vmem:[#allocation1] sm:$0xff] }
  0xf7   :  { %404 = vst [vmem:[#allocation1] ss:$9 sm:$0xff] %v2889_v32  ;;  %v403_v57 = vpack.c.bf16 %v399_v56, %v399_v56 }
  0xf8   :  { %406 = vst [vmem:[#allocation1 + $0x1] ss:$9 sm:$0xff] %v2892_v33 }
  0xf9   :  { %408 = vst [vmem:[#allocation1 + $0x2] ss:$9 sm:$0xff] %v2895_v34  ;;  %v454_v58 = vunpack.c.l.b16 %v403_v57 }
  0xfa   :  { %410 = vst [vmem:[#allocation1 + $0x3] ss:$9 sm:$0xff] %v2902_v36 }
  0xfb   :  { %412 = vst [vmem:[#allocation1 + $0x4] ss:$9 sm:$0xff] %v2899_v35  ;;  %v455_v59 = vpack.c.b16 %v454_v58, %v454_v58 }
  0xfd   :  { %456 = vrot.lane.b32.xlu2 %v455_v59, %s2780_s22 }
 0x102   :  { %v413_v62 = vld [vmem:[#allocation1] sm:$0xff] }
 0x103   :  { %414 = vst [vmem:[#allocation1] ss:$9 sm:$0xff] %v2911_v39  ;;  %v422_v4 = vpack.c.bf16 %v413_v62, %v413_v62 }
 0x104   :  { %415 = vst [vmem:[#allocation1 + $0x1] ss:$9 sm:$0xff] %v2914_v40 }
 0x105   :  { %416 = vst [vmem:[#allocation1 + $0x2] ss:$9 sm:$0xff] %v2919_v42  ;;  %427 = vrot.lane.b32.xlu2 %v426_v63, %s2780_s22  ;;  %v430_v5 = vunpack.c.l.b16 %v422_v4 }
 0x106   :  { %417 = vst [vmem:[#allocation1 + $0x3] ss:$9 sm:$0xff] %v2908_v38 }
 0x107   :  { %418 = vst [vmem:[#allocation1 + $0x4] ss:$9 sm:$0xff] %v2922_v43  ;;  %v431_v7 = vpack.c.b16 %v430_v5, %v430_v5 }
 0x10e   :  { %v419_v0 = vld [vmem:[#allocation1] sm:$0xff] }
 0x10f   :  { %510 = vst [vmem:[#allocation1] ss:$9 sm:$0xff] %v2889_v32  ;;  %v423_v1 = vpack.c.bf16 %v419_v0, %v419_v0 }
 0x110   :  { %512 = vst [vmem:[#allocation1 + $0x1] ss:$9 sm:$0xff] %v2892_v33 }
 0x111   :  { %514 = vst [vmem:[#allocation1 + $0x2] ss:$9 sm:$0xff] %v2895_v34  ;;  %v459_v2 = vunpack.c.l.b16 %v423_v1 }
 0x112   :  { %516 = vst [vmem:[#allocation1 + $0x3] ss:$9 sm:$0xff] %v2902_v36 }
 0x113   :  { %518 = vst [vmem:[#allocation1 + $0x4] ss:$9 sm:$0xff] %v2899_v35  ;;  %v460_v3 = vpack.c.b16 %v459_v2, %v459_v2 }
 0x115   :  { %461 = vrot.lane.b32.xlu1 %v460_v3, %s2781_s23 }
 0x11a   :  { %v2980_v6 = vld [vmem:[#allocation1] sm:$0xff] }
 0x11b   :  { %520 = vst [vmem:[#allocation1] ss:$9 sm:$0xff] %v2911_v39 }
 0x11c   :  { %521 = vst [vmem:[#allocation1 + $0x1] ss:$9 sm:$0xff] %v2914_v40 }
 0x11d   :  { %522 = vst [vmem:[#allocation1 + $0x2] ss:$9 sm:$0xff] %v2919_v42  ;;  %432 = vrot.lane.b32.xlu1 %v431_v7, %s2781_s23  ;;  %v328_v7 = vpack.c.bf16 %v2953_v54, %v2953_v54 }
 0x11e   :  { %523 = vst [vmem:[#allocation1 + $0x3] ss:$9 sm:$0xff] %v2908_v38 }
 0x11f   :  { %524 = vst [vmem:[#allocation1 + $0x4] ss:$9 sm:$0xff] %v2922_v43 }
 0x126   :  { %v525_v46 = vld [vmem:[#allocation1] sm:$0xff] }
 0x127   :  { %v529_v48 = vpack.c.bf16 %v525_v46, %v525_v46 }
 0x129   :  { %v555_v49 = vunpack.c.l.b16 %v529_v48 }
 0x12b   :  { %v556_v50 = vpack.c.b16 %v555_v49, %v555_v49 }
 0x133   :  { %v235_v8 = vpop.permute.xlu0 %234 }
 0x134   :  { %v241_v9 = vsel %vm236_vm4, %v235_v8, 0 }
 0x135   :  { %250 = vmatpush.bf16.xpose.msra.mxu1 %v241_v9 }
 0x13c   :  { %2612 = vmatmul.msk.bf16.vlgmr.msra.gmra.mxu1 %vm236_vm4, %v209_v10  ;;  %v359_v10 = vunpack.c.l.b16 %v328_v7 }
 0x13f   :  { %v260_v11 = vpop.permute.xlu0 %259 }
 0x140   :  { %v265_v12 = vsel %vm236_vm4, %v260_v11, 0  ;;  %v360_v11 = vpack.c.b16 %v359_v10, %v359_v10 }
 0x141   :  { %274 = vmatpush.bf16.xpose.msra.mxu2 %v265_v12  ;;  %v528_v12 = vpack.c.bf16 %v2980_v6, %v2980_v6 }
 0x148   :  { %2613 = vmatmul.msk.bf16.vlgmr.msra.gmra.mxu2 %vm236_vm4, %v210_v13  ;;  %v2784_v13 = vmov 65535  }
 0x157   :  { %v457_v16 = vpop.permute.xlu2 %456 }
 0x15f   :  { %v428_v19 = vpop.permute.xlu2 %427 }
 0x187   :  { %v462_v14 = vpop.permute.xlu1 %461 }
 0x188   :  { %v467_v15 = vsel %vm236_vm4, %v462_v14, 0  ;;  %v340_v14 = vsel %vm338_vm6, 4294967295, %v2784_v13 }
 0x189   :  { %476 = vmatpush.bf16.xpose.msrb.mxu1 %v467_v15  ;;  %v531_v15 = vunpack.c.l.b16 %v528_v12 }
 0x18b   :  { %v532_v54 = vpack.c.b16 %v531_v15, %v531_v15 }
 0x18f   :  { %v433_v17 = vpop.permute.xlu1 %432 }
 0x190   :  { %2617 = vmatmul.msk.bf16.vlgmr.msrb.gmra.mxu1 %vm236_vm4, %v457_v16  ;;  %v438_v18 = vsel %vm236_vm4, %v433_v17, 0  ;;  %v3025_v16 = vsel %vm339_vm7, %v340_v14, 0 }
 0x191   :  { %447 = vmatpush.bf16.xpose.msrb.mxu0 %v438_v18 }
 0x198   :  { %2616 = vmatmul.msk.bf16.vlgmr.msrb.gmra.mxu0 %vm236_vm4, %v428_v19 }
 0x1b9   :  { %v252_v22 = vpop.f32.mrf.mxu1 }
 0x1ba   :  { %v280_v23 = vmul.f32 0.35355338, %v252_v22 }
 0x1bc   :  { %v282_v24 = vadd.f32 %v280_v23, %v3002_v21 }
 0x1be   :  { %v285_v25 = vsel %vm284_vm5, %v282_v24, -inf }
 0x1bf   :  { %286 = vmax.xlane.f32.xlu0 %v285_v25 }
 0x1c1   :  { %v254_v26 = vpop.f32.mrf.mxu1 }
 0x1cb   :  { %v276_v29 = vpop.f32.mrf.mxu2 }
 0x1cc   :  { %v281_v30 = vmul.f32 0.35355338, %v276_v29 }
 0x1ce   :  { %v283_v31 = vadd.f32 %v281_v30, %v3006_v28 }
 0x1d0   :  { %v288_v37 = vsel %vm284_vm5, %v283_v31, -inf }
 0x1d1   :  { %289 = vmax.xlane.f32.xlu1 %v288_v37 }
 0x1d3   :  { %v278_v41 = vpop.f32.mrf.mxu2 }
 0x1ea   :  { %332 = vrot.lane.b32.xlu1 %v331_v47, %s2782_s1 }
 0x1f2   :  { %557 = vrot.lane.b32.xlu1 %v556_v50, %s2783_s26 }
 0x20d   :  { %v478_v51 = vpop.f32.mrf.mxu1 }
 0x20e   :  { %v483_v52 = vmul.f32 0.35355338, %v478_v51 }
 0x210   :  { %v485_v55 = vadd.f32 %v483_v52, %v3006_v28 }
 0x212   :  { %v489_v56 = vsel %vm284_vm5, %v485_v55, -inf }
 0x213   :  { %490 = vmax.xlane.f32.xlu2 %v489_v56 }
 0x215   :  { %v449_v53 = vpop.f32.mrf.mxu0  ;;  %v480_v57 = vpop.f32.mrf.mxu1 }
 0x216   :  { %v482_v58 = vmul.f32 0.35355338, %v449_v53 }
 0x218   :  { %v484_v59 = vadd.f32 %v482_v58, %v3002_v21 }
 0x21a   :  { %v486_v60 = vsel %vm284_vm5, %v484_v59, -inf }
 0x21b   :  { %487 = vmax.xlane.f32.xlu2 %v486_v60 }
 0x21d   :  { %v451_v61 = vpop.f32.mrf.mxu0 }
 0x232   :  { %v287_v62 = vpop.xlane.xlu0 %286 }
 0x233   :  { %v291_v63 = vsub.f32 %v282_v24, %v287_v62 }
 0x235   :  { %v293_v0 = vmul.f32 1.442695, %v291_v63 }
 0x237   :  { %2715 = vpow2.f32 %v293_v0 }
 0x23d   :  { %v2716_v1 = vpop.eup %2715 }
 0x23e   :  { %v297_v2 = vsel %vm284_vm5, %v2716_v1, 0.0 }
 0x23f   :  { %298 = vadd.xlane.f32.xlu0 %v297_v2 }
 0x244   :  { %v290_v3 = vpop.xlane.xlu1 %289 }
 0x245   :  { %v292_v4 = vsub.f32 %v283_v31, %v290_v3 }
 0x247   :  { %v295_v5 = vmul.f32 1.442695, %v292_v4 }
 0x249   :  { %2717 = vpow2.f32 %v295_v5 }
 0x24f   :  { %v2718_v8 = vpop.eup %2717 }
 0x250   :  { %v300_v9 = vsel %vm284_vm5, %v2718_v8, 0.0 }
 0x251   :  { %301 = vadd.xlane.f32.xlu2 %v300_v9 }
 0x253   :  { %361 = vrot.lane.b32.xlu0 %v360_v11, %s2782_s1 }
 0x25b   :  { %533 = vrot.lane.b32.xlu0 %v532_v54, %s2783_s26 }
 0x25c   :  { %v333_v17 = vpop.permute.xlu1 %332 }
 0x25d   :  { %v343_v18 = vand.u32 %v3025_v16, %v333_v17 }
 0x25f   :  { %352 = vmatpush.bf16.msra.mxu3 %v343_v18 }
 0x264   :  { %v558_v45 = vpop.permute.xlu1 %557 }
 0x265   :  { %v563_v49 = vand.u32 %v558_v45, %v3025_v16 }
 0x286   :  { %v491_v19 = vpop.xlane.xlu2 %490 }
 0x287   :  { %v493_v20 = vsub.f32 %v485_v55, %v491_v19 }
 0x289   :  { %v496_v22 = vmul.f32 1.442695, %v493_v20 }
 0x28b   :  { %2719 = vpow2.f32 %v496_v22 }
 0x28e   :  { %v488_v6 = vpop.xlane.xlu2 %487 }
 0x28f   :  { %v492_v23 = vsub.f32 %v484_v59, %v488_v6 }
 0x291   :  { %v2720_v24 = vpop.eup %2719  ;;  %v494_v25 = vmul.f32 1.442695, %v492_v23 }
 0x292   :  { %v501_v26 = vsel %vm284_vm5, %v2720_v24, 0.0 }
 0x293   :  { %2721 = vpow2.f32 %v494_v25  ;;  %502 = vadd.xlane.f32.xlu2 %v501_v26 }
 0x299   :  { %v2722_v27 = vpop.eup %2721 }
 0x29a   :  { %v498_v29 = vsel %vm284_vm5, %v2722_v27, 0.0 }
 0x29b   :  { %499 = vadd.xlane.f32.xlu2 %v498_v29 }
 0x2b2   :  { %v299_v30 = vpop.xlane.xlu0 %298 }
 0x2b3   :  { %2723 = vrcp.f32 %v299_v30 }
 0x2b9   :  { %v2724_v31 = vpop.eup %2723 }
 0x2ba   :  { %v305_v37 = vmul.f32 %v2724_v31, %v2716_v1 }
 0x2bc   :  { %v307_v41 = vpack.c.bf16 %v305_v37, %v305_v37 }
 0x2be   :  { %2614 = vmatmul.msk.bf16.vlgmr.msra.gmra.mxu3 %vm334_vm8, %v307_v41 }
 0x2c4   :  { %v302_v44 = vpop.xlane.xlu2 %301 }
 0x2c5   :  { %2725 = vrcp.f32 %v302_v44  ;;  %v362_v46 = vpop.permute.xlu0 %361 }
 0x2c6   :  { %v367_v47 = vand.u32 %v362_v46, %v3025_v16 }
 0x2c8   :  { %376 = vmatpush.bf16.msrb.mxu3 %v367_v47  ;;  %v188_v47 = vld [vmem:[%s3838_s4 + $0x4] sm:$0xf] }
 0x2cb   :  { %v2726_v48 = vpop.eup %2725 }
 0x2cc   :  { %v306_v50 = vmul.f32 %v2726_v48, %v2718_v8  ;;  %572 = vmatpush.bf16.msra.mxu3 %v563_v49  ;;  %v638_v48 = vsel %vm636_vm9, %v188_v47, 0 }
 0x2cd   :  { %v534_v52 = vpop.permute.xlu0 %533  ;;  %647 = vmatpush.bf16.msra.mxu0 %v638_v48 }
 0x2ce   :  { %v308_v51 = vpack.c.bf16 %v306_v50, %v306_v50  ;;  %v539_v55 = vand.u32 %v534_v52, %v3025_v16 }
 0x2d0   :  { %2615 = vmatmul.msk.bf16.vlgmr.msrb.gmra.mxu3 %vm334_vm8, %v308_v51  ;;  %548 = vmatpush.bf16.msrb.mxu2 %v539_v55 }
 0x306   :  { %v503_v56 = vpop.xlane.xlu2 %502 }
 0x307   :  { %2727 = vrcp.f32 %v503_v56 }
 0x30d   :  { %v2728_v53 = vpop.eup %2727 }
 0x30e   :  { %v507_v57 = vmul.f32 %v2728_v53, %v2720_v24  ;;  %v500_v58 = vpop.xlane.xlu2 %499 }
 0x30f   :  { %2729 = vrcp.f32 %v500_v58  ;;  %v187_v58 = vld [vmem:[%s3838_s4] sm:$0xf] }
 0x310   :  { %v509_v59 = vpack.c.bf16 %v507_v57, %v507_v57 }
 0x312   :  { %2619 = vmatmul.msk.bf16.vlgmr.msra.gmra.mxu3 %vm334_vm8, %v509_v59 }
 0x315   :  { %v2730_v60 = vpop.eup %2729 }
 0x316   :  { %v506_v61 = vmul.f32 %v2730_v60, %v2722_v27  ;;  %v711_v60 = vsel %vm636_vm9, %v187_v58, 0 }
 0x317   :  { %720 = vmatpush.bf16.msra.mxu1 %v711_v60 }
 0x318   :  { %v508_v62 = vpack.c.bf16 %v506_v61, %v506_v61 }
 0x31a   :  { %2618 = vmatmul.msk.bf16.vlgmr.msrb.gmra.mxu2 %vm334_vm8, %v508_v62 }
 0x341   :  { %v354_v63 = vpop.f32.mrf.mxu3 }
 0x342   :  { %v382_v1 = vpack.c.bf16 %v354_v63, %v354_v63 }
 0x344   :  { %v656_v2 = vrot.slane %v382_v1, 3 }
 0x346   :  { %v665_v4 = vsel %vm79_vm0, %v382_v1, %v656_v2  ;;  %v662_v50 = vsel %vm75_vm2, %v382_v1, %v656_v2  ;;  %v660_v56 = vsel %vm70_vm1, %v382_v1, %v656_v2 }
 0x347   :  { %v667_v8 = vrot.slane %v665_v4, 2  ;;  %v664_v53 = vrot.slane %v662_v50, 1 }
 0x349   :  { %v356_v0 = vpop.f32.mrf.mxu3 }
 0x353   :  { %v378_v3 = vpop.f32.mrf.mxu3 }
 0x354   :  { %v383_v5 = vpack.c.bf16 %v378_v3, %v378_v3 }
 0x356   :  { %v657_v7 = vrot.slane %v383_v5, 3 }
 0x358   :  { %v670_v9 = vsel %vm70_vm1, %v383_v5, %v657_v7  ;;  %v672_v46 = vsel %vm75_vm2, %v383_v5, %v657_v7  ;;  %v675_v51 = vsel %vm79_vm0, %v383_v5, %v657_v7 }
 0x359   :  { %v2624_v10 = vpack.i.b16 %v670_v9, %v667_v8  ;;  %v674_v49 = vrot.slane %v672_v46, 1  ;;  %v684_v52 = vunpack.i.h.s16 %v670_v9  ;;  %v677_v59 = vrot.slane %v675_v51, 2 }
 0x35b   :  { %v380_v11 = vpop.f32.mrf.mxu3  ;;  %v686_v55 = vunpack.i.h.s16 %v674_v49  ;;  %v2625_v61 = vpack.i.b16 %v674_v49, %v684_v52 }
 0x35d   :  { %v2626_v62 = vpack.i.b16 %v677_v59, %v686_v55 }
 0x395   :  { %v574_v12 = vpop.f32.mrf.mxu3 }
 0x396   :  { %v579_v13 = vpack.c.bf16 %v574_v12, %v574_v12 }
 0x398   :  { %v583_v14 = vrot.slane %v579_v13, 3 }
 0x39a   :  { %v596_v15 = vsel %vm70_vm1, %v579_v13, %v583_v14  ;;  %v598_v17 = vsel %vm75_vm2, %v579_v13, %v583_v14  ;;  %v601_v54 = vsel %vm79_vm0, %v579_v13, %v583_v14 }
 0x39b   :  { %v600_v18 = vrot.slane %v598_v17, 1  ;;  %v610_v19 = vunpack.i.h.s16 %v596_v15  ;;  %v603_v20 = vrot.slane %v601_v54, 2 }
 0x39d   :  { %v612_v22 = vunpack.i.h.s16 %v600_v18  ;;  %v2621_v6 = vpack.i.b16 %v600_v18, %v610_v19  ;;  %v550_v23 = vpop.f32.mrf.mxu2  ;;  %v576_v24 = vpop.f32.mrf.mxu3 }
 0x39e   :  { %v578_v25 = vpack.c.bf16 %v550_v23, %v550_v23 }
 0x39f   :  { %v2622_v26 = vpack.i.b16 %v603_v20, %v612_v22  ;;  %629 = vst [vmem:[#allocation1 + $0x3] ss:$9 sm:$0xff] %v2621_v6 }
 0x3a0   :  { %v582_v27 = vrot.slane %v578_v25, 3 }
 0x3a1   :  { %632 = vst [vmem:[#allocation1 + $0x4] ss:$9 sm:$0xff] %v2622_v26 }
 0x3a2   :  { %v586_v29 = vsel %vm70_vm1, %v578_v25, %v582_v27  ;;  %v588_v30 = vsel %vm75_vm2, %v578_v25, %v582_v27  ;;  %v591_v31 = vsel %vm79_vm0, %v578_v25, %v582_v27 }
 0x3a3   :  { %v590_v37 = vrot.slane %v588_v30, 1  ;;  %v593_v41 = vrot.slane %v591_v31, 2  ;;  %620 = vst [vmem:[#allocation1] ss:$9 sm:$0xff] %v586_v29 }
 0x3a5   :  { %v2620_v44 = vpack.i.b16 %v596_v15, %v593_v41  ;;  %623 = vst [vmem:[#allocation1 + $0x1] ss:$9 sm:$0xff] %v590_v37  ;;  %v552_v45 = vpop.f32.mrf.mxu2 }
 0x3a7   :  { %626 = vst [vmem:[#allocation1 + $0x2] ss:$9 sm:$0xff] %v2620_v44 }
 0x3ae   :  { %v633_v57 = vld [vmem:[#allocation1] sm:$0xff] }
 0x3af   :  { %694 = vst [vmem:[#allocation1] ss:$9 sm:$0xff] %v660_v56  ;;  %2623 = vmatmul.msk.bf16.vlgmr.msra.gmra.mxu0 %vm236_vm4, %v633_v57 }
 0x3b0   :  { %697 = vst [vmem:[#allocation1 + $0x1] ss:$9 sm:$0xff] %v664_v53 }
 0x3b1   :  { %700 = vst [vmem:[#allocation1 + $0x2] ss:$9 sm:$0xff] %v2624_v10 }
 0x3b2   :  { %703 = vst [vmem:[#allocation1 + $0x3] ss:$9 sm:$0xff] %v2625_v61 }
 0x3b3   :  { %706 = vst [vmem:[#allocation1 + $0x4] ss:$9 sm:$0xff] %v2626_v62 }
 0x3ba   :  { %v707_v63 = vld [vmem:[#allocation1] sm:$0xff] }
 0x3bb   :  { %745 = vst [vmem:[#allocation1] ss:$9 sm:$0xff] %v2889_v32  ;;  %2627 = vmatmul.msk.bf16.vlgmr.msra.gmra.mxu1 %vm236_vm4, %v707_v63 }
 0x3bc   :  { %747 = vst [vmem:[#allocation1 + $0x1] ss:$9 sm:$0xff] %v2892_v33 }
 0x3bd   :  { %749 = vst [vmem:[#allocation1 + $0x2] ss:$9 sm:$0xff] %v2895_v34 }
 0x3be   :  { %751 = vst [vmem:[#allocation1 + $0x3] ss:$9 sm:$0xff] %v2902_v36 }
 0x3bf   :  { %753 = vst [vmem:[#allocation1 + $0x4] ss:$9 sm:$0xff] %v2899_v35 }
 0x3c6   :  { %v754_v0 = vld [vmem:[#allocation1] sm:$0xff] }
 0x3c7   :  { %755 = vst [vmem:[#allocation1] ss:$9 sm:$0xff] %v2911_v39  ;;  %v763_v10 = vpack.c.bf16 %v754_v0, %v754_v0 }
 0x3c8   :  { %756 = vst [vmem:[#allocation1 + $0x1] ss:$9 sm:$0xff] %v2914_v40 }
 0x3c9   :  { %757 = vst [vmem:[#allocation1 + $0x2] ss:$9 sm:$0xff] %v2919_v42  ;;  %v786_v11 = vunpack.c.l.b16 %v763_v10 }
 0x3ca   :  { %758 = vst [vmem:[#allocation1 + $0x3] ss:$9 sm:$0xff] %v2908_v38 }
 0x3cb   :  { %759 = vst [vmem:[#allocation1 + $0x4] ss:$9 sm:$0xff] %v2922_v43  ;;  %v787_v13 = vpack.c.b16 %v786_v11, %v786_v11 }
 0x3d2   :  { %v760_v1 = vld [vmem:[#allocation1] sm:$0xff] }
 0x3d3   :  { %765 = vst [vmem:[#allocation1] ss:$9 sm:$0xff] %v2889_v32  ;;  %v764_v2 = vpack.c.bf16 %v760_v1, %v760_v1 }
 0x3d4   :  { %767 = vst [vmem:[#allocation1 + $0x1] ss:$9 sm:$0xff] %v2892_v33 }
 0x3d5   :  { %769 = vst [vmem:[#allocation1 + $0x2] ss:$9 sm:$0xff] %v2895_v34  ;;  %v815_v3 = vunpack.c.l.b16 %v764_v2 }
 0x3d6   :  { %771 = vst [vmem:[#allocation1 + $0x3] ss:$9 sm:$0xff] %v2902_v36 }
 0x3d7   :  { %773 = vst [vmem:[#allocation1 + $0x4] ss:$9 sm:$0xff] %v2899_v35  ;;  %v816_v4 = vpack.c.b16 %v815_v3, %v815_v3 }
 0x3d9   :  { %817 = vrot.lane.b32.xlu0 %v816_v4, %s2785_s15 }
 0x3de   :  { %v774_v5 = vld [vmem:[#allocation1] sm:$0xff] }
 0x3df   :  { %775 = vst [vmem:[#allocation1] ss:$9 sm:$0xff] %v2911_v39  ;;  %v783_v7 = vpack.c.bf16 %v774_v5, %v774_v5 }
 0x3e0   :  { %776 = vst [vmem:[#allocation1 + $0x1] ss:$9 sm:$0xff] %v2914_v40 }
 0x3e1   :  { %777 = vst [vmem:[#allocation1 + $0x2] ss:$9 sm:$0xff] %v2919_v42  ;;  %v791_v8 = vunpack.c.l.b16 %v783_v7 }
 0x3e2   :  { %778 = vst [vmem:[#allocation1 + $0x3] ss:$9 sm:$0xff] %v2908_v38 }
 0x3e3   :  { %779 = vst [vmem:[#allocation1 + $0x4] ss:$9 sm:$0xff] %v2922_v43  ;;  %v792_v9 = vpack.c.b16 %v791_v8, %v791_v8 }
 0x3e5   :  { %793 = vrot.lane.b32.xlu1 %v792_v9, %s2786_s16 }
 0x3ea   :  { %v780_v12 = vld [vmem:[#allocation1] sm:$0xff] }
 0x3eb   :  { %871 = vst [vmem:[#allocation1] ss:$9 sm:$0xff] %v2889_v32  ;;  %v784_v14 = vpack.c.bf16 %v780_v12, %v780_v12 }
 0x3ec   :  { %873 = vst [vmem:[#allocation1 + $0x1] ss:$9 sm:$0xff] %v2892_v33 }
 0x3ed   :  { %875 = vst [vmem:[#allocation1 + $0x2] ss:$9 sm:$0xff] %v2895_v34  ;;  %788 = vrot.lane.b32.xlu1 %v787_v13, %s2785_s15  ;;  %v820_v15 = vunpack.c.l.b16 %v784_v14 }
 0x3ee   :  { %877 = vst [vmem:[#allocation1 + $0x3] ss:$9 sm:$0xff] %v2902_v36 }
 0x3ef   :  { %879 = vst [vmem:[#allocation1 + $0x4] ss:$9 sm:$0xff] %v2899_v35  ;;  %v821_v17 = vpack.c.b16 %v820_v15, %v820_v15 }
 0x3f1   :  { %822 = vrot.lane.b32.xlu2 %v821_v17, %s2786_s16 }
 0x3f6   :  { %v880_v54 = vld [vmem:[#allocation1] sm:$0xff] }
 0x3f7   :  { %881 = vst [vmem:[#allocation1] ss:$9 sm:$0xff] %v2911_v39  ;;  %v889_v63 = vpack.c.bf16 %v880_v54, %v880_v54 }
 0x3f8   :  { %882 = vst [vmem:[#allocation1 + $0x1] ss:$9 sm:$0xff] %v2914_v40 }
 0x3f9   :  { %883 = vst [vmem:[#allocation1 + $0x2] ss:$9 sm:$0xff] %v2919_v42  ;;  %v892_v2 = vunpack.c.l.b16 %v889_v63 }
 0x3fa   :  { %884 = vst [vmem:[#allocation1 + $0x3] ss:$9 sm:$0xff] %v2908_v38 }
 0x3fb   :  { %885 = vst [vmem:[#allocation1 + $0x4] ss:$9 sm:$0xff] %v2922_v43  ;;  %v893_v3 = vpack.c.b16 %v892_v2, %v892_v2 }
 0x402   :  { %v886_v48 = vld [vmem:[#allocation1] sm:$0xff] }
 0x403   :  { %v890_v49 = vpack.c.bf16 %v886_v48, %v886_v48  ;;  %v189_v48 = vld [vmem:[%s3838_s4 + $0x8] sm:$0xf] }
 0x405   :  { %v916_v50 = vunpack.c.l.b16 %v890_v49 }
 0x407   :  { %v917_v51 = vpack.c.b16 %v916_v50, %v916_v50 }
 0x42c   :  { %v649_v18 = vpop.f32.mrf.mxu0 }
 0x438   :  { %v722_v19 = vpop.f32.mrf.mxu1 }
 0x439   :  { %v3090_v20 = vadd.f32 %v722_v19, %v649_v18 }
 0x440   :  { %v3106_v15 = vpop.f32.mrf.mxu1 }
 0x44b   :  { %v823_v22 = vpop.permute.xlu2 %822  ;;  %v818_v23 = vpop.permute.xlu0 %817 }
 0x44c   :  { %v828_v6 = vsel %vm236_vm4, %v823_v22, 0 }
 0x44d   :  { %837 = vmatpush.bf16.xpose.msrb.mxu3 %v828_v6 }
 0x454   :  { %2629 = vmatmul.msk.bf16.vlgmr.msrb.gmra.mxu3 %vm236_vm4, %v818_v23 }
 0x457   :  { %v794_v24 = vpop.permute.xlu1 %793 }
 0x458   :  { %v799_v25 = vsel %vm236_vm4, %v794_v24, 0 }
 0x459   :  { %808 = vmatpush.bf16.xpose.msra.mxu2 %v799_v25 }
 0x45f   :  { %v789_v26 = vpop.permute.xlu1 %788 }
 0x460   :  { %2628 = vmatmul.msk.bf16.vlgmr.msra.gmra.mxu2 %vm236_vm4, %v789_v26 }
 0x4d7   :  { %v839_v27 = vpop.f32.mrf.mxu3 }
 0x4d8   :  { %v844_v29 = vmul.f32 0.35355338, %v839_v27 }
 0x4da   :  { %v846_v30 = vadd.f32 %v844_v29, %v3006_v28 }
 0x4dc   :  { %v850_v31 = vsel %vm284_vm5, %v846_v30, -inf }
 0x4dd   :  { %851 = vmax.xlane.f32.xlu0 %v850_v31  ;;  %v3111_v31 = vpop.f32.mrf.mxu0 }
 0x4df   :  { %v841_v37 = vpop.f32.mrf.mxu3 }
 0x4e3   :  { %v810_v41 = vpop.f32.mrf.mxu2 }
 0x4e4   :  { %v843_v44 = vmul.f32 0.35355338, %v810_v41 }
 0x4e6   :  { %v845_v45 = vadd.f32 %v843_v44, %v3002_v21 }
 0x4e8   :  { %v847_v46 = vsel %vm284_vm5, %v845_v45, -inf }
 0x4e9   :  { %848 = vmax.xlane.f32.xlu1 %v847_v46 }
 0x4eb   :  { %v812_v47 = vpop.f32.mrf.mxu2 }
 0x502   :  { %918 = vrot.lane.b32.xlu1 %v917_v51, %s2787_s17  ;;  %v998_v51 = vsel %vm636_vm9, %v189_v48, 0 }
 0x503   :  { %1007 = vmatpush.bf16.msrb.mxu2 %v998_v51 }
 0x550   :  { %v852_v52 = vpop.xlane.xlu0 %851 }
 0x551   :  { %v854_v55 = vsub.f32 %v846_v30, %v852_v52 }
 0x553   :  { %v857_v56 = vmul.f32 1.442695, %v854_v55 }
 0x555   :  { %2731 = vpow2.f32 %v857_v56 }
 0x55b   :  { %v2732_v53 = vpop.eup %2731 }
 0x55c   :  { %v862_v57 = vsel %vm284_vm5, %v2732_v53, 0.0  ;;  %v849_v58 = vpop.xlane.xlu1 %848 }
 0x55d   :  { %863 = vadd.xlane.f32.xlu2 %v862_v57  ;;  %v853_v59 = vsub.f32 %v845_v45, %v849_v58 }
 0x55f   :  { %v855_v60 = vmul.f32 1.442695, %v853_v59 }
 0x561   :  { %2733 = vpow2.f32 %v855_v60 }
 0x567   :  { %v2734_v61 = vpop.eup %2733 }
 0x568   :  { %v859_v62 = vsel %vm284_vm5, %v2734_v61, 0.0 }
 0x569   :  { %860 = vadd.xlane.f32.xlu0 %v859_v62 }
 0x574   :  { %v919_v0 = vpop.permute.xlu1 %918 }
 0x575   :  { %v924_v1 = vand.u32 %v919_v0, %v3025_v16 }
 0x577   :  { %933 = vmatpush.bf16.msrb.mxu1 %v924_v1 }
 0x57d   :  { %894 = vrot.lane.b32.xlu0 %v893_v3, %s2787_s17 }
 0x5d0   :  { %v864_v4 = vpop.xlane.xlu2 %863 }
 0x5d1   :  { %2735 = vrcp.f32 %v864_v4 }
 0x5d7   :  { %v2736_v5 = vpop.eup %2735 }
 0x5d8   :  { %v868_v7 = vmul.f32 %v2736_v5, %v2732_v53 }
 0x5da   :  { %v870_v8 = vpack.c.bf16 %v868_v7, %v868_v7 }
 0x5dc   :  { %2631 = vmatmul.msk.bf16.vlgmr.msrb.gmra.mxu1 %vm334_vm8, %v870_v8  ;;  %v861_v9 = vpop.xlane.xlu0 %860 }
 0x5dd   :  { %2737 = vrcp.f32 %v861_v9 }
 0x5e3   :  { %v2738_v10 = vpop.eup %2737 }
 0x5e4   :  { %v867_v11 = vmul.f32 %v2738_v10, %v2734_v61 }
 0x5e6   :  { %v869_v14 = vpack.c.bf16 %v867_v11, %v867_v11 }
 0x5ef   :  { %v895_v12 = vpop.permute.xlu0 %894 }
 0x5f0   :  { %v900_v13 = vand.u32 %v895_v12, %v3025_v16 }
 0x5f2   :  { %909 = vmatpush.bf16.msrb.mxu0 %v900_v13 }
 0x5f5   :  { %2630 = vmatmul.msk.bf16.vlgmr.msrb.gmra.mxu0 %vm334_vm8, %v869_v14 }
 0x659   :  { %v935_v17 = vpop.f32.mrf.mxu1 }
 0x65a   :  { %v940_v54 = vpack.c.bf16 %v935_v17, %v935_v17 }
 0x65c   :  { %v944_v18 = vrot.slane %v940_v54, 3 }
 0x65e   :  { %v957_v19 = vsel %vm70_vm1, %v940_v54, %v944_v18  ;;  %v959_v22 = vsel %vm75_vm2, %v940_v54, %v944_v18  ;;  %v962_v6 = vsel %vm79_vm0, %v940_v54, %v944_v18 }
 0x65f   :  { %v961_v23 = vrot.slane %v959_v22, 1  ;;  %v971_v24 = vunpack.i.h.s16 %v957_v19  ;;  %v964_v25 = vrot.slane %v962_v6, 2 }
 0x661   :  { %v973_v26 = vunpack.i.h.s16 %v961_v23  ;;  %v2633_v27 = vpack.i.b16 %v961_v23, %v971_v24  ;;  %v937_v29 = vpop.f32.mrf.mxu1 }
 0x663   :  { %v2634_v30 = vpack.i.b16 %v964_v25, %v973_v26  ;;  %990 = vst [vmem:[#allocation1 + $0x3] ss:$9 sm:$0xff] %v2633_v27 }
 0x665   :  { %993 = vst [vmem:[#allocation1 + $0x4] ss:$9 sm:$0xff] %v2634_v30 }
 0x672   :  { %v911_v37 = vpop.f32.mrf.mxu0 }
 0x673   :  { %v939_v41 = vpack.c.bf16 %v911_v37, %v911_v37 }
 0x675   :  { %v943_v44 = vrot.slane %v939_v41, 3 }
 0x677   :  { %v947_v45 = vsel %vm70_vm1, %v939_v41, %v943_v44  ;;  %v949_v46 = vsel %vm75_vm2, %v939_v41, %v943_v44  ;;  %v952_v47 = vsel %vm79_vm0, %v939_v41, %v943_v44 }
 0x678   :  { %v951_v49 = vrot.slane %v949_v46, 1  ;;  %v954_v50 = vrot.slane %v952_v47, 2  ;;  %981 = vst [vmem:[#allocation1] ss:$9 sm:$0xff] %v947_v45 }
 0x67a   :  { %v2632_v52 = vpack.i.b16 %v957_v19, %v954_v50  ;;  %984 = vst [vmem:[#allocation1 + $0x1] ss:$9 sm:$0xff] %v951_v49  ;;  %v913_v55 = vpop.f32.mrf.mxu0 }
 0x67c   :  { %987 = vst [vmem:[#allocation1 + $0x2] ss:$9 sm:$0xff] %v2632_v52 }
 0x683   :  { %v994_v56 = vld [vmem:[#allocation1] sm:$0xff] }
 0x684   :  { %1042 = vst [vmem:[#allocation1] ss:$9 sm:$0xff] %v2889_v32  ;;  %2635 = vmatmul.msk.bf16.vlgmr.msrb.gmra.mxu2 %vm236_vm4, %v994_v56 }
 0x685   :  { %1044 = vst [vmem:[#allocation1 + $0x1] ss:$9 sm:$0xff] %v2892_v33 }
 0x686   :  { %1046 = vst [vmem:[#allocation1 + $0x2] ss:$9 sm:$0xff] %v2895_v34 }
 0x687   :  { %1048 = vst [vmem:[#allocation1 + $0x3] ss:$9 sm:$0xff] %v2902_v36 }
 0x688   :  { %1050 = vst [vmem:[#allocation1 + $0x4] ss:$9 sm:$0xff] %v2899_v35 }
 0x68f   :  { %v1051_v53 = vld [vmem:[#allocation1] sm:$0xff] }
 0x690   :  { %1052 = vst [vmem:[#allocation1] ss:$9 sm:$0xff] %v2911_v39  ;;  %v1060_v5 = vpack.c.bf16 %v1051_v53, %v1051_v53 }
 0x691   :  { %1053 = vst [vmem:[#allocation1 + $0x1] ss:$9 sm:$0xff] %v2914_v40 }
 0x692   :  { %1054 = vst [vmem:[#allocation1 + $0x2] ss:$9 sm:$0xff] %v2919_v42  ;;  %v1083_v7 = vunpack.c.l.b16 %v1060_v5 }
 0x693   :  { %1055 = vst [vmem:[#allocation1 + $0x3] ss:$9 sm:$0xff] %v2908_v38 }
 0x694   :  { %1056 = vst [vmem:[#allocation1 + $0x4] ss:$9 sm:$0xff] %v2922_v43  ;;  %v1084_v9 = vpack.c.b16 %v1083_v7, %v1083_v7 }
 0x69b   :  { %v1057_v57 = vld [vmem:[#allocation1] sm:$0xff] }
 0x69c   :  { %1062 = vst [vmem:[#allocation1] ss:$9 sm:$0xff] %v2889_v32  ;;  %v1061_v58 = vpack.c.bf16 %v1057_v57, %v1057_v57 }
 0x69d   :  { %1064 = vst [vmem:[#allocation1 + $0x1] ss:$9 sm:$0xff] %v2892_v33 }
 0x69e   :  { %1066 = vst [vmem:[#allocation1 + $0x2] ss:$9 sm:$0xff] %v2895_v34  ;;  %v1112_v59 = vunpack.c.l.b16 %v1061_v58 }
 0x69f   :  { %1068 = vst [vmem:[#allocation1 + $0x3] ss:$9 sm:$0xff] %v2902_v36 }
 0x6a0   :  { %1070 = vst [vmem:[#allocation1 + $0x4] ss:$9 sm:$0xff] %v2899_v35  ;;  %v1113_v60 = vpack.c.b16 %v1112_v59, %v1112_v59 }
 0x6a2   :  { %1114 = vrot.lane.b32.xlu1 %v1113_v60, %s2788_s20 }
 0x6a7   :  { %v1071_v61 = vld [vmem:[#allocation1] sm:$0xff] }
 0x6a8   :  { %1072 = vst [vmem:[#allocation1] ss:$9 sm:$0xff] %v2911_v39  ;;  %v1080_v62 = vpack.c.bf16 %v1071_v61, %v1071_v61 }
 0x6a9   :  { %1073 = vst [vmem:[#allocation1 + $0x1] ss:$9 sm:$0xff] %v2914_v40 }
 0x6aa   :  { %1074 = vst [vmem:[#allocation1 + $0x2] ss:$9 sm:$0xff] %v2919_v42  ;;  %v1088_v63 = vunpack.c.l.b16 %v1080_v62 }
 0x6ab   :  { %1075 = vst [vmem:[#allocation1 + $0x3] ss:$9 sm:$0xff] %v2908_v38 }
 0x6ac   :  { %1076 = vst [vmem:[#allocation1 + $0x4] ss:$9 sm:$0xff] %v2922_v43  ;;  %v1089_v0 = vpack.c.b16 %v1088_v63, %v1088_v63 }
 0x6ae   :  { %1090 = vrot.lane.b32.xlu0 %v1089_v0, %s2789_s2 }
 0x6b3   :  { %v1077_v1 = vld [vmem:[#allocation1] sm:$0xff] }
 0x6b4   :  { %1168 = vst [vmem:[#allocation1] ss:$9 sm:$0xff] %v2889_v32  ;;  %v1081_v2 = vpack.c.bf16 %v1077_v1, %v1077_v1  ;;  %v729_v32 = vrot.slane %v3090_v20, 1 }
 0x6b5   :  { %1170 = vst [vmem:[#allocation1 + $0x1] ss:$9 sm:$0xff] %v2892_v33  ;;  %v730_v33 = vrot.slane %v3090_v20, 2 }
 0x6b6   :  { %1172 = vst [vmem:[#allocation1 + $0x2] ss:$9 sm:$0xff] %v2895_v34  ;;  %v1117_v3 = vunpack.c.l.b16 %v1081_v2  ;;  %v733_v34 = vrot.slane %v3090_v20, 5 }
 0x6b7   :  { %1174 = vst [vmem:[#allocation1 + $0x3] ss:$9 sm:$0xff] %v2902_v36  ;;  %v735_v36 = vrot.slane %v3090_v20, 7 }
 0x6b8   :  { %1176 = vst [vmem:[#allocation1 + $0x4] ss:$9 sm:$0xff] %v2899_v35  ;;  %v1118_v4 = vpack.c.b16 %v1117_v3, %v1117_v3  ;;  %v734_v35 = vrot.slane %v3090_v20, 6 }
 0x6ba   :  { %1119 = vrot.lane.b32.xlu2 %v1118_v4, %s2789_s2 }
 0x6bf   :  { %v3146_v8 = vld [vmem:[#allocation1] sm:$0xff] }
 0x6c0   :  { %1178 = vst [vmem:[#allocation1] ss:$9 sm:$0xff] %v2911_v39  ;;  %v1186_v1 = vpack.c.bf16 %v3146_v8, %v3146_v8 }
 0x6c1   :  { %1179 = vst [vmem:[#allocation1 + $0x1] ss:$9 sm:$0xff] %v2914_v40  ;;  %v731_v40 = vrot.slane %v3090_v20, 3 }
 0x6c2   :  { %1180 = vst [vmem:[#allocation1 + $0x2] ss:$9 sm:$0xff] %v2919_v42  ;;  %1085 = vrot.lane.b32.xlu2 %v1084_v9, %s2788_s20  ;;  %v732_v42 = vrot.slane %v3090_v20, 4  ;;  %v1189_v4 = vunpack.c.l.b16 %v1186_v1 }
 0x6c3   :  { %1181 = vst [vmem:[#allocation1 + $0x3] ss:$9 sm:$0xff] %v2908_v38 }
 0x6c4   :  { %1182 = vst [vmem:[#allocation1 + $0x4] ss:$9 sm:$0xff] %v2922_v43  ;;  %v1190_v5 = vpack.c.b16 %v1189_v4, %v1189_v4 }
 0x6cb   :  { %v1183_v47 = vld [vmem:[#allocation1] sm:$0xff] }
 0x6cc   :  { %v1187_v48 = vpack.c.bf16 %v1183_v47, %v1183_v47 }
 0x6ce   :  { %v1213_v51 = vunpack.c.l.b16 %v1187_v48 }
 0x6d0   :  { %v1214_v56 = vpack.c.b16 %v1213_v51, %v1213_v51 }
 0x707   :  { %v1009_v39 = vpop.f32.mrf.mxu2 }
 0x708   :  { %v1016_v10 = vrot.slane %v1009_v39, 1  ;;  %v1017_v11 = vrot.slane %v1009_v39, 2  ;;  %v1020_v38 = vrot.slane %v1009_v39, 5  ;;  %v1021_v12 = vrot.slane %v1009_v39, 6 }
 0x709   :  { %v1022_v43 = vrot.slane %v1009_v39, 7  ;;  %v3161_v13 = vadd.f32 %v1009_v39, %v3090_v20  ;;  %v1018_v14 = vrot.slane %v1009_v39, 3  ;;  %v1019_v17 = vrot.slane %v1009_v39, 4 }
 0x70a   :  { %v3163_v54 = vadd.f32 %v1016_v10, %v729_v32  ;;  %v3165_v18 = vadd.f32 %v1017_v11, %v730_v33  ;;  %v3167_v19 = vadd.f32 %v1020_v38, %v733_v34  ;;  %v3169_v22 = vadd.f32 %v1021_v12, %v734_v35  ;;  %v190_v10 = vld [vmem:[%s3838_s4 + $0xc] sm:$0xf] }
 0x70b   :  { %v3171_v6 = vadd.f32 %v1022_v43, %v735_v36  ;;  %v3173_v23 = vadd.f32 %v1018_v14, %v731_v40  ;;  %v3175_v24 = vadd.f32 %v1019_v17, %v732_v42  ;;  %v1295_v11 = vsel %vm636_vm9, %v190_v10, 0 }
 0x70f   :  { %v3193_v42 = vpop.f32.mrf.mxu2 }
 0x714   :  { %v1120_v25 = vpop.permute.xlu2 %1119  ;;  %v1115_v26 = vpop.permute.xlu1 %1114 }
 0x715   :  { %v1125_v20 = vsel %vm236_vm4, %v1120_v25, 0 }
 0x716   :  { %1134 = vmatpush.bf16.xpose.msra.mxu0 %v1125_v20 }
 0x71c   :  { %v1086_v30 = vpop.permute.xlu2 %1085 }
 0x71d   :  { %2637 = vmatmul.msk.bf16.vlgmr.msra.gmra.mxu0 %vm236_vm4, %v1115_v26 }
 0x720   :  { %v1091_v27 = vpop.permute.xlu0 %1090 }
 0x721   :  { %v1096_v29 = vsel %vm236_vm4, %v1091_v27, 0 }
 0x722   :  { %1105 = vmatpush.bf16.xpose.msra.mxu3 %v1096_v29 }
 0x729   :  { %2636 = vmatmul.msk.bf16.vlgmr.msra.gmra.mxu3 %vm236_vm4, %v1086_v30 }
 0x72a   :  { %1304 = vmatpush.bf16.msrb.mxu3 %v1295_v11 }
 0x79a   :  { %v1136_v37 = vpop.f32.mrf.mxu0 }
 0x79b   :  { %v1141_v41 = vmul.f32 0.35355338, %v1136_v37 }
 0x79d   :  { %v1143_v44 = vadd.f32 %v1141_v41, %v3006_v28 }
 0x79f   :  { %v1147_v45 = vsel %vm284_vm5, %v1143_v44, -inf }
 0x7a0   :  { %1148 = vmax.xlane.f32.xlu0 %v1147_v45 }
 0x7a2   :  { %v1138_v46 = vpop.f32.mrf.mxu0 }
 0x7ac   :  { %v1107_v49 = vpop.f32.mrf.mxu3 }
 0x7ad   :  { %v1140_v50 = vmul.f32 0.35355338, %v1107_v49 }
 0x7af   :  { %v1142_v52 = vadd.f32 %v1140_v50, %v3002_v21 }
 0x7b1   :  { %v1144_v55 = vsel %vm284_vm5, %v1142_v52, -inf }
 0x7b2   :  { %1145 = vmax.xlane.f32.xlu1 %v1144_v55 }
 0x7b4   :  { %1215 = vrot.lane.b32.xlu0 %v1214_v56, %s2790_s21  ;;  %v1109_v53 = vpop.f32.mrf.mxu3  ;;  %v2708_v56 = vld [vmem:[%s3839_s5] ss:$0 sm:$0xff] }
 0x813   :  { %v1149_v57 = vpop.xlane.xlu0 %1148 }
 0x814   :  { %v1151_v28 = vsub.f32 %v1143_v44, %v1149_v57  ;;  %v1343_v57 = vrot.slane %v2708_v56, 1 }
 0x816   :  { %v1154_v58 = vmul.f32 1.442695, %v1151_v28  ;;  %v1344_v28 = vrot.slane %v2708_v56, 2 }
 0x818   :  { %2739 = vpow2.f32 %v1154_v58  ;;  %v1345_v58 = vrot.slane %v2708_v56, 3 }
 0x81e   :  { %v2740_v59 = vpop.eup %2739 }
 0x81f   :  { %v1159_v60 = vsel %vm284_vm5, %v2740_v59, 0.0 }
 0x820   :  { %1160 = vadd.xlane.f32.xlu2 %v1159_v60 }
 0x825   :  { %v1146_v61 = vpop.xlane.xlu1 %1145 }
 0x826   :  { %v1216_v62 = vpop.permute.xlu0 %1215  ;;  %v1150_v63 = vsub.f32 %v1142_v52, %v1146_v61 }
 0x827   :  { %v1221_v21 = vand.u32 %v1216_v62, %v3025_v16 }
 0x828   :  { %v1152_v0 = vmul.f32 1.442695, %v1150_v63 }
 0x829   :  { %1230 = vmatpush.bf16.msra.mxu2 %v1221_v21 }
 0x82a   :  { %2741 = vpow2.f32 %v1152_v0  ;;  %v2777_v0 = vld [vmem:[%s3835_s0] sm:$0x1f] }
 0x82b   :  { %v1363_v1 = vrot.slane %v2777_v0, 1 }
 0x830   :  { %v2742_v2 = vpop.eup %2741 }
 0x831   :  { %v1156_v3 = vsel %vm284_vm5, %v2742_v2, 0.0 }
 0x832   :  { %1157 = vadd.xlane.f32.xlu1 %v1156_v3  ;;  %v1365_v3 = vrot.slane %v2777_v0, 3 }
 0x838   :  { %1191 = vrot.lane.b32.xlu2 %v1190_v5, %s2790_s21 }
 0x893   :  { %v1161_v7 = vpop.xlane.xlu2 %1160 }
 0x894   :  { %2743 = vrcp.f32 %v1161_v7 }
 0x89a   :  { %v2744_v9 = vpop.eup %2743 }
 0x89b   :  { %v1165_v32 = vmul.f32 %v2744_v9, %v2740_v59  ;;  %v1192_v33 = vpop.permute.xlu2 %1191  ;;  %v1346_v59 = vrot.slane %v2708_v56, 4 }
 0x89c   :  { %v1197_v34 = vand.u32 %v1192_v33, %v3025_v16 }
 0x89d   :  { %v1167_v35 = vpack.c.bf16 %v1165_v32, %v1165_v32  ;;  %v725_v32 = vadd.f32 %v3106_v15, %v3111_v31 }
 0x89e   :  { %1206 = vmatpush.bf16.msra.mxu1 %v1197_v34 }
 0x89f   :  { %2639 = vmatmul.msk.bf16.vlgmr.msra.gmra.mxu2 %vm334_vm8, %v1167_v35  ;;  %v736_v11 = vrot.slane %v725_v32, 1 }
 0x8a5   :  { %v1158_v36 = vpop.xlane.xlu1 %1157 }
 0x8a6   :  { %2745 = vrcp.f32 %v1158_v36 }
 0x8ac   :  { %v2746_v8 = vpop.eup %2745 }
 0x8ad   :  { %v1164_v39 = vmul.f32 %v2746_v8, %v2742_v2  ;;  %v1364_v2 = vrot.slane %v2777_v0, 2 }
 0x8af   :  { %v1166_v40 = vpack.c.bf16 %v1164_v39, %v1164_v39  ;;  %v1023_v39 = vrot.slane %v3193_v42, 1 }
 0x8b1   :  { %2638 = vmatmul.msk.bf16.vlgmr.msra.gmra.mxu1 %vm334_vm8, %v1166_v40 }
 0x922   :  { %v1232_v16 = vpop.f32.mrf.mxu2 }
 0x923   :  { %v1237_v38 = vpack.c.bf16 %v1232_v16, %v1232_v16 }
 0x925   :  { %v1241_v12 = vrot.slane %v1237_v38, 3 }
 0x927   :  { %v1254_v43 = vsel %vm70_vm1, %v1237_v38, %v1241_v12  ;;  %v1256_v14 = vsel %vm75_vm2, %v1237_v38, %v1241_v12  ;;  %v1259_v17 = vsel %vm79_vm0, %v1237_v38, %v1241_v12  ;;  %v1041_v12 = vadd.f32 %v1023_v39, %v736_v11 }
 0x928   :  { %v1258_v25 = vrot.slane %v1256_v14, 1  ;;  %v1268_v20 = vunpack.i.h.s16 %v1254_v43  ;;  %v1261_v26 = vrot.slane %v1259_v17, 2  ;;  %v1040_v14 = vadd.f32 %v3193_v42, %v725_v32 }
 0x92a   :  { %v1270_v27 = vunpack.i.h.s16 %v1258_v25  ;;  %v2641_v29 = vpack.i.b16 %v1258_v25, %v1268_v20  ;;  %v1234_v30 = vpop.f32.mrf.mxu2 }
 0x92b   :  { %v2778_v30 = vld [vmem:[%s3835_s0 + $0x8] sm:$0x1f] }
 0x92c   :  { %v2642_v37 = vpack.i.b16 %v1261_v26, %v1270_v27  ;;  %1287 = vst [vmem:[#allocation1 + $0x3] ss:$9 sm:$0xff] %v2641_v29  ;;  %v1370_v42 = vrot.slane %v2778_v30, 4 }
 0x92e   :  { %1290 = vst [vmem:[#allocation1 + $0x4] ss:$9 sm:$0xff] %v2642_v37  ;;  %v1208_v41 = vpop.f32.mrf.mxu1 }
 0x92f   :  { %v1236_v44 = vpack.c.bf16 %v1208_v41, %v1208_v41  ;;  %v1368_v41 = vrot.slane %v2778_v30, 2 }
 0x931   :  { %v1240_v45 = vrot.slane %v1236_v44, 3 }
 0x933   :  { %v1244_v46 = vsel %vm70_vm1, %v1236_v44, %v1240_v45  ;;  %v1246_v47 = vsel %vm75_vm2, %v1236_v44, %v1240_v45  ;;  %v1249_v48 = vsel %vm79_vm0, %v1236_v44, %v1240_v45 }
 0x934   :  { %v1248_v49 = vrot.slane %v1246_v47, 1  ;;  %v1251_v50 = vrot.slane %v1249_v48, 2  ;;  %1278 = vst [vmem:[#allocation1] ss:$9 sm:$0xff] %v1244_v46 }
 0x936   :  { %v2640_v51 = vpack.i.b16 %v1254_v43, %v1251_v50  ;;  %1281 = vst [vmem:[#allocation1 + $0x1] ss:$9 sm:$0xff] %v1248_v49  ;;  %v1210_v52 = vpop.f32.mrf.mxu1 }
 0x938   :  { %1284 = vst [vmem:[#allocation1 + $0x2] ss:$9 sm:$0xff] %v2640_v51 }
 0x93f   :  { %v1291_v55 = vld [vmem:[#allocation1] sm:$0xff] }
 0x940   :  { %2643 = vmatmul.msk.bf16.vlgmr.msrb.gmra.mxu3 %vm236_vm4, %v1291_v55 }
 0x9c3   :  { %v1306_v53 = vpop.f32.mrf.mxu3 }
 0x9c4   :  { %v1313_v60 = vrot.slane %v1306_v53, 1  ;;  %v1314_v61 = vrot.slane %v1306_v53, 2  ;;  %v1315_v62 = vrot.slane %v1306_v53, 3  ;;  %v1316_v63 = vrot.slane %v1306_v53, 4 }
 0x9c5   :  { %v1329_v21 = vadd.f32 %v1306_v53, %v3161_v13  ;;  %v1366_v13 = vrot.slane %v2777_v0, 4  ;;  %v1317_v40 = vrot.slane %v1306_v53, 5  ;;  %v1319_v15 = vrot.slane %v1306_v53, 7 }
 0x9c6   :  { %v1330_v4 = vadd.f32 %v1313_v60, %v3163_v54  ;;  %v1331_v5 = vadd.f32 %v1314_v61, %v3165_v18  ;;  %v1332_v7 = vadd.f32 %v1315_v62, %v3173_v23  ;;  %v1333_v9 = vadd.f32 %v1316_v63, %v3175_v24 }
 0x9c7   :  { %v1351_v33 = vadd.f32 %v2708_v56, %v1329_v21  ;;  %v1318_v54 = vrot.slane %v1306_v53, 6  ;;  %v1334_v43 = vadd.f32 %v1317_v40, %v3167_v19  ;;  %v1336_v25 = vadd.f32 %v1319_v15, %v3171_v6 }
 0x9c8   :  { %v1352_v34 = vadd.f32 %v1343_v57, %v1330_v4  ;;  %v1353_v35 = vadd.f32 %v1344_v28, %v1331_v5  ;;  %v1354_v36 = vadd.f32 %v1345_v58, %v1332_v7  ;;  %v1355_v8 = vadd.f32 %v1346_v59, %v1333_v9 }
 0x9c9   :  { %v3220_v10 = vadd.f32 %v2777_v0, %v1351_v33  ;;  %v1335_v17 = vadd.f32 %v1318_v54, %v3169_v22  ;;  %v1356_v27 = vadd.f32 %v2708_v56, %v1334_v43  ;;  %v1367_v19 = vrot.slane %v2778_v30, 1 }
 0x9ca   :  { %v3222_v18 = vadd.f32 %v1363_v1, %v1352_v34  ;;  %v3224_v23 = vadd.f32 %v1364_v2, %v1353_v35  ;;  %v3226_v24 = vadd.f32 %v1365_v3, %v1354_v36  ;;  %v1383_v31 = vadd.f32 %v1366_v13, %v1355_v8 }
 0x9cb   :  { %1399 = vst [vmem:[#allocation1] ss:$9 sm:$0xff] %v3220_v10  ;;  %v1308_v16 = vpop.f32.mrf.mxu3  ;;  %v1357_v29 = vadd.f32 %v1343_v57, %v1335_v17  ;;  %v1358_v37 = vadd.f32 %v1344_v28, %v1336_v25  ;;  %v1369_v22 = vrot.slane %v2778_v30, 3  ;;  %v1384_v46 = vadd.f32 %v2778_v30, %v1356_v27 }
 0x9cc   :  { %1401 = vst [vmem:[#allocation1 + $0x1] ss:$9 sm:$0xff] %v3222_v18  ;;  %v1320_v38 = vrot.slane %v1308_v16, 1  ;;  %v1337_v26 = vadd.f32 %v1308_v16, %v1040_v14  ;;  %v2791_v56 = vmov 32.0  }
 0x9cd   :  { %1403 = vst [vmem:[#allocation1 + $0x2] ss:$9 sm:$0xff] %v3224_v23  ;;  %v1385_v47 = vadd.f32 %v1367_v19, %v1357_v29  ;;  %v1386_v48 = vadd.f32 %v1368_v41, %v1358_v37  ;;  %2747 = vrcp.f32 %v2791_v56 }
 0x9ce   :  { %1405 = vst [vmem:[#allocation1 + $0x3] ss:$9 sm:$0xff] %v3226_v24  ;;  %v1338_v20 = vadd.f32 %v1320_v38, %v1041_v12  ;;  %v1359_v45 = vadd.f32 %v1345_v58, %v1337_v26 }
 0x9cf   :  { %1407 = vst [vmem:[#allocation1 + $0x4] ss:$9 sm:$0xff] %v1383_v31 }
 0x9d0   :  { %v1360_v44 = vadd.f32 %v1346_v59, %v1338_v20  ;;  %v1387_v51 = vadd.f32 %v1369_v22, %v1359_v45 }
 0x9d2   :  { %v1388_v49 = vadd.f32 %v1370_v42, %v1360_v44 }
 0x9d3   :  { %v2748_v53 = vpop.eup %2747 }
 0x9d4   :  { %v1425_v57 = vmul.f32 32.0, %v2748_v53  ;;  %vm1429_vm11 = vweird.f32 %v2748_v53 }
 0x9d6   :  { %v1408_v6 = vld [vmem:[#allocation1] sm:$0xff]  ;;  %v1426_v28 = vsub.f32 1.0, %v1425_v57 }
 0x9d7   :  { %1409 = vst [vmem:[#allocation1] ss:$9 sm:$0xff] %v1384_v46  ;;  %v1418_v50 = vsel %vm1417_vm10, %v1408_v6, 0.0 }
 0x9d8   :  { %1410 = vst [vmem:[#allocation1 + $0x1] ss:$9 sm:$0xff] %v1385_v47  ;;  %1419 = vadd.xlane.f32.xlu1 %v1418_v50  ;;  %v1427_v58 = vmul.f32 %v2748_v53, %v1426_v28 }
 0x9d9   :  { %1411 = vst [vmem:[#allocation1 + $0x2] ss:$9 sm:$0xff] %v1386_v48 }
 0x9da   :  { %1412 = vst [vmem:[#allocation1 + $0x3] ss:$9 sm:$0xff] %v1387_v51  ;;  %v1428_v59 = vadd.f32 %v2748_v53, %v1427_v58 }
 0x9db   :  { %1413 = vst [vmem:[#allocation1 + $0x4] ss:$9 sm:$0xff] %v1388_v49 }
 0x9dc   :  { %v3241_v60 = vsel %vm1429_vm11, %v2748_v53, %v1428_v59 }
 0x9e2   :  { %v1414_v52 = vld [vmem:[#allocation1] sm:$0xff] }
 0x9e3   :  { %v1421_v55 = vsel %vm1417_vm10, %v1414_v52, 0.0 }
 0x9e4   :  { %1422 = vadd.xlane.f32.xlu1 %v1421_v55 }
 0xa4b   :  { %v1420_v61 = vpop.xlane.xlu1 %1419 }
 0xa4c   :  { %v1431_v62 = vmul.f32 %v3241_v60, %v1420_v61 }
 0xa4e   :  { %v1435_v63 = vperm.slane %v1431_v62, 0  ;;  %v1436_v21 = vperm.slane %v1431_v62, 1  ;;  %v1437_v0 = vperm.slane %v1431_v62, 2  ;;  %v1438_v1 = vperm.slane %v1431_v62, 3 }
 0xa4f   :  { %v1439_v2 = vperm.slane %v1431_v62, 4 }
 0xa50   :  { %v3245_v3 = vsub.f32 %v3220_v10, %v1435_v63  ;;  %v3248_v4 = vsub.f32 %v3222_v18, %v1436_v21  ;;  %v3251_v5 = vsub.f32 %v3224_v23, %v1437_v0  ;;  %v3254_v7 = vsub.f32 %v3226_v24, %v1438_v1  ;;  %v2689_v0 = vld [vmem:[%s3843_s8 + $0x8] sm:$0xff]  ;;  %v2709_v1 = vld [vmem:[%s3840_s6] ss:$0 sm:$0xff] }
 0xa51   :  { %v3256_v9 = vsub.f32 %v1383_v31, %v1439_v2  ;;  %1713 = vmatpush.bf16.msrb.mxu0 %v2689_v0 }
 0xa52   :  { %v1465_v32 = vmul.f32 %v3245_v3, %v3245_v3  ;;  %v1466_v33 = vmul.f32 %v3248_v4, %v3248_v4  ;;  %v1467_v13 = vmul.f32 %v3251_v5, %v3251_v5  ;;  %v1468_v34 = vmul.f32 %v3254_v7, %v3254_v7 }
 0xa53   :  { %v1469_v35 = vmul.f32 %v3256_v9, %v3256_v9 }
 0xa54   :  { %1485 = vst [vmem:[#allocation1] ss:$9 sm:$0xff] %v1465_v32 }
 0xa55   :  { %1487 = vst [vmem:[#allocation1 + $0x1] ss:$9 sm:$0xff] %v1466_v33  ;;  %v2710_v33 = vld [vmem:[%s3841_s7] ss:$0 sm:$0xff] }
 0xa56   :  { %1489 = vst [vmem:[#allocation1 + $0x2] ss:$9 sm:$0xff] %v1467_v13 }
 0xa57   :  { %1491 = vst [vmem:[#allocation1 + $0x3] ss:$9 sm:$0xff] %v1468_v34  ;;  %v1423_v36 = vpop.xlane.xlu1 %1422 }
 0xa58   :  { %1493 = vst [vmem:[#allocation1 + $0x4] ss:$9 sm:$0xff] %v1469_v35  ;;  %v1432_v8 = vmul.f32 %v3241_v60, %v1423_v36 }
 0xa5a   :  { %v1440_v39 = vperm.slane %v1432_v8, 0  ;;  %v1441_v40 = vperm.slane %v1432_v8, 1  ;;  %v1442_v10 = vperm.slane %v1432_v8, 2  ;;  %v1443_v54 = vperm.slane %v1432_v8, 3 }
 0xa5b   :  { %v1444_v18 = vperm.slane %v1432_v8, 4 }
 0xa5c   :  { %v3269_v23 = vsub.f32 %v1384_v46, %v1440_v39  ;;  %v3271_v24 = vsub.f32 %v1385_v47, %v1441_v40  ;;  %v3273_v11 = vsub.f32 %v1386_v48, %v1442_v10  ;;  %v3275_v15 = vsub.f32 %v1387_v51, %v1443_v54 }
 0xa5d   :  { %v3277_v31 = vsub.f32 %v1388_v49, %v1444_v18 }
 0xa5e   :  { %v1470_v16 = vmul.f32 %v3269_v23, %v3269_v23  ;;  %v1471_v38 = vmul.f32 %v3271_v24, %v3271_v24  ;;  %v1472_v12 = vmul.f32 %v3273_v11, %v3273_v11  ;;  %v1473_v14 = vmul.f32 %v3275_v15, %v3275_v15 }
 0xa5f   :  { %v1494_v43 = vld [vmem:[#allocation1] sm:$0xff]  ;;  %v1474_v17 = vmul.f32 %v3277_v31, %v3277_v31 }
 0xa60   :  { %1495 = vst [vmem:[#allocation1] ss:$9 sm:$0xff] %v1470_v16  ;;  %v1503_v25 = vsel %vm1417_vm10, %v1494_v43, 0.0 }
 0xa61   :  { %1496 = vst [vmem:[#allocation1 + $0x1] ss:$9 sm:$0xff] %v1471_v38  ;;  %1504 = vadd.xlane.f32.xlu0 %v1503_v25 }
 0xa62   :  { %1497 = vst [vmem:[#allocation1 + $0x2] ss:$9 sm:$0xff] %v1472_v12 }
 0xa63   :  { %1498 = vst [vmem:[#allocation1 + $0x3] ss:$9 sm:$0xff] %v1473_v14 }
 0xa64   :  { %1499 = vst [vmem:[#allocation1 + $0x4] ss:$9 sm:$0xff] %v1474_v17 }
 0xa6b   :  { %v1500_v20 = vld [vmem:[#allocation1] sm:$0xff] }
 0xa6c   :  { %v1506_v26 = vsel %vm1417_vm10, %v1500_v20, 0.0 }
 0xa6d   :  { %1507 = vadd.xlane.f32.xlu1 %v1506_v26 }
 0xad4   :  { %v1505_v27 = vpop.xlane.xlu0 %1504 }
 0xad5   :  { %v1509_v29 = vmul.f32 %v1505_v27, %v3241_v60 }
 0xad7   :  { %v1511_v30 = vadd.f32 1e-12, %v1509_v29 }
 0xad9   :  { %2749 = vrsqrt.f32 %v1511_v30  ;;  %vm1519_vm13 = vweird.f32 %v1511_v30 }
 0xadf   :  { %v2750_v19 = vpop.eup %2749 }
 0xae0   :  { %v1514_v37 = vmul.f32 %v2750_v19, %v1511_v30  ;;  %v1508_v41 = vpop.xlane.xlu1 %1507  ;;  %vm1520_vm12 = vweird.f32 %v2750_v19 }
 0xae1   :  { %v1510_v44 = vmul.f32 %v1508_v41, %v3241_v60  ;;  %vm1521_vm14 = vmor %vm1519_vm13, %vm1520_vm12 }
 0xae2   :  { %v1515_v42 = vmul.f32 %v2750_v19, %v1514_v37 }
 0xae3   :  { %v1512_v45 = vadd.f32 1e-12, %v1510_v44  ;;  %v2711_v44 = vld [vmem:[%s3842_s9] ss:$0 sm:$0xff] }
 0xae4   :  { %v1516_v22 = vmul.f32 0.5, %v1515_v42  ;;  %v1648_v42 = vrot.slane %v2711_v44, 1 }
 0xae5   :  { %2751 = vrsqrt.f32 %v1512_v45  ;;  %vm1529_vm4 = vweird.f32 %v1512_v45 }
 0xae6   :  { %v1517_v46 = vsub.f32 1.5, %v1516_v22 }
 0xae8   :  { %v1518_v47 = vmul.f32 %v2750_v19, %v1517_v46  ;;  %v1650_v46 = vrot.slane %v2711_v44, 3 }
 0xaea   :  { %v1522_v6 = vsel %vm1521_vm14, %v2750_v19, %v1518_v47  ;;  %v1651_v47 = vrot.slane %v2711_v44, 4 }
 0xaeb   :  { %v2752_v48 = vpop.eup %2751  ;;  %v1535_v49 = vperm.slane %v1522_v6, 0  ;;  %v1536_v50 = vperm.slane %v1522_v6, 1  ;;  %v1537_v51 = vperm.slane %v1522_v6, 2  ;;  %v1538_v52 = vperm.slane %v1522_v6, 3 }
 0xaec   :  { %v1539_v55 = vperm.slane %v1522_v6, 4  ;;  %v1524_v56 = vmul.f32 %v2752_v48, %v1512_v45  ;;  %vm1530_vm15 = vweird.f32 %v2752_v48  ;;  %v1649_v45 = vrot.slane %v2711_v44, 2 }
 0xaed   :  { %v1555_v53 = vmul.f32 %v1535_v49, %v3245_v3  ;;  %v1556_v57 = vmul.f32 %v1536_v50, %v3248_v4  ;;  %v1557_v28 = vmul.f32 %v1537_v51, %v3251_v5  ;;  %v1558_v58 = vmul.f32 %v1538_v52, %v3254_v7  ;;  %vm1531_vm5 = vmor %vm1529_vm4, %vm1530_vm15 }
 0xaee   :  { %v1525_v59 = vmul.f32 %v2752_v48, %v1524_v56  ;;  %v1559_v61 = vmul.f32 %v1539_v55, %v3256_v9  ;;  %v2688_v9 = vld [vmem:[%s3843_s8] sm:$0xff] }
 0xaef   :  { %1579 = vst [vmem:[#allocation1] ss:$9 sm:$0xff] %v1555_v53  ;;  %1714 = vmatpush.bf16.msrb.mxu0 %v2688_v9 }
 0xaf0   :  { %1581 = vst [vmem:[#allocation1 + $0x1] ss:$9 sm:$0xff] %v1556_v57  ;;  %v1526_v62 = vmul.f32 0.5, %v1525_v59 }
 0xaf1   :  { %1583 = vst [vmem:[#allocation1 + $0x2] ss:$9 sm:$0xff] %v1557_v28 }
 0xaf2   :  { %1585 = vst [vmem:[#allocation1 + $0x3] ss:$9 sm:$0xff] %v1558_v58  ;;  %v1527_v63 = vsub.f32 1.5, %v1526_v62 }
 0xaf3   :  { %1587 = vst [vmem:[#allocation1 + $0x4] ss:$9 sm:$0xff] %v1559_v61 }
 0xaf4   :  { %v1528_v21 = vmul.f32 %v2752_v48, %v1527_v63 }
 0xaf6   :  { %v1532_v2 = vsel %vm1531_vm5, %v2752_v48, %v1528_v21 }
 0xaf7   :  { %v1540_v3 = vperm.slane %v1532_v2, 0  ;;  %v1541_v4 = vperm.slane %v1532_v2, 1  ;;  %v1542_v5 = vperm.slane %v1532_v2, 2  ;;  %v1543_v7 = vperm.slane %v1532_v2, 3 }
 0xaf8   :  { %v1544_v32 = vperm.slane %v1532_v2, 4 }
 0xaf9   :  { %v1560_v13 = vmul.f32 %v1540_v3, %v3269_v23  ;;  %v1561_v34 = vmul.f32 %v1541_v4, %v3271_v24  ;;  %v1562_v35 = vmul.f32 %v1542_v5, %v3273_v11  ;;  %v1563_v8 = vmul.f32 %v1543_v7, %v3275_v15 }
 0xafa   :  { %v1588_v36 = vld [vmem:[#allocation1] sm:$0xff]  ;;  %v1564_v40 = vmul.f32 %v1544_v32, %v3277_v31 }
 0xafb   :  { %v1597_v39 = vmul.f32 %v2709_v1, %v1588_v36  ;;  %1589 = vst [vmem:[#allocation1] ss:$9 sm:$0xff] %v1560_v13 }
 0xafc   :  { %1590 = vst [vmem:[#allocation1 + $0x1] ss:$9 sm:$0xff] %v1561_v34 }
 0xafd   :  { %v3315_v10 = vadd.f32 %v2710_v33, %v1597_v39  ;;  %1591 = vst [vmem:[#allocation1 + $0x2] ss:$9 sm:$0xff] %v1562_v35 }
 0xafe   :  { %1592 = vst [vmem:[#allocation1 + $0x3] ss:$9 sm:$0xff] %v1563_v8 }
 0xaff   :  { %v1605_v54 = vpack.c.bf16 %v3315_v10, %v3315_v10  ;;  %1593 = vst [vmem:[#allocation1 + $0x4] ss:$9 sm:$0xff] %v1564_v40 }
 0xb01   :  { %v1616_v18 = vrot.slane %v1605_v54, 3 }
 0xb03   :  { %v1622_v23 = vsel %vm75_vm2, %v1605_v54, %v1616_v18  ;;  %v1620_v24 = vsel %vm70_vm1, %v1605_v54, %v1616_v18  ;;  %v1625_v38 = vsel %vm79_vm0, %v1605_v54, %v1616_v18 }
 0xb04   :  { %v1624_v11 = vrot.slane %v1622_v23, 1  ;;  %v1627_v14 = vrot.slane %v1625_v38, 2 }
 0xb06   :  { %v1594_v15 = vld [vmem:[#allocation1] sm:$0xff] }
 0xb07   :  { %v1598_v16 = vmul.f32 %v2709_v1, %v1594_v15  ;;  %1658 = vst [vmem:[#allocation1] ss:$9 sm:$0xff] %v1620_v24 }
 0xb08   :  { %1661 = vst [vmem:[#allocation1 + $0x1] ss:$9 sm:$0xff] %v1624_v11 }
 0xb09   :  { %v3321_v31 = vadd.f32 %v2710_v33, %v1598_v16 }
 0xb0b   :  { %v1606_v12 = vpack.c.bf16 %v3321_v31, %v3321_v31 }
 0xb0d   :  { %v1617_v43 = vrot.slane %v1606_v12, 3 }
 0xb0f   :  { %v1630_v17 = vsel %vm70_vm1, %v1606_v12, %v1617_v43  ;;  %v1632_v25 = vsel %vm75_vm2, %v1606_v12, %v1617_v43  ;;  %v1635_v20 = vsel %vm79_vm0, %v1606_v12, %v1617_v43 }
 0xb10   :  { %v1634_v26 = vrot.slane %v1632_v25, 1  ;;  %v1644_v27 = vunpack.i.h.s16 %v1630_v17  ;;  %v2644_v29 = vpack.i.b16 %v1630_v17, %v1627_v14  ;;  %v1637_v30 = vrot.slane %v1635_v20, 2 }
 0xb12   :  { %v1646_v19 = vunpack.i.h.s16 %v1634_v26  ;;  %v2645_v37 = vpack.i.b16 %v1634_v26, %v1644_v27  ;;  %1664 = vst [vmem:[#allocation1 + $0x2] ss:$9 sm:$0xff] %v2644_v29 }
 0xb14   :  { %v2646_v41 = vpack.i.b16 %v1637_v30, %v1646_v19  ;;  %1667 = vst [vmem:[#allocation1 + $0x3] ss:$9 sm:$0xff] %v2645_v37 }
 0xb16   :  { %1670 = vst [vmem:[#allocation1 + $0x4] ss:$9 sm:$0xff] %v2646_v41 }
 0xb1d   :  { %v1671_v22 = vld [vmem:[#allocation1] sm:$0xff] }
 0xb1e   :  { %2655 = vmatmul.msk.bf16.vlgmr.msrb.gmra.mxu0 %vm160_vm3, %v1671_v22  ;;  %1684 = vst [vmem:[#allocation1] ss:$9 sm:$0xff] %v2711_v44 }
 0xb1f   :  { %1686 = vst [vmem:[#allocation1 + $0x1] ss:$9 sm:$0xff] %v1648_v42 }
 0xb20   :  { %1688 = vst [vmem:[#allocation1 + $0x2] ss:$9 sm:$0xff] %v1649_v45 }
 0xb21   :  { %1690 = vst [vmem:[#allocation1 + $0x3] ss:$9 sm:$0xff] %v1650_v46 }
 0xb22   :  { %1692 = vst [vmem:[#allocation1 + $0x4] ss:$9 sm:$0xff] %v1651_v47 }
 0xb23   :  { %1694 = vst [vmem:[#allocation1 + $0x5] ss:$9 sm:$0xff] %v2711_v44 }
 0xb24   :  { %1696 = vst [vmem:[#allocation1 + $0x6] ss:$9 sm:$0xff] %v1648_v42 }
 0xb25   :  { %1698 = vst [vmem:[#allocation1 + $0x7] ss:$9 sm:$0xff] %v1649_v45 }
 0xb2c   :  { %v1699_v6 = vld [vmem:[#allocation1] sm:$0xff] }
 0xb2d   :  { %1700 = vst [vmem:[#allocation1] ss:$9 sm:$0xff] %v1650_v46 }
 0xb2e   :  { %1701 = vst [vmem:[#allocation1 + $0x1] ss:$9 sm:$0xff] %v1651_v47 }
 0xb9b   :  { %v1716_v48 = vpop.f32.mrf.mxu0 }
 0xb9c   :  { %v3333_v49 = vadd.f32 %v1716_v48, %v1699_v6 }
 0xb9e   :  { %v1723_v50 = vrot.slane %v3333_v49, 1  ;;  %v1724_v51 = vrot.slane %v3333_v49, 2  ;;  %v1725_v52 = vrot.slane %v3333_v49, 3  ;;  %v3339_v55 = vmul.f32 0.70710677, %v3333_v49 }
 0xb9f   :  { %v1726_v0 = vrot.slane %v3333_v49, 4 }
 0xba0   :  { %v3343_v56 = vmul.f32 0.70710677, %v1723_v50  ;;  %v3347_v53 = vmul.f32 0.70710677, %v1724_v51  ;;  %v3351_v57 = vmul.f32 0.70710677, %v1725_v52  ;;  %v1759_v28 = vmul.f32 %v3339_v55, %v3339_v55 }
 0xba1   :  { %v3394_v6 = vmul.f32 0.70710677, %v1726_v0 }
 0xba2   :  { %v1799_v58 = vmul.f32 %v3343_v56, %v3343_v56  ;;  %v1839_v59 = vmul.f32 %v3347_v53, %v3347_v53  ;;  %v1879_v61 = vmul.f32 %v3351_v57, %v3351_v57  ;;  %v3361_v62 = vmin.f32 %v1759_v28, 16.0 }
 0xba4   :  { %v3363_v63 = vmin.f32 %v1799_v58, 16.0  ;;  %v3365_v21 = vmin.f32 %v1839_v59, 16.0  ;;  %v1761_v1 = vmul.f32 2.1237322e-06, %v3361_v62  ;;  %v1772_v2 = vmul.f32 3.8918573e-05, %v3361_v62 }
 0xba5   :  { %v3370_v3 = vmin.f32 %v1879_v61, 16.0  ;;  %v1727_v59 = vrot.slane %v3333_v49, 5 }
 0xba6   :  { %v1801_v4 = vmul.f32 2.1237322e-06, %v3363_v63  ;;  %v1812_v5 = vmul.f32 3.8918573e-05, %v3363_v63  ;;  %v1841_v7 = vmul.f32 2.1237322e-06, %v3365_v21 }
 0xba7   :  { %v1762_v9 = vadd.f32 0.00028619796, %v1761_v1  ;;  %v1773_v32 = vadd.f32 0.001143296, %v1772_v2  ;;  %v1852_v33 = vmul.f32 3.8918573e-05, %v3365_v21 }
 0xba8   :  { %v1802_v13 = vadd.f32 0.00028619796, %v1801_v4  ;;  %v1813_v34 = vadd.f32 0.001143296, %v1812_v5  ;;  %v1842_v35 = vadd.f32 0.00028619796, %v1841_v7 }
 0xba9   :  { %v1763_v36 = vmul.f32 %v1762_v9, %v3361_v62  ;;  %v1774_v8 = vmul.f32 %v1773_v32, %v3361_v62  ;;  %v1853_v39 = vadd.f32 0.001143296, %v1852_v33  ;;  %v1881_v40 = vmul.f32 2.1237322e-06, %v3370_v3 }
 0xbaa   :  { %v1803_v54 = vmul.f32 %v1802_v13, %v3363_v63  ;;  %v1814_v18 = vmul.f32 %v1813_v34, %v3363_v63  ;;  %v1843_v23 = vmul.f32 %v1842_v35, %v3365_v21  ;;  %v1892_v24 = vmul.f32 3.8918573e-05, %v3370_v3 }
 0xbab   :  { %v1764_v11 = vadd.f32 0.0036580483, %v1763_v36  ;;  %v1775_v15 = vadd.f32 0.014752088, %v1774_v8  ;;  %v1854_v16 = vmul.f32 %v1853_v39, %v3365_v21  ;;  %v1882_v38 = vadd.f32 0.00028619796, %v1881_v40 }
 0xbac   :  { %v1804_v12 = vadd.f32 0.0036580483, %v1803_v54  ;;  %v1815_v43 = vadd.f32 0.014752088, %v1814_v18  ;;  %v1844_v14 = vadd.f32 0.0036580483, %v1843_v23  ;;  %v1919_v36 = vmul.f32 %v3394_v6, %v3394_v6 }
 0xbad   :  { %v1765_v17 = vmul.f32 %v1764_v11, %v3361_v62  ;;  %v1776_v25 = vmul.f32 %v1775_v15, %v3361_v62  ;;  %v1855_v20 = vadd.f32 0.014752088, %v1854_v16  ;;  %v1883_v26 = vmul.f32 %v1882_v38, %v3370_v3 }
 0xbae   :  { %v1805_v27 = vmul.f32 %v1804_v12, %v3363_v63  ;;  %v1816_v29 = vmul.f32 %v1815_v43, %v3363_v63  ;;  %v1845_v30 = vmul.f32 %v1844_v14, %v3365_v21  ;;  %v1893_v19 = vadd.f32 0.001143296, %v1892_v24 }
 0xbaf   :  { %v1766_v37 = vadd.f32 0.05243302, %v1765_v17  ;;  %v1777_v41 = vadd.f32 0.112945676, %v1776_v25  ;;  %v1856_v44 = vmul.f32 %v1855_v20, %v3365_v21  ;;  %v1884_v42 = vadd.f32 0.0036580483, %v1883_v26 }
 0xbb0   :  { %v1806_v45 = vadd.f32 0.05243302, %v1805_v27  ;;  %v1817_v22 = vadd.f32 0.112945676, %v1816_v29  ;;  %v1846_v46 = vadd.f32 0.05243302, %v1845_v30  ;;  %v1894_v47 = vmul.f32 %v1893_v19, %v3370_v3 }
 0xbb1   :  { %v1767_v48 = vmul.f32 %v1766_v37, %v3361_v62  ;;  %v1778_v28 = vmul.f32 %v1777_v41, %v3361_v62  ;;  %v1857_v58 = vadd.f32 0.112945676, %v1856_v44  ;;  %v1885_v7 = vmul.f32 %v1884_v42, %v3370_v3 }
 0xbb2   :  { %v1818_v61 = vmul.f32 %v1817_v22, %v3363_v63  ;;  %v1895_v1 = vadd.f32 0.014752088, %v1894_v47  ;;  %v1807_v4 = vmul.f32 %v1806_v45, %v3363_v63  ;;  %v1847_v32 = vmul.f32 %v1846_v46, %v3365_v21 }
 0xbb3   :  { %v1779_v2 = vadd.f32 0.4994258, %v1778_v28  ;;  %v1858_v5 = vmul.f32 %v1857_v58, %v3365_v21  ;;  %v1768_v13 = vadd.f32 0.18741608, %v1767_v48  ;;  %v3410_v8 = vmul.f32 0.70710677, %v1727_v59 }
 0xbb4   :  { %v1819_v9 = vadd.f32 0.4994258, %v1818_v61  ;;  %v1896_v33 = vmul.f32 %v1895_v1, %v3370_v3  ;;  %v1728_v54 = vrot.slane %v3333_v49, 6  ;;  %v1808_v23 = vadd.f32 0.18741608, %v1807_v4 }
 0xbb5   :  { %v1780_v34 = vmul.f32 %v1779_v2, %v3361_v62  ;;  %v1859_v35 = vadd.f32 0.4994258, %v1858_v5  ;;  %v1886_v24 = vadd.f32 0.05243302, %v1885_v7  ;;  %v1848_v15 = vadd.f32 0.18741608, %v1847_v32 }
 0xbb6   :  { %v1820_v39 = vmul.f32 %v1819_v9, %v3363_v63  ;;  %v1897_v40 = vadd.f32 0.112945676, %v1896_v33  ;;  %v1729_v12 = vrot.slane %v3333_v49, 7  ;;  %v1769_v43 = vmul.f32 %v1768_v13, %v3361_v62 }
 0xbb7   :  { %v3414_v18 = vadd.f32 1.0, %v1780_v34  ;;  %v1860_v16 = vmul.f32 %v1859_v35, %v3365_v21  ;;  %v3423_v14 = vmin.f32 %v1919_v36, 16.0  ;;  %v3426_v17 = vmul.f32 0.5, %v3333_v49  ;;  %v2690_v49 = vld [vmem:[%s3845_s10] sm:$0xff] }
 0xbb8   :  { %v3416_v11 = vadd.f32 1.0, %v1820_v39  ;;  %v1898_v38 = vmul.f32 %v1897_v40, %v3370_v3  ;;  %v3430_v25 = vmul.f32 0.5, %v1723_v50  ;;  %v1959_v20 = vmul.f32 %v3410_v8, %v3410_v8 }
 0xbb9   :  { %2753 = vrcp.f32 %v3414_v18  ;;  %v3437_v26 = vmul.f32 0.5, %v1724_v51  ;;  %v3441_v62 = vmul.f32 0.5, %v1725_v52  ;;  %v3445_v27 = vmul.f32 0.70710677, %v1728_v54 }
 0xbba   :  { %2755 = vrcp.f32 %v3416_v11  ;;  %v1809_v50 = vmul.f32 %v1808_v23, %v3363_v63  ;;  %v1849_v29 = vmul.f32 %v1848_v15, %v3365_v21  ;;  %v3449_v30 = vadd.f32 1.0, %v1860_v16 }
 0xbbb   :  { %v1887_v19 = vmul.f32 %v1886_v24, %v3370_v3  ;;  %v1899_v37 = vadd.f32 0.4994258, %v1898_v38  ;;  %v1770_v41 = vadd.f32 1.1283791, %v1769_v43  ;;  %v1921_v51 = vmul.f32 2.1237322e-06, %v3423_v14 }
 0xbbc   :  { %v1932_v44 = vmul.f32 3.8918573e-05, %v3423_v14  ;;  %v3456_v52 = vmul.f32 0.5, %v1726_v0  ;;  %v3460_v42 = vmul.f32 0.70710677, %v1729_v12  ;;  %2757 = vrcp.f32 %v3449_v30 }
 0xbbd   :  { %v3463_v63 = vmin.f32 %v1959_v20, 16.0  ;;  %v1810_v45 = vadd.f32 1.1283791, %v1809_v50  ;;  %v1900_v22 = vmul.f32 %v1899_v37, %v3370_v3  ;;  %v1922_v46 = vadd.f32 0.00028619796, %v1921_v51 }
 0xbbe   :  { %v1933_v47 = vadd.f32 0.001143296, %v1932_v44  ;;  %v1850_v28 = vadd.f32 1.1283791, %v1849_v29  ;;  %v1888_v58 = vadd.f32 0.18741608, %v1887_v19  ;;  %v1999_v61 = vmul.f32 %v3445_v27, %v3445_v27 }
 0xbbf   :  { %v3465_v21 = vpop.eup %2753  ;;  %v3475_v1 = vmul.f32 %v1770_v41, %v3339_v55  ;;  %v1791_v2 = vand.u32 2147483647, %v3414_v18  ;;  %v3480_v5 = vadd.f32 1.0, %v1900_v22  ;;  %v1793_v9 = vand.u32 2147483648, %v3414_v18 }
 0xbc0   :  { %v3468_v48 = vpop.eup %2755  ;;  %v1783_v0 = vmul.f32 %v3465_v21, %v3414_v18  ;;  %v1923_v32 = vmul.f32 %v1922_v46, %v3423_v14  ;;  %v1934_v33 = vmul.f32 %v1933_v47, %v3423_v14  ;;  %vm1787_vm3 = vweird.f32 %v3414_v18 }
 0xbc1   :  { %v1823_v4 = vmul.f32 %v3468_v48, %v3416_v11  ;;  %v3487_v13 = vmul.f32 %v1810_v45, %v3343_v56  ;;  %2759 = vrcp.f32 %v3480_v5  ;;  %v1961_v34 = vmul.f32 2.1237322e-06, %v3463_v63 }
 0xbc2   :  { %v1784_v7 = vsub.f32 1.0, %v1783_v0  ;;  %v3491_v35 = vpop.eup %2757  ;;  %vm1827_vm6 = vweird.f32 %v3416_v11  ;;  %v1831_v36 = vand.u32 2147483647, %v3416_v11  ;;  %v1924_v39 = vadd.f32 0.0036580483, %v1923_v32 }
 0xbc3   :  { %v1824_v55 = vsub.f32 1.0, %v1823_v4  ;;  %v1935_v40 = vadd.f32 0.014752088, %v1934_v33  ;;  %v1833_v23 = vand.u32 2147483648, %v3416_v11  ;;  %v3497_v24 = vmul.f32 %v1850_v28, %v3347_v53 }
 0xbc4   :  { %v1863_v56 = vmul.f32 %v3491_v35, %v3449_v30  ;;  %v1889_v15 = vmul.f32 %v1888_v58, %v3370_v3  ;;  %v1785_v16 = vmul.f32 %v3465_v21, %v1784_v7  ;;  %v1925_v43 = vmul.f32 %v1924_v39, %v3423_v14 }
 0xbc5   :  { %v1825_v38 = vmul.f32 %v3468_v48, %v1824_v55  ;;  %v1936_v20 = vmul.f32 %v1935_v40, %v3423_v14  ;;  %v1794_v50 = vor.u32 1.1754944e-38, %v1793_v9  ;;  %v1871_v19 = vand.u32 2147483647, %v3449_v30 }
 0xbc6   :  { %v1864_v29 = vsub.f32 1.0, %v1863_v56  ;;  %v1962_v37 = vadd.f32 0.00028619796, %v1961_v34  ;;  %vm3507_vm7 = vcmp.eq.f32.partialorder %v1791_v2, 8.507059e+37  ;;  %vm3511_vm8 = vcmp.eq.f32.partialorder %v1831_v36, 8.507059e+37 }
 0xbc7   :  { %v1873_v3 = vand.u32 2147483648, %v3449_v30  ;;  %v1937_v51 = vadd.f32 0.112945676, %v1936_v20  ;;  %v1972_v44 = vmul.f32 3.8918573e-05, %v3463_v63  ;;  %v3517_v45 = vpop.eup %2759  ;;  %vm1788_vm9 = vweird.f32 %v3465_v21 }
 0xbc8   :  { %vm1828_vm11 = vweird.f32 %v3468_v48  ;;  %v1890_v22 = vadd.f32 1.1283791, %v1889_v15  ;;  %v1963_v46 = vmul.f32 %v1962_v37, %v3463_v63  ;;  %v1786_v47 = vadd.f32 %v3465_v21, %v1785_v16  ;;  %vm3532_vm12 = vmor %vm1787_vm3, %vm1788_vm9 }
 0xbc9   :  { %v1826_v0 = vadd.f32 %v3468_v48, %v1825_v38  ;;  %v1903_v28 = vmul.f32 %v3517_v45, %v3480_v5  ;;  %v1926_v58 = vadd.f32 0.05243302, %v1925_v43  ;;  %v1834_v2 = vor.u32 1.1754944e-38, %v1833_v23  ;;  %vm3541_vm14 = vmor %vm1827_vm6, %vm1828_vm11 }
 0xbca   :  { %v1865_v4 = vmul.f32 %v3491_v35, %v1864_v29  ;;  %v1938_v7 = vmul.f32 %v1937_v51, %v3423_v14  ;;  %v3528_v9 = vmin.f32 %v1999_v61, 16.0  ;;  %vm1867_vm13 = vweird.f32 %v3449_v30 }
 0xbcb   :  { %v1904_v33 = vsub.f32 1.0, %v1903_v28  ;;  %v1964_v55 = vadd.f32 0.0036580483, %v1963_v46  ;;  %v1973_v34 = vadd.f32 0.001143296, %v1972_v44  ;;  %vm1868_vm15 = vweird.f32 %v3491_v35 }
 0xbcc   :  { %vm3546_vm4 = vcmp.eq.f32.partialorder %v1871_v19, 8.507059e+37  ;;  %v1874_v61 = vor.u32 1.1754944e-38, %v1873_v3  ;;  %v3551_v39 = vmul.f32 %v1890_v22, %v3351_v57  ;;  %v1939_v40 = vadd.f32 0.4994258, %v1938_v7  ;;  %vm3578_vm5 = vmor %vm1867_vm13, %vm1868_vm15 }
 0xbcd   :  { %v1790_v23 = vsel %vm3532_vm12, %v3465_v21, %v1786_v47  ;;  %v1830_v11 = vsel %vm3541_vm14, %v3468_v48, %v1826_v0  ;;  %v1927_v56 = vmul.f32 %v1926_v58, %v3423_v14  ;;  %v1974_v15 = vmul.f32 %v1973_v34, %v3463_v63 }
 0xbce   :  { %v1866_v16 = vadd.f32 %v3491_v35, %v1865_v4  ;;  %v1905_v38 = vmul.f32 %v3517_v45, %v1904_v33  ;;  %v1940_v57 = vmul.f32 %v1939_v40, %v3423_v14  ;;  %v2001_v43 = vmul.f32 2.1237322e-06, %v3528_v9 }
 0xbcf   :  { %v1911_v20 = vand.u32 2147483647, %v3480_v5  ;;  %v1965_v21 = vmul.f32 %v1964_v55, %v3463_v63  ;;  %v1975_v29 = vadd.f32 0.014752088, %v1974_v15  ;;  %v2012_v19 = vmul.f32 3.8918573e-05, %v3528_v9 }
 0xbd0   :  { %v1795_v48 = vsel %vm3507_vm7, %v1794_v50, %v1790_v23  ;;  %v1835_v37 = vsel %vm3511_vm8, %v1834_v2, %v1830_v11  ;;  %v3572_v3 = vadd.f32 1.0, %v1940_v57  ;;  %v2002_v51 = vadd.f32 0.00028619796, %v2001_v43 }
 0xbd1   :  { %v1913_v22 = vand.u32 2147483648, %v3480_v5  ;;  %v1928_v46 = vadd.f32 0.18741608, %v1927_v56  ;;  %v1976_v53 = vmul.f32 %v1975_v29, %v3463_v63  ;;  %v2013_v50 = vadd.f32 0.001143296, %v2012_v19 }
 0xbd2   :  { %v1870_v41 = vsel %vm3578_vm5, %v3491_v35, %v1866_v16  ;;  %v1906_v47 = vadd.f32 %v3517_v45, %v1905_v38  ;;  %vm1908_vm3 = vweird.f32 %v3517_v45  ;;  %2761 = vrcp.f32 %v3572_v3  ;;  %v1702_v16 = vld [vmem:[#allocation1] sm:$0xff] }
 0xbd3   :  { %v3591_v30 = vmul.f32 %v1795_v48, %v3475_v1  ;;  %v3594_v0 = vmul.f32 %v1835_v37, %v3487_v13  ;;  %vm1907_vm6 = vweird.f32 %v3480_v5  ;;  %v1966_v28 = vadd.f32 0.05243302, %v1965_v21  ;;  %v1718_v21 = vpop.f32.mrf.mxu0 }
 0xbd4   :  { %v1977_v58 = vadd.f32 0.112945676, %v1976_v53  ;;  %v2003_v2 = vmul.f32 %v2002_v51, %v3528_v9  ;;  %v2014_v35 = vmul.f32 %v2013_v50, %v3528_v9  ;;  %v2039_v4 = vmul.f32 %v3460_v42, %v3460_v42  ;;  %vm3603_vm7 = vmor %vm1907_vm6, %vm1908_vm3 }
 0xbd5   :  { %v1875_v7 = vsel %vm3546_vm4, %v1874_v61, %v1870_v41  ;;  %vm3607_vm8 = vcmp.eq.f32.partialorder %v1911_v20, 8.507059e+37  ;;  %v1914_v5 = vor.u32 1.1754944e-38, %v1913_v22  ;;  %v1929_v32 = vmul.f32 %v1928_v46, %v3423_v14 }
 0xbd6   :  { %v1910_v33 = vsel %vm3603_vm7, %v3517_v45, %v1906_v47  ;;  %v1978_v55 = vmul.f32 %v1977_v58, %v3463_v63  ;;  %v2015_v34 = vadd.f32 0.014752088, %v2014_v35  ;;  %v3616_v36 = vmin.f32 %v2039_v4, 16.0 }
 0xbd7   :  { %v2656_v18 = vclamps-f32 %v3591_v30, 1.0  ;;  %v2657_v61 = vclamps-f32 %v3594_v0, 1.0  ;;  %v1967_v40 = vmul.f32 %v1966_v28, %v3463_v63  ;;  %v2004_v23 = vadd.f32 0.0036580483, %v2003_v2 }
 0xbd8   :  { %v2762_v11 = vpop.eup %2761  ;;  %v1876_v56 = vmul.f32 %v1875_v7, %v3497_v24  ;;  %v1979_v14 = vadd.f32 0.4994258, %v1978_v55  ;;  %v2016_v15 = vmul.f32 %v2015_v34, %v3528_v9  ;;  %v2041_v45 = vmul.f32 2.1237322e-06, %v3616_v36 }
 0xbd9   :  { %v1915_v38 = vsel %vm3607_vm8, %v1914_v5, %v1910_v33  ;;  %v1930_v57 = vadd.f32 1.1283791, %v1929_v32  ;;  %v1943_v43 = vmul.f32 %v2762_v11, %v3572_v3  ;;  %v2052_v20 = vmul.f32 3.8918573e-05, %v3616_v36 }
 0xbda   :  { %v1953_v29 = vand.u32 2147483648, %v3572_v3  ;;  %v1980_v19 = vmul.f32 %v1979_v14, %v3463_v63  ;;  %v2017_v24 = vadd.f32 0.112945676, %v2016_v15  ;;  %v2042_v48 = vadd.f32 0.00028619796, %v2041_v45 }
 0xbdb   :  { %v1944_v37 = vsub.f32 1.0, %v1943_v43  ;;  %v1968_v51 = vadd.f32 0.18741608, %v1967_v40  ;;  %v2005_v44 = vmul.f32 %v2004_v23, %v3528_v9  ;;  %v2053_v22 = vadd.f32 0.001143296, %v2052_v20 }
 0xbdc   :  { %v3631_v46 = vadd.f32 1.0, %v1980_v19  ;;  %v2018_v53 = vmul.f32 %v2017_v24, %v3528_v9  ;;  %v2043_v50 = vmul.f32 %v2042_v48, %v3616_v36  ;;  %v3635_v41 = vadd.f32 %v1718_v21, %v1702_v16 }
 0xbdd   :  { %v1945_v47 = vmul.f32 %v2762_v11, %v1944_v37  ;;  %vm1948_vm9 = vweird.f32 %v2762_v11  ;;  %v1951_v30 = vand.u32 2147483647, %v3572_v3  ;;  %v2054_v0 = vmul.f32 %v2053_v22, %v3616_v36 }
 0xbde   :  { %v2658_v28 = vclamps-f32 %v1876_v56, 1.0  ;;  %v1916_v58 = vmul.f32 %v1915_v38, %v3551_v39  ;;  %vm1947_vm11 = vweird.f32 %v3572_v3  ;;  %2763 = vrcp.f32 %v3631_v46 }
 0xbdf   :  { %v1946_v2 = vadd.f32 %v2762_v11, %v1945_v47  ;;  %v1969_v35 = vmul.f32 %v1968_v51, %v3463_v63  ;;  %v2006_v4 = vadd.f32 0.05243302, %v2005_v44  ;;  %v2019_v7 = vadd.f32 0.4994258, %v2018_v53  ;;  %vm1949_vm12 = vmor %vm1947_vm11, %vm1948_vm9 }
 0xbe0   :  { %v1954_v1 = vor.u32 1.1754944e-38, %v1953_v29  ;;  %v2044_v13 = vadd.f32 0.0036580483, %v2043_v50  ;;  %v2055_v5 = vadd.f32 0.014752088, %v2054_v0  ;;  %v1730_v32 = vrot.slane %v3635_v41, 1 }
 0xbe1   :  { %v1931_v33 = vmul.f32 %v1930_v57, %v3394_v6  ;;  %v1950_v55 = vsel %vm1949_vm12, %v2762_v11, %v1946_v2  ;;  %vm1952_vm13 = vcmp.eq.f32.partialorder %v1951_v30, 8.507059e+37  ;;  %v2020_v39 = vmul.f32 %v2019_v7, %v3528_v9 }
 0xbe2   :  { %v2659_v3 = vclamps-f32 %v1916_v58, 1.0  ;;  %v1955_v34 = vsel %vm1952_vm13, %v1954_v1, %v1950_v55  ;;  %v2056_v40 = vmul.f32 %v2055_v5, %v3616_v36  ;;  %v3648_v63 = vmul.f32 0.70710677, %v3635_v41 }
 0xbe3   :  { %v1956_v23 = vmul.f32 %v1955_v34, %v1931_v33  ;;  %v1970_v56 = vadd.f32 1.1283791, %v1969_v35  ;;  %v2007_v14 = vmul.f32 %v2006_v4, %v3528_v9  ;;  %v3651_v15 = vadd.f32 1.0, %v2020_v39 }
 0xbe4   :  { %v2764_v45 = vpop.eup %2763  ;;  %v2045_v6 = vmul.f32 %v2044_v13, %v3616_v36  ;;  %v2057_v11 = vadd.f32 0.112945676, %v2056_v40  ;;  %v2159_v16 = vadd.f32 1.0, %v2656_v18  ;;  %v3656_v38 = vmul.f32 0.70710677, %v1730_v32 }
 0xbe5   :  { %v2660_v57 = vclamps-f32 %v1956_v23, 1.0  ;;  %v1983_v43 = vmul.f32 %v2764_v45, %v3631_v46  ;;  %v1991_v20 = vand.u32 2147483647, %v3631_v46  ;;  %v2160_v21 = vadd.f32 1.0, %v2657_v61 }
 0xbe6   :  { %v1993_v29 = vand.u32 2147483648, %v3631_v46  ;;  %2765 = vrcp.f32 %v3651_v15  ;;  %v2161_v19 = vadd.f32 1.0, %v2658_v28  ;;  %v2079_v24 = vmul.f32 %v3648_v63, %v3648_v63 }
 0xbe7   :  { %v1984_v48 = vsub.f32 1.0, %v1983_v43  ;;  %v2008_v18 = vadd.f32 0.18741608, %v2007_v14  ;;  %v2058_v37 = vmul.f32 %v2057_v11, %v3616_v36  ;;  %v2162_v51 = vadd.f32 1.0, %v2659_v3 }
 0xbe8   :  { %v2046_v44 = vadd.f32 0.05243302, %v2045_v6  ;;  %v2163_v22 = vadd.f32 1.0, %v2660_v57  ;;  %v2169_v53 = vmul.f32 %v2159_v16, %v3426_v17  ;;  %v2119_v61 = vmul.f32 %v3656_v38, %v3656_v38 }
 0xbe9   :  { %v1985_v50 = vmul.f32 %v2764_v45, %v1984_v48  ;;  %vm1988_vm14 = vweird.f32 %v2764_v45  ;;  %v2059_v47 = vadd.f32 0.4994258, %v2058_v37  ;;  %v2170_v30 = vmul.f32 %v2160_v21, %v3430_v25 }
 0xbea   :  { %v2171_v0 = vmul.f32 %v2161_v19, %v3437_v26  ;;  %v2172_v28 = vmul.f32 %v2162_v51, %v3441_v62  ;;  %v2173_v58 = vmul.f32 %v2163_v22, %v3456_v52  ;;  %2189 = vst [vmem:[#allocation1] ss:$9 sm:$0xff] %v2169_v53  ;;  %v3672_v2 = vmin.f32 %v2079_v24, 16.0 }
 0xbeb   :  { %v1986_v35 = vadd.f32 %v2764_v45, %v1985_v50  ;;  %vm1987_vm15 = vweird.f32 %v3631_v46  ;;  %v1994_v17 = vor.u32 1.1754944e-38, %v1993_v29  ;;  %v2060_v4 = vmul.f32 %v2059_v47, %v3616_v36  ;;  %2191 = vst [vmem:[#allocation1 + $0x1] ss:$9 sm:$0xff] %v2170_v30 }
 0xbec   :  { %v2766_v7 = vpop.eup %2765  ;;  %vm1989_vm4 = vmor %vm1987_vm15, %vm1988_vm14  ;;  %v2009_v25 = vmul.f32 %v2008_v18, %v3528_v9  ;;  %2193 = vst [vmem:[#allocation1 + $0x2] ss:$9 sm:$0xff] %v2171_v0  ;;  %v2081_v26 = vmul.f32 2.1237322e-06, %v3672_v2  ;;  %v2092_v62 = vmul.f32 3.8918573e-05, %v3672_v2  ;;  %v2047_v13 = vmul.f32 %v2046_v44, %v3616_v36 }
 0xbed   :  { %v1990_v52 = vsel %vm1989_vm4, %v2764_v45, %v1986_v35  ;;  %vm1992_vm5 = vcmp.eq.f32.partialorder %v1991_v20, 8.507059e+37  ;;  %v2023_v1 = vmul.f32 %v2766_v7, %v3651_v15  ;;  %2195 = vst [vmem:[#allocation1 + $0x3] ss:$9 sm:$0xff] %v2172_v28  ;;  %v3681_v5 = vadd.f32 1.0, %v2060_v4 }
 0xbee   :  { %v1995_v46 = vsel %vm1992_vm5, %v1994_v17, %v1990_v52  ;;  %2197 = vst [vmem:[#allocation1 + $0x4] ss:$9 sm:$0xff] %v2173_v58  ;;  %v2082_v33 = vadd.f32 0.00028619796, %v2081_v26  ;;  %v3683_v55 = vmin.f32 %v2119_v61, 16.0  ;;  %v1971_v9 = vmul.f32 %v1970_v56, %v3410_v8 }
 0xbef   :  { %v2024_v39 = vsub.f32 1.0, %v2023_v1  ;;  %v2033_v3 = vand.u32 2147483648, %v3651_v15  ;;  %v2093_v34 = vadd.f32 0.001143296, %v2092_v62  ;;  %v2010_v40 = vadd.f32 1.1283791, %v2009_v25 }
 0xbf0   :  { %vm2028_vm3 = vweird.f32 %v2766_v7  ;;  %v2031_v23 = vand.u32 2147483647, %v3651_v15  ;;  %2767 = vrcp.f32 %v3681_v5  ;;  %v1996_v14 = vmul.f32 %v1995_v46, %v1971_v9 }
 0xbf1   :  { %v2025_v45 = vmul.f32 %v2766_v7, %v2024_v39  ;;  %v2083_v6 = vmul.f32 %v2082_v33, %v3672_v2  ;;  %v2094_v11 = vmul.f32 %v2093_v34, %v3672_v2  ;;  %v2048_v16 = vadd.f32 0.18741608, %v2047_v13 }
 0xbf2   :  { %v2121_v57 = vmul.f32 2.1237322e-06, %v3683_v55  ;;  %v2132_v8 = vmul.f32 3.8918573e-05, %v3683_v55  ;;  %vm2027_vm6 = vweird.f32 %v3651_v15  ;;  %v2034_v43 = vor.u32 1.1754944e-38, %v2033_v3 }
 0xbf3   :  { %v2026_v56 = vadd.f32 %v2766_v7, %v2025_v45  ;;  %v2095_v20 = vadd.f32 0.014752088, %v2094_v11  ;;  %v2011_v21 = vmul.f32 %v2010_v40, %v3445_v27  ;;  %vm2029_vm7 = vmor %vm2027_vm6, %vm2028_vm3  ;;  %v2084_v29 = vadd.f32 0.0036580483, %v2083_v6 }
 0xbf4   :  { %v2122_v19 = vadd.f32 0.00028619796, %v2121_v57  ;;  %v2133_v24 = vadd.f32 0.001143296, %v2132_v8  ;;  %v2661_v48 = vclamps-f32 %v1996_v14, 1.0  ;;  %vm2032_vm8 = vcmp.eq.f32.partialorder %v2031_v23, 8.507059e+37 }
 0xbf5   :  { %v2030_v18 = vsel %vm2029_vm7, %v2766_v7, %v2026_v56  ;;  %v2096_v37 = vmul.f32 %v2095_v20, %v3672_v2  ;;  %v2049_v22 = vmul.f32 %v2048_v16, %v3616_v36  ;;  %v1744_v27 = vmul.f32 0.5, %v1727_v59  ;;  %v3714_v40 = vld [vmem:[#allocation1] sm:$0xff]  ;;  %v2693_v57 = vld [vmem:[%s3845_s10 + $0x18] sm:$0xff] }
 0xbf6   :  { %v2768_v51 = vpop.eup %2767  ;;  %v2035_v44 = vsel %vm2032_vm8, %v2034_v43, %v2030_v18  ;;  %v2123_v15 = vmul.f32 %v2122_v19, %v3683_v55  ;;  %v2134_v53 = vmul.f32 %v2133_v24, %v3683_v55  ;;  %v1745_v47 = vmul.f32 0.5, %v1728_v54  ;;  %2330 = vmatpush.bf16.msrb.mxu1 %v2693_v57  ;;  %v2691_v18 = vld [vmem:[%s3845_s10 + $0x8] sm:$0xff] }
 0xbf7   :  { %v2036_v61 = vmul.f32 %v2035_v44, %v2011_v21  ;;  %v2063_v50 = vmul.f32 %v2768_v51, %v3681_v5  ;;  %v2085_v30 = vmul.f32 %v2084_v29, %v3672_v2  ;;  %v2097_v0 = vadd.f32 0.112945676, %v2096_v37 }
 0xbf8   :  { %v2135_v28 = vadd.f32 0.014752088, %v2134_v53  ;;  %v2164_v36 = vadd.f32 1.0, %v2661_v48  ;;  %v2124_v17 = vadd.f32 0.0036580483, %v2123_v15  ;;  %v2073_v7 = vand.u32 2147483648, %v3681_v5 }
 0xbf9   :  { %v2662_v58 = vclamps-f32 %v2036_v61, 1.0  ;;  %v2064_v35 = vsub.f32 1.0, %v2063_v50  ;;  %v2050_v4 = vadd.f32 1.1283791, %v2049_v22  ;;  %v2098_v25 = vmul.f32 %v2097_v0, %v3672_v2 }
 0xbfa   :  { %v2136_v59 = vmul.f32 %v2135_v28, %v3683_v55  ;;  %vm2068_vm9 = vweird.f32 %v2768_v51  ;;  %v2071_v62 = vand.u32 2147483647, %v3681_v5  ;;  %v2086_v52 = vadd.f32 0.05243302, %v2085_v30 }
 0xbfb   :  { %v2065_v26 = vmul.f32 %v2768_v51, %v2064_v35  ;;  %v2165_v54 = vadd.f32 1.0, %v2662_v58  ;;  %v2099_v1 = vadd.f32 0.4994258, %v2098_v25  ;;  %vm2067_vm11 = vweird.f32 %v3681_v5 }
 0xbfc   :  { %v2137_v13 = vadd.f32 0.112945676, %v2136_v59  ;;  %v2174_v33 = vmul.f32 %v2164_v36, %v1744_v27  ;;  %v2125_v9 = vmul.f32 %v2124_v17, %v3683_v55  ;;  %vm2069_vm12 = vmor %vm2067_vm11, %vm2068_vm9  ;;  %v2074_v39 = vor.u32 1.1754944e-38, %v2073_v7 }
 0xbfd   :  { %v2066_v46 = vadd.f32 %v2768_v51, %v2065_v26  ;;  %v2100_v3 = vmul.f32 %v2099_v1, %v3672_v2  ;;  %v2051_v23 = vmul.f32 %v2050_v4, %v3460_v42  ;;  %vm2072_vm13 = vcmp.eq.f32.partialorder %v2071_v62, 8.507059e+37  ;;  %v2692_v42 = vld [vmem:[%s3845_s10 + $0x10] sm:$0xff] }
 0xbfe   :  { %v2138_v34 = vmul.f32 %v2137_v13, %v3683_v55  ;;  %v2175_v45 = vmul.f32 %v2165_v54, %v1745_v47  ;;  %2199 = vst [vmem:[#allocation1] ss:$9 sm:$0xff] %v2174_v33  ;;  %v2087_v5 = vmul.f32 %v2086_v52, %v3672_v2  ;;  %v2126_v56 = vadd.f32 0.05243302, %v2125_v9  ;;  %2331 = vmatpush.bf16.msrb.mxu1 %v2692_v42 }
 0xbff   :  { %v2070_v14 = vsel %vm2069_vm12, %v2768_v51, %v2066_v46  ;;  %v2101_v11 = vadd.f32 1.0, %v2100_v3  ;;  %v1746_v29 = vmul.f32 0.5, %v1729_v12  ;;  %v1747_v1 = vmul.f32 0.5, %v3635_v41 }
 0xc00   :  { %v2075_v6 = vsel %vm2072_vm13, %v2074_v39, %v2070_v14  ;;  %v2139_v16 = vadd.f32 0.4994258, %v2138_v34  ;;  %2200 = vst [vmem:[#allocation1 + $0x1] ss:$9 sm:$0xff] %v2175_v45  ;;  %v2088_v21 = vadd.f32 0.18741608, %v2087_v5  ;;  %v2127_v24 = vmul.f32 %v2126_v56, %v3683_v55 }
 0xc01   :  { %v2076_v8 = vmul.f32 %v2075_v6, %v2051_v23  ;;  %2769 = vrcp.f32 %v2101_v11  ;;  %v2113_v27 = vand.u32 2147483648, %v2101_v11  ;;  %v2111_v47 = vand.u32 2147483647, %v2101_v11 }
 0xc02   :  { %v2140_v20 = vmul.f32 %v2139_v16, %v3683_v55  ;;  %v2089_v44 = vmul.f32 %v2088_v21, %v3672_v2  ;;  %v2128_v15 = vadd.f32 0.18741608, %v2127_v24  ;;  %2332 = vmatpush.bf16.msrb.mxu1 %v2691_v18  ;;  %vm2107_vm15 = vweird.f32 %v2101_v11 }
 0xc03   :  { %v2663_v43 = vclamps-f32 %v2076_v8, 1.0  ;;  %v2114_v58 = vor.u32 1.1754944e-38, %v2113_v27  ;;  %vm2112_vm5 = vcmp.eq.f32.partialorder %v2111_v47, 8.507059e+37  ;;  %v2207_v3 = vpack.c.bf16 %v3714_v40, %v3714_v40 }
 0xc04   :  { %v2141_v48 = vadd.f32 1.0, %v2140_v20  ;;  %v2090_v53 = vadd.f32 1.1283791, %v2089_v44  ;;  %v2129_v30 = vmul.f32 %v2128_v15, %v3683_v55  ;;  %v1748_v34 = vmul.f32 0.5, %v1730_v32 }
 0xc05   :  { %v2166_v19 = vadd.f32 1.0, %v2663_v43  ;;  %v2222_v45 = vrot.slane %v2207_v3, 3  ;;  %vm2323_vm9 = vcmask 523264   ;;  %v2361_v27 = vrot.slane %v3315_v10, 2 }
 0xc06   :  { %2771 = vrcp.f32 %v2141_v48  ;;  %2333 = vmatpush.bf16.msrb.mxu1 %v2690_v49  ;;  %v2091_v28 = vmul.f32 %v2090_v53, %v3648_v63  ;;  %v2130_v17 = vadd.f32 1.1283791, %v2129_v30  ;;  %v2153_v4 = vand.u32 2147483648, %v2141_v48 }
 0xc07   :  { %v2176_v37 = vmul.f32 %v2166_v19, %v1746_v29  ;;  %v2770_v51 = vpop.eup %2769  ;;  %v2151_v59 = vand.u32 2147483647, %v2141_v48  ;;  %vm2147_vm6 = vweird.f32 %v2141_v48  ;;  %v2231_v57 = vsel %vm79_vm0, %v2207_v3, %v2222_v45 }
 0xc08   :  { %v2103_v22 = vmul.f32 %v2770_v51, %v2101_v11  ;;  %vm2108_vm14 = vweird.f32 %v2770_v51  ;;  %v2154_v54 = vor.u32 1.1754944e-38, %v2153_v4  ;;  %v2131_v52 = vmul.f32 %v2130_v17, %v3656_v38 }
 0xc09   :  { %2201 = vst [vmem:[#allocation1 + $0x2] ss:$9 sm:$0xff] %v2176_v37  ;;  %vm2109_vm4 = vmor %vm2107_vm15, %vm2108_vm14  ;;  %vm2152_vm8 = vcmp.eq.f32.partialorder %v2151_v59, 8.507059e+37  ;;  %v2228_v38 = vsel %vm75_vm2, %v2207_v3, %v2222_v45  ;;  %v2226_v11 = vsel %vm70_vm1, %v2207_v3, %v2222_v45  ;;  %v2233_v8 = vrot.slane %v2231_v57, 2 }
 0xc0a   :  { %v2104_v12 = vsub.f32 1.0, %v2103_v22  ;;  %v2230_v6 = vrot.slane %v2228_v38, 1  ;;  %v2360_v53 = vrot.slane %v3315_v10, 1 }
 0xc0c   :  { %v2772_v61 = vpop.eup %2771  ;;  %v2105_v50 = vmul.f32 %v2770_v51, %v2104_v12 }
 0xc0d   :  { %v2143_v0 = vmul.f32 %v2772_v61, %v2141_v48  ;;  %vm2148_vm3 = vweird.f32 %v2772_v61  ;;  %v2712_v48 = vld [vmem:[%s3844_s11] ss:$0 sm:$0xff] }
 0xc0e   :  { %v2106_v2 = vadd.f32 %v2770_v51, %v2105_v50  ;;  %vm2149_vm7 = vmor %vm2147_vm6, %vm2148_vm3  ;;  %v2254_v18 = vrot.slane %v2712_v48, 1  ;;  %v2255_v37 = vrot.slane %v2712_v48, 2  ;;  %v2256_v44 = vrot.slane %v2712_v48, 3 }
 0xc0f   :  { %v2144_v35 = vsub.f32 1.0, %v2143_v0  ;;  %v2257_v22 = vrot.slane %v2712_v48, 4 }
 0xc10   :  { %v2110_v36 = vsel %vm2109_vm4, %v2770_v51, %v2106_v2 }
 0xc11   :  { %v2115_v7 = vsel %vm2112_vm5, %v2114_v58, %v2110_v36  ;;  %v2145_v25 = vmul.f32 %v2772_v61, %v2144_v35 }
 0xc12   :  { %v2116_v26 = vmul.f32 %v2115_v7, %v2091_v28  ;;  %v2363_v28 = vrot.slane %v3315_v10, 4 }
 0xc13   :  { %v2146_v62 = vadd.f32 %v2772_v61, %v2145_v25 }
 0xc14   :  { %v2664_v55 = vclamps-f32 %v2116_v26, 1.0 }
 0xc15   :  { %v2150_v63 = vsel %vm2149_vm7, %v2772_v61, %v2146_v62  ;;  %v2362_v61 = vrot.slane %v3315_v10, 3 }
 0xc16   :  { %v2155_v13 = vsel %vm2152_vm8, %v2154_v54, %v2150_v63  ;;  %v2167_v46 = vadd.f32 1.0, %v2664_v55  ;;  %v2364_v54 = vrot.slane %v3321_v31, 1  ;;  %v2367_v63 = vrot.slane %v3321_v31, 4 }
 0xc17   :  { %v2156_v33 = vmul.f32 %v2155_v13, %v2131_v52  ;;  %v2365_v52 = vrot.slane %v3321_v31, 2  ;;  %v2366_v13 = vrot.slane %v3321_v31, 3 }
 0xc18   :  { %v2177_v9 = vmul.f32 %v2167_v46, %v1747_v1 }
 0xc19   :  { %v2665_v39 = vclamps-f32 %v2156_v33, 1.0 }
 0xc1a   :  { %2202 = vst [vmem:[#allocation1 + $0x3] ss:$9 sm:$0xff] %v2177_v9 }
 0xc1b   :  { %v2168_v23 = vadd.f32 1.0, %v2665_v39 }
 0xc1d   :  { %v2178_v14 = vmul.f32 %v2168_v23, %v1748_v34 }
 0xc1f   :  { %2203 = vst [vmem:[#allocation1 + $0x4] ss:$9 sm:$0xff] %v2178_v14 }
 0xc26   :  { %v2204_v5 = vld [vmem:[#allocation1] sm:$0xff] }
 0xc27   :  { %v2208_v16 = vpack.c.bf16 %v2204_v5, %v2204_v5  ;;  %2264 = vst [vmem:[#allocation1] ss:$9 sm:$0xff] %v2226_v11 }
 0xc28   :  { %2267 = vst [vmem:[#allocation1 + $0x1] ss:$9 sm:$0xff] %v2230_v6 }
 0xc29   :  { %v2223_v40 = vrot.slane %v2208_v16, 3 }
 0xc2b   :  { %v2236_v41 = vsel %vm70_vm1, %v2208_v16, %v2223_v40  ;;  %v2238_v32 = vsel %vm75_vm2, %v2208_v16, %v2223_v40  ;;  %v2241_v56 = vsel %vm79_vm0, %v2208_v16, %v2223_v40 }
 0xc2c   :  { %v2240_v42 = vrot.slane %v2238_v32, 1  ;;  %v2250_v43 = vunpack.i.h.s16 %v2236_v41  ;;  %v2666_v20 = vpack.i.b16 %v2236_v41, %v2233_v8  ;;  %v2243_v21 = vrot.slane %v2241_v56, 2 }
 0xc2e   :  { %v2252_v29 = vunpack.i.h.s16 %v2240_v42  ;;  %v2667_v19 = vpack.i.b16 %v2240_v42, %v2250_v43  ;;  %2270 = vst [vmem:[#allocation1 + $0x2] ss:$9 sm:$0xff] %v2666_v20 }
 0xc30   :  { %v2668_v24 = vpack.i.b16 %v2243_v21, %v2252_v29  ;;  %2273 = vst [vmem:[#allocation1 + $0x3] ss:$9 sm:$0xff] %v2667_v19 }
 0xc32   :  { %2276 = vst [vmem:[#allocation1 + $0x4] ss:$9 sm:$0xff] %v2668_v24 }
 0xc39   :  { %v2277_v51 = vld [vmem:[#allocation1] sm:$0xff] }
 0xc3a   :  { %2685 = vmatmul.msk.bf16.vlgmr.msrb.gmra.mxu1 %vm2323_vm9, %v2277_v51  ;;  %2302 = vst [vmem:[#allocation1] ss:$9 sm:$0xff] %v2712_v48 }
 0xc3b   :  { %2304 = vst [vmem:[#allocation1 + $0x1] ss:$9 sm:$0xff] %v2254_v18 }
 0xc3c   :  { %2306 = vst [vmem:[#allocation1 + $0x2] ss:$9 sm:$0xff] %v2255_v37 }
 0xc3d   :  { %2308 = vst [vmem:[#allocation1 + $0x3] ss:$9 sm:$0xff] %v2256_v44 }
 0xc3e   :  { %2310 = vst [vmem:[#allocation1 + $0x4] ss:$9 sm:$0xff] %v2257_v22 }
 0xc3f   :  { %2312 = vst [vmem:[#allocation1 + $0x5] ss:$9 sm:$0xff] %v2712_v48 }
 0xc40   :  { %2314 = vst [vmem:[#allocation1 + $0x6] ss:$9 sm:$0xff] %v2254_v18 }
 0xc41   :  { %2316 = vst [vmem:[#allocation1 + $0x7] ss:$9 sm:$0xff] %v2255_v37 }
 0xc48   :  { %v2317_v15 = vld [vmem:[#allocation1] sm:$0xff] }
 0xc49   :  { %2318 = vst [vmem:[#allocation1] ss:$9 sm:$0xff] %v2256_v44 }
 0xc4a   :  { %2319 = vst [vmem:[#allocation1 + $0x1] ss:$9 sm:$0xff] %v2257_v22 }
 0xc51   :  { %v2320_v2 = vld [vmem:[#allocation1] sm:$0xff] }
 0xcb7   :  { %v2335_v49 = vpop.f32.mrf.mxu1 }
 0xcb8   :  { %v2336_v12 = vadd.f32 %v2335_v49, %v2317_v15 }
 0xcba   :  { %v2342_v50 = vrot.slane %v2336_v12, 1  ;;  %v2343_v47 = vrot.slane %v2336_v12, 2  ;;  %v2344_v30 = vrot.slane %v2336_v12, 3  ;;  %v2345_v0 = vrot.slane %v2336_v12, 4 }
 0xcbb   :  { %v2376_v58 = vadd.f32 %v2336_v12, %v3315_v10  ;;  %v2346_v59 = vrot.slane %v2336_v12, 5  ;;  %v2347_v26 = vrot.slane %v2336_v12, 6  ;;  %v2348_v62 = vrot.slane %v2336_v12, 7 }
 0xcbc   :  { %v2377_v35 = vadd.f32 %v2360_v53, %v2342_v50  ;;  %v2378_v36 = vadd.f32 %v2361_v27, %v2343_v47  ;;  %v2379_v17 = vadd.f32 %v2362_v61, %v2344_v30  ;;  %v2380_v4 = vadd.f32 %v2363_v28, %v2345_v0 }
 0xcbd   :  { %2396 = vst [vmem:[#allocation1] ss:$9 sm:$0xff] %v2376_v58  ;;  %v2381_v10 = vadd.f32 %v2346_v59, %v3321_v31  ;;  %v2382_v1 = vadd.f32 %v2364_v54, %v2347_v26  ;;  %v2383_v33 = vadd.f32 %v2365_v52, %v2348_v62 }
 0xcbe   :  { %2398 = vst [vmem:[#allocation1 + $0x1] ss:$9 sm:$0xff] %v2377_v35 }
 0xcbf   :  { %v2337_v7 = vpop.f32.mrf.mxu1  ;;  %2400 = vst [vmem:[#allocation1 + $0x2] ss:$9 sm:$0xff] %v2378_v36 }
 0xcc0   :  { %2402 = vst [vmem:[#allocation1 + $0x3] ss:$9 sm:$0xff] %v2379_v17  ;;  %v2338_v25 = vadd.f32 %v2337_v7, %v2320_v2 }
 0xcc1   :  { %2404 = vst [vmem:[#allocation1 + $0x4] ss:$9 sm:$0xff] %v2380_v4 }
 0xcc2   :  { %v2349_v55 = vrot.slane %v2338_v25, 1  ;;  %v2384_v3 = vadd.f32 %v2366_v13, %v2338_v25 }
 0xcc4   :  { %v2385_v9 = vadd.f32 %v2367_v63, %v2349_v55 }
 0xcc8   :  { %v2405_v46 = vld [vmem:[#allocation1] sm:$0xff] }
 0xcc9   :  { %v2414_v39 = vsel %vm1417_vm10, %v2405_v46, 0.0  ;;  %2406 = vst [vmem:[#allocation1] ss:$9 sm:$0xff] %v2381_v10 }
 0xcca   :  { %2415 = vadd.xlane.f32.xlu2 %v2414_v39  ;;  %2407 = vst [vmem:[#allocation1 + $0x1] ss:$9 sm:$0xff] %v2382_v1 }
 0xccb   :  { %2408 = vst [vmem:[#allocation1 + $0x2] ss:$9 sm:$0xff] %v2383_v33 }
 0xccc   :  { %2409 = vst [vmem:[#allocation1 + $0x3] ss:$9 sm:$0xff] %v2384_v3 }
 0xccd   :  { %2410 = vst [vmem:[#allocation1 + $0x4] ss:$9 sm:$0xff] %v2385_v9 }
 0xcd4   :  { %v2411_v34 = vld [vmem:[#allocation1] sm:$0xff] }
 0xcd5   :  { %v2417_v23 = vsel %vm1417_vm10, %v2411_v34, 0.0 }
 0xcd6   :  { %2418 = vadd.xlane.f32.xlu1 %v2417_v23 }
 0xd3d   :  { %v2416_v14 = vpop.xlane.xlu2 %2415 }
 0xd3e   :  { %v2420_v45 = vmul.f32 %v2416_v14, %v3241_v60 }
 0xd40   :  { %v2424_v31 = vperm.slane %v2420_v45, 0  ;;  %v2425_v38 = vperm.slane %v2420_v45, 1  ;;  %v2426_v6 = vperm.slane %v2420_v45, 2  ;;  %v2427_v5 = vperm.slane %v2420_v45, 3 }
 0xd41   :  { %v2428_v11 = vperm.slane %v2420_v45, 4 }
 0xd42   :  { %v3765_v16 = vsub.f32 %v2376_v58, %v2424_v31  ;;  %v3767_v57 = vsub.f32 %v2377_v35, %v2425_v38  ;;  %v3769_v40 = vsub.f32 %v2378_v36, %v2426_v6  ;;  %v3771_v8 = vsub.f32 %v2379_v17, %v2427_v5  ;;  %v2713_v6 = vld [vmem:[%s3846_s12] ss:$0 sm:$0xff] }
 0xd43   :  { %v3773_v41 = vsub.f32 %v2380_v4, %v2428_v11 }
 0xd44   :  { %v2454_v32 = vmul.f32 %v3765_v16, %v3765_v16  ;;  %v2455_v56 = vmul.f32 %v3767_v57, %v3767_v57  ;;  %v2456_v42 = vmul.f32 %v3769_v40, %v3769_v40  ;;  %v2457_v43 = vmul.f32 %v3771_v8, %v3771_v8 }
 0xd45   :  { %v2458_v20 = vmul.f32 %v3773_v41, %v3773_v41 }
 0xd46   :  { %2474 = vst [vmem:[#allocation1] ss:$9 sm:$0xff] %v2454_v32 }
 0xd47   :  { %2476 = vst [vmem:[#allocation1 + $0x1] ss:$9 sm:$0xff] %v2455_v56 }
 0xd48   :  { %2478 = vst [vmem:[#allocation1 + $0x2] ss:$9 sm:$0xff] %v2456_v42 }
 0xd49   :  { %2480 = vst [vmem:[#allocation1 + $0x3] ss:$9 sm:$0xff] %v2457_v43  ;;  %v2419_v21 = vpop.xlane.xlu1 %2418 }
 0xd4a   :  { %2482 = vst [vmem:[#allocation1 + $0x4] ss:$9 sm:$0xff] %v2458_v20  ;;  %v2421_v29 = vmul.f32 %v2419_v21, %v3241_v60 }
 0xd4c   :  { %v2429_v19 = vperm.slane %v2421_v29, 0  ;;  %v2430_v24 = vperm.slane %v2421_v29, 1  ;;  %v2431_v48 = vperm.slane %v2421_v29, 2  ;;  %v2432_v18 = vperm.slane %v2421_v29, 3 }
 0xd4d   :  { %v2433_v37 = vperm.slane %v2421_v29, 4 }
 0xd4e   :  { %v3786_v51 = vsub.f32 %v2381_v10, %v2429_v19  ;;  %v3788_v44 = vsub.f32 %v2382_v1, %v2430_v24  ;;  %v3790_v22 = vsub.f32 %v2383_v33, %v2431_v48  ;;  %v3792_v15 = vsub.f32 %v2384_v3, %v2432_v18 }
 0xd4f   :  { %v3794_v49 = vsub.f32 %v2385_v9, %v2433_v37 }
 0xd50   :  { %v2459_v12 = vmul.f32 %v3786_v51, %v3786_v51  ;;  %v2460_v53 = vmul.f32 %v3788_v44, %v3788_v44  ;;  %v2461_v27 = vmul.f32 %v3790_v22, %v3790_v22  ;;  %v2462_v61 = vmul.f32 %v3792_v15, %v3792_v15 }
 0xd51   :  { %v2483_v50 = vld [vmem:[#allocation1] sm:$0xff]  ;;  %v2463_v47 = vmul.f32 %v3794_v49, %v3794_v49 }
 0xd52   :  { %v2492_v30 = vsel %vm1417_vm10, %v2483_v50, 0.0  ;;  %2484 = vst [vmem:[#allocation1] ss:$9 sm:$0xff] %v2459_v12 }
 0xd53   :  { %2493 = vadd.xlane.f32.xlu1 %v2492_v30  ;;  %2485 = vst [vmem:[#allocation1 + $0x1] ss:$9 sm:$0xff] %v2460_v53 }
 0xd54   :  { %2486 = vst [vmem:[#allocation1 + $0x2] ss:$9 sm:$0xff] %v2461_v27 }
 0xd55   :  { %2487 = vst [vmem:[#allocation1 + $0x3] ss:$9 sm:$0xff] %v2462_v61 }
 0xd56   :  { %2488 = vst [vmem:[#allocation1 + $0x4] ss:$9 sm:$0xff] %v2463_v47 }
 0xd5d   :  { %v2489_v0 = vld [vmem:[#allocation1] sm:$0xff] }
 0xd5e   :  { %v2495_v2 = vsel %vm1417_vm10, %v2489_v0, 0.0 }
 0xd5f   :  { %2496 = vadd.xlane.f32.xlu1 %v2495_v2 }
 0xdc6   :  { %v2494_v28 = vpop.xlane.xlu1 %2493 }
 0xdc7   :  { %v2498_v58 = vmul.f32 %v2494_v28, %v3241_v60 }
 0xdc9   :  { %v2500_v35 = vadd.f32 1e-12, %v2498_v58 }
 0xdcb   :  { %2773 = vrsqrt.f32 %v2500_v35  ;;  %vm2508_vm1 = vweird.f32 %v2500_v35 }
 0xdd1   :  { %v2774_v36 = vpop.eup %2773 }
 0xdd2   :  { %v2503_v17 = vmul.f32 %v2774_v36, %v2500_v35  ;;  %v2497_v4 = vpop.xlane.xlu1 %2496  ;;  %vm2509_vm0 = vweird.f32 %v2774_v36 }
 0xdd3   :  { %v2499_v7 = vmul.f32 %v2497_v4, %v3241_v60  ;;  %vm2510_vm2 = vmor %vm2508_vm1, %vm2509_vm0 }
 0xdd4   :  { %v2504_v25 = vmul.f32 %v2774_v36, %v2503_v17 }
 0xdd5   :  { %v2501_v59 = vadd.f32 1e-12, %v2499_v7 }
 0xdd6   :  { %v2505_v26 = vmul.f32 0.5, %v2504_v25 }
 0xdd7   :  { %2775 = vrsqrt.f32 %v2501_v59  ;;  %vm2518_vm12 = vweird.f32 %v2501_v59 }
 0xdd8   :  { %v2506_v62 = vsub.f32 1.5, %v2505_v26 }
 0xdda   :  { %v2507_v55 = vmul.f32 %v2774_v36, %v2506_v62 }
 0xddc   :  { %v2511_v54 = vsel %vm2510_vm2, %v2774_v36, %v2507_v55 }
 0xddd   :  { %v2776_v52 = vpop.eup %2775  ;;  %v2524_v10 = vperm.slane %v2511_v54, 0  ;;  %v2525_v63 = vperm.slane %v2511_v54, 1  ;;  %v2526_v1 = vperm.slane %v2511_v54, 2  ;;  %v2527_v13 = vperm.slane %v2511_v54, 3 }
 0xdde   :  { %v2528_v46 = vperm.slane %v2511_v54, 4  ;;  %v2513_v33 = vmul.f32 %v2776_v52, %v2501_v59  ;;  %vm2519_vm11 = vweird.f32 %v2776_v52 }
 0xddf   :  { %v2544_v9 = vmul.f32 %v2524_v10, %v3765_v16  ;;  %v2545_v60 = vmul.f32 %v2525_v63, %v3767_v57  ;;  %v2546_v39 = vmul.f32 %v2526_v1, %v3769_v40  ;;  %v2547_v3 = vmul.f32 %v2527_v13, %v3771_v8  ;;  %vm2520_vm13 = vmor %vm2518_vm12, %vm2519_vm11  ;;  %v2714_v8 = vld [vmem:[%s3847_s13] ss:$0 sm:$0xff] }
 0xde0   :  { %v2514_v34 = vmul.f32 %v2776_v52, %v2513_v33  ;;  %v2548_v23 = vmul.f32 %v2528_v46, %v3773_v41 }
 0xde1   :  { %2568 = vst [vmem:[#allocation1] ss:$9 sm:$0xff] %v2544_v9 }
 0xde2   :  { %2570 = vst [vmem:[#allocation1 + $0x1] ss:$9 sm:$0xff] %v2545_v60  ;;  %v2515_v14 = vmul.f32 0.5, %v2514_v34 }
 0xde3   :  { %2572 = vst [vmem:[#allocation1 + $0x2] ss:$9 sm:$0xff] %v2546_v39 }
 0xde4   :  { %2574 = vst [vmem:[#allocation1 + $0x3] ss:$9 sm:$0xff] %v2547_v3  ;;  %v2516_v45 = vsub.f32 1.5, %v2515_v14 }
 0xde5   :  { %2576 = vst [vmem:[#allocation1 + $0x4] ss:$9 sm:$0xff] %v2548_v23 }
 0xde6   :  { %v2517_v31 = vmul.f32 %v2776_v52, %v2516_v45 }
 0xde8   :  { %v2521_v38 = vsel %vm2520_vm13, %v2776_v52, %v2517_v31 }
 0xde9   :  { %v2529_v5 = vperm.slane %v2521_v38, 0  ;;  %v2530_v11 = vperm.slane %v2521_v38, 1  ;;  %v2531_v16 = vperm.slane %v2521_v38, 2  ;;  %v2532_v57 = vperm.slane %v2521_v38, 3 }
 0xdea   :  { %v2533_v40 = vperm.slane %v2521_v38, 4 }
 0xdeb   :  { %v2549_v41 = vmul.f32 %v2529_v5, %v3786_v51  ;;  %v2550_v32 = vmul.f32 %v2530_v11, %v3788_v44  ;;  %v2551_v56 = vmul.f32 %v2531_v16, %v3790_v22  ;;  %v2552_v43 = vmul.f32 %v2532_v57, %v3792_v15 }
 0xdec   :  { %v2577_v42 = vld [vmem:[#allocation1] sm:$0xff]  ;;  %v2553_v21 = vmul.f32 %v2533_v40, %v3794_v49 }
 0xded   :  { %v2586_v20 = vmul.f32 %v2713_v6, %v2577_v42  ;;  %2578 = vst [vmem:[#allocation1] ss:$9 sm:$0xff] %v2549_v41 }
 0xdee   :  { %2579 = vst [vmem:[#allocation1 + $0x1] ss:$9 sm:$0xff] %v2550_v32 }
 0xdef   :  { %v2592_v29 = vadd.f32 %v2714_v8, %v2586_v20  ;;  %2580 = vst [vmem:[#allocation1 + $0x2] ss:$9 sm:$0xff] %v2551_v56 }
 0xdf0   :  { %2581 = vst [vmem:[#allocation1 + $0x3] ss:$9 sm:$0xff] %v2552_v43 }
 0xdf1   :  { %2594 = vst.msk [vmem:[%s3848_s14] sm:$0x1f] %vm1417_vm10, %v2592_v29 }
 0xdf2   :  { %2582 = vst [vmem:[#allocation1 + $0x4] ss:$9 sm:$0xff] %v2553_v21 }
 0xdf9   :  { %v2583_v19 = vld [vmem:[#allocation1] sm:$0xff] }
 0xdfa   :  { %v2587_v24 = vmul.f32 %v2713_v6, %v2583_v19 }
 0xdfc   :  { %v2593_v48 = vadd.f32 %v2714_v8, %v2587_v24 }
 0xdfe   :  { %2595 = vst.msk [vmem:[%s3848_s14 + $0x8] sm:$0x1f] %vm1417_vm10, %v2593_v48 }

</bundles_post_ra>
